<compile_context>
chip_gen: v7x
topology: tpu7x:2x2x1
jax: 0.10.0
libtpu: 0.0.40
codegen_flags: <defaults>
</compile_context>

<pallas_src>
import functools
import math

import jax
import jax.numpy as jnp
from jax import lax
from jax.experimental import pallas as pl
from jax.experimental.pallas import tpu as pltpu


# ----------------------------------------------------------------------------
# Tiled linear (+ optional ReLU) kernel: used by conv im2col matmuls and fc.
# ----------------------------------------------------------------------------

def _linear_kernel(x_ref, w_ref, b_ref, o_ref, *, relu):
    y = jnp.dot(x_ref[...].astype(jnp.bfloat16), w_ref[...],
                preferred_element_type=jnp.float32) + b_ref[...]
    if relu:
        y = jnp.maximum(y, 0.0)
    o_ref[...] = y


def pallas_linear(x, w_bf16, b, relu=False, tile_m=512):
    """y = act(x @ w + b).  x:(M,K) f32, w:(K,N) bf16, b:(N,) f32. Tiled over M."""
    M, K = x.shape
    N = w_bf16.shape[1]
    tm = min(tile_m, M)
    grid = (pl.cdiv(M, tm),)
    return pl.pallas_call(
        functools.partial(_linear_kernel, relu=relu),
        out_shape=jax.ShapeDtypeStruct((M, N), jnp.float32),
        grid=grid,
        in_specs=[pl.BlockSpec((tm, K), lambda i: (i, 0)),
                  pl.BlockSpec((K, N), lambda i: (0, 0)),
                  pl.BlockSpec((1, N), lambda i: (0, 0))],
        out_specs=pl.BlockSpec((tm, N), lambda i: (i, 0)),
        compiler_params=pltpu.CompilerParams(
            dimension_semantics=("parallel",)),
    )(x, w_bf16, b.reshape(1, N).astype(jnp.float32))


# ----------------------------------------------------------------------------
# Fused transformer stack + final LN + prediction heads (one pallas_call).
# Grid = (batch, layer): batch is "parallel", layer is "arbitrary"; the
# residual stream is a per-batch-block VMEM scratch resident across layers.
# ----------------------------------------------------------------------------

def _dt_stack_kernel(tok_ref, mask_ref, sel_ref, ln_ref, wqkv_ref, bqkv_ref,
                     wo_ref, win_ref, bin_ref, wout_ref, bod_ref, lnf_ref,
                     wact_ref, bact_ref, wrs_ref, brs_ref,
                     act_ref, rs_ref, resid_ref,
                     *, n_heads, d_head, seq_len):
    layer = pl.program_id(1)
    n_layers = pl.num_programs(1)
    D = n_heads * d_head
    S = seq_len

    @pl.when(layer == 0)
    def _init():
        resid_ref[...] = tok_ref[0]            # load residual stream for this batch

    x = resid_ref[...]                         # (T, D) f32, resident across layers

    def layernorm(h, w, b):
        mu = jnp.mean(h, axis=-1, keepdims=True)
        hc = h - mu
        var = jnp.mean(hc * hc, axis=-1, keepdims=True)
        return hc * lax.rsqrt(var + 1e-5) * w + b

    ln = ln_ref[0]                             # (4, D): ln1_w, ln1_b, ln2_w, ln2_b
    bod = bod_ref[0]                           # (2, D): b_O, b_mlp_out

    # ---- attention (1/sqrt(d_head) pre-folded into W_Q / b_Q) ---------------
    xn = layernorm(x, ln[0:1, :], ln[1:2, :])
    qkv = jnp.dot(xn.astype(jnp.bfloat16), wqkv_ref[0],
                  preferred_element_type=jnp.float32) + bqkv_ref[0]   # (T, 3D)

    def split_heads(off):                      # -> (H, T, dh) bf16, head-leading
        return jnp.stack(
            [qkv[:, off + h * d_head: off + (h + 1) * d_head]
             for h in range(n_heads)], axis=0).astype(jnp.bfloat16)

    q = split_heads(0)
    k = split_heads(D)
    v = split_heads(2 * D)

    # batched over heads: scores, softmax, PV, output projection
    s = lax.dot_general(q, k, (((2,), (2,)), ((0,), (0,))),
                        preferred_element_type=jnp.float32)           # (H, T, T)
    s = jnp.where(mask_ref[...] > 0.5, s, -1e5)    # EasyTransformer IGNORE value
    s = s - jnp.max(s, axis=-1, keepdims=True)
    e = jnp.exp(s)
    p = (e * pl.reciprocal(jnp.sum(e, axis=-1, keepdims=True), approx=True)
         ).astype(jnp.bfloat16)
    z = lax.dot_general(p, v, (((2,), (1,)), ((0,), (0,))),
                        preferred_element_type=jnp.float32)           # (H, T, dh)
    attn = lax.dot_general(z.astype(jnp.bfloat16), wo_ref[0],
                           (((2,), (1,)), ((0,), (0,))),
                           preferred_element_type=jnp.float32)        # (H, T, D)
    x = x + jnp.sum(attn, axis=0) + bod[0:1, :]

    # ---- MLP (ReLU, per EasyTransformer act_fn='relu') ----------------------
    xn2 = layernorm(x, ln[2:3, :], ln[3:4, :])
    m = jnp.dot(xn2.astype(jnp.bfloat16), win_ref[0],
                preferred_element_type=jnp.float32) + bin_ref[0]
    m = jnp.maximum(m, 0.0)
    x = x + jnp.dot(m.astype(jnp.bfloat16), wout_ref[0],
                    preferred_element_type=jnp.float32) + bod[1:2, :]

    # single store per grid step: residual on intermediate layers, heads on last
    @pl.when(layer != n_layers - 1)
    def _store():
        resid_ref[...] = x

    @pl.when(layer == n_layers - 1)
    def _heads():
        # gather [state-token rows | action-token rows] with a one-hot matmul
        # (MXU row gather; exact in f32), then final LN on just those rows.
        picked = jnp.dot(sel_ref[...], x,
                         preferred_element_type=jnp.float32)          # (2S, D)
        lnf = lnf_ref[...]                                            # (2, D)
        pn = layernorm(picked, lnf[0:1, :], lnf[1:2, :])
        st = pn[0:S, :].astype(jnp.bfloat16)       # state-position tokens
        at = pn[S:2 * S, :].astype(jnp.bfloat16)   # action-position tokens
        act_ref[0] = (jnp.dot(st, wact_ref[...],
                              preferred_element_type=jnp.float32) + bact_ref[...])
        rs_ref[0] = (jnp.dot(at, wrs_ref[...],
                             preferred_element_type=jnp.float32) + brs_ref[...])


def dt_transformer_and_heads(tokens, mask, sel, pp, *, n_heads, d_head, seq_len):
    """tokens: (B, T, D) f32.  Returns padded (B, S, A_pad) and (B, S, RS_pad)."""
    B, T, D = tokens.shape
    L = pp['w_qkv'].shape[0]
    S = seq_len
    A_pad = pp['w_act'].shape[1]
    RS_pad = pp['w_rs'].shape[1]

    def per_layer(arr):
        nd = arr.ndim
        return pl.BlockSpec((1,) + tuple(arr.shape[1:]),
                            lambda b, l, _nd=nd: (l,) + (0,) * (_nd - 1))

    def const(arr):
        nd = arr.ndim
        return pl.BlockSpec(tuple(arr.shape), lambda b, l, _nd=nd: (0,) * _nd)

    in_specs = [
        pl.BlockSpec((1, T, D), lambda b, l: (b, 0, 0)),   # tokens (per batch block)
        const(mask),                                       # (T, T) causal mask
        const(sel),                                        # (2S, T) row selector
        per_layer(pp['ln']),
        per_layer(pp['w_qkv']),
        per_layer(pp['b_qkv']),
        per_layer(pp['w_o']),
        per_layer(pp['w_in']),
        per_layer(pp['b_in']),
        per_layer(pp['w_out']),
        per_layer(pp['b_od']),
        const(pp['ln_f']),
        const(pp['w_act']),
        const(pp['b_act']),
        const(pp['w_rs']),
        const(pp['b_rs']),
    ]
    out_specs = (
        pl.BlockSpec((1, S, A_pad), lambda b, l: (b, 0, 0)),
        pl.BlockSpec((1, S, RS_pad), lambda b, l: (b, 0, 0)),
    )
    return pl.pallas_call(
        functools.partial(_dt_stack_kernel, n_heads=n_heads, d_head=d_head,
                          seq_len=S),
        out_shape=(jax.ShapeDtypeStruct((B, S, A_pad), jnp.float32),
                   jax.ShapeDtypeStruct((B, S, RS_pad), jnp.float32)),
        grid=(B, L),
        in_specs=in_specs,
        out_specs=out_specs,
        scratch_shapes=[pltpu.VMEM((T, D), jnp.float32)],   # resident residual
        compiler_params=pltpu.CompilerParams(
            dimension_semantics=("parallel", "arbitrary"),
            vmem_limit_bytes=48 * 1024 * 1024),   # explicit budget (v7x 64 MiB)
    )(tokens, mask, sel, pp['ln'], pp['w_qkv'], pp['b_qkv'], pp['w_o'],
      pp['w_in'], pp['b_in'], pp['w_out'], pp['b_od'], pp['ln_f'],
      pp['w_act'], pp['b_act'], pp['w_rs'], pp['b_rs'])


# ----------------------------------------------------------------------------
# CNN state encoder: NHWC im2col + tiled Pallas matmuls.
# ----------------------------------------------------------------------------

def conv2d_relu_nhwc(x, w_mat, b, k, stride):
    """x: (N, H, W, C) NHWC; w_mat: (k*k*C, Cout) bf16 with (ky, kx, c) row order."""
    N, Hh, Ww, C = x.shape
    o = (Hh - k) // stride + 1
    cols = []
    for ky in range(k):
        for kx in range(k):
            cols.append(x[:, ky:ky + stride * o:stride, kx:kx + stride * o:stride, :])
    patches = jnp.stack(cols, axis=3)                    # (N, o, o, k*k, C)
    patches = patches.reshape(N * o * o, k * k * C)      # K axis lane-contiguous
    y = pallas_linear(patches, w_mat, b, relu=True)      # (N*o*o, Cout)
    return y.reshape(N, o, o, -1)


def state_encoder(images_nhwc, pp):
    """images_nhwc: (N, 52, 52, 3) float32 -> (N, d_model)"""
    x = conv2d_relu_nhwc(images_nhwc, pp['conv1_w'], pp['conv1_b'], 8, 4)  # (N,12,12,32)
    x = conv2d_relu_nhwc(x, pp['conv2_w'], pp['conv2_b'], 4, 2)            # (N,5,5,64)
    x = conv2d_relu_nhwc(x, pp['conv3_w'], pp['conv3_b'], 3, 1)            # (N,3,3,64)
    x = x.reshape(x.shape[0], -1)          # NHWC flatten; fc rows pre-permuted to match
    return pallas_linear(x, pp['fc_w'], pp['fc_b'], relu=True)


# ----------------------------------------------------------------------------
# Parameters: synthetic init in PyTorch layout, then one-time prep (fusion,
# layout permutation, scale folding, padding, bf16 cast of matmul weights).
# ----------------------------------------------------------------------------

def init_params(key, *, d_model, n_heads, d_head, d_mlp, n_layers, n_ctx,
                n_actions, max_timestep, obs_dim):
    keys = iter(jax.random.split(key, 128))

    def nrm(shape, std=0.02):
        return (std * jax.random.normal(next(keys), shape)).astype(jnp.float32)

    p = {}
    p['conv1_w'] = nrm((32, 3, 8, 8));   p['conv1_b'] = nrm((32,))
    p['conv2_w'] = nrm((64, 32, 4, 4));  p['conv2_b'] = nrm((64,))
    p['conv3_w'] = nrm((64, 64, 3, 3));  p['conv3_b'] = nrm((64,))
    p['fc_w'] = nrm((576, d_model));     p['fc_b'] = nrm((d_model,))
    p['time_emb'] = nrm((max_timestep + 1, d_model))
    p['action_emb'] = nrm((n_actions + 1, d_model), std=1.0 / ((n_actions + 1) * d_model))
    p['reward_w'] = nrm((1, d_model), std=1.0 / d_model)
    p['W_pos'] = nrm((n_ctx, d_model))
    p['blocks'] = []
    for _ in range(n_layers):
        blk = dict(
            ln1_w=jnp.ones((1, d_model), jnp.float32), ln1_b=jnp.zeros((1, d_model), jnp.float32),
            wq=nrm((n_heads, d_model, d_head)), bq=jnp.zeros((n_heads, d_head), jnp.float32),
            wk=nrm((n_heads, d_model, d_head)), bk=jnp.zeros((n_heads, d_head), jnp.float32),
            wv=nrm((n_heads, d_model, d_head)), bv=jnp.zeros((n_heads, d_head), jnp.float32),
            wo=nrm((n_heads, d_head, d_model)), bo=jnp.zeros((1, d_model), jnp.float32),
            ln2_w=jnp.ones((1, d_model), jnp.float32), ln2_b=jnp.zeros((1, d_model), jnp.float32),
            win=nrm((d_model, d_mlp)), bin=jnp.zeros((1, d_mlp), jnp.float32),
            wout=nrm((d_mlp, d_model)), bout=jnp.zeros((1, d_model), jnp.float32),
        )
        p['blocks'].append(blk)
    p['ln_f_w'] = jnp.ones((1, d_model), jnp.float32)
    p['ln_f_b'] = jnp.zeros((1, d_model), jnp.float32)
    p['pred_act_w'] = nrm((d_model, n_actions));  p['pred_act_b'] = nrm((n_actions,))
    p['pred_rew_w'] = nrm((d_model, 1));          p['pred_rew_b'] = nrm((1,))
    p['pred_state_w'] = nrm((d_model, obs_dim));  p['pred_state_b'] = nrm((obs_dim,))
    return p


def _pad_cols(w, b, pad_to=128):
    k, n = w.shape
    n_pad = ((n + pad_to - 1) // pad_to) * pad_to
    w_p = jnp.zeros((k, n_pad), jnp.float32).at[:, :n].set(w)
    b_p = jnp.zeros((1, n_pad), jnp.float32).at[0, :n].set(b)
    return w_p, b_p


def prepare_params(p, *, d_model, d_head):
    D = d_model
    scale = 1.0 / math.sqrt(d_head)
    pp = {}

    # CNN: conv weights -> im2col matrices with (ky, kx, c) row order, bf16.
    def conv_mat(w):
        co, ci, k, _ = w.shape
        return w.transpose(2, 3, 1, 0).reshape(k * k * ci, co).astype(jnp.bfloat16)
    pp['conv1_w'] = conv_mat(p['conv1_w']); pp['conv1_b'] = p['conv1_b']
    pp['conv2_w'] = conv_mat(p['conv2_w']); pp['conv2_b'] = p['conv2_b']
    pp['conv3_w'] = conv_mat(p['conv3_w']); pp['conv3_b'] = p['conv3_b']
    # fc rows: permute from NCHW-flatten (c,y,x) order to NHWC-flatten (y,x,c) order.
    fc = p['fc_w'].reshape(64, 3, 3, D).transpose(1, 2, 0, 3).reshape(576, D)
    pp['fc_w'] = fc.astype(jnp.bfloat16); pp['fc_b'] = p['fc_b']

    # Embedding tables / pos embed stay f32 (gathers + adds are plain JAX glue).
    pp['time_emb'] = p['time_emb']; pp['action_emb'] = p['action_emb']
    pp['reward_w'] = p['reward_w']; pp['W_pos'] = p['W_pos']

    # Transformer: stack per-layer weights with leading layer axis; fuse QKV;
    # fold 1/sqrt(d_head) into W_Q/b_Q; keep W_O head-separated (L,H,dh,D).
    blocks = p['blocks']

    def st(fn, dtype=jnp.float32):
        return jnp.stack([fn(b) for b in blocks], axis=0).astype(dtype)

    pp['ln'] = st(lambda b: jnp.concatenate(
        [b['ln1_w'], b['ln1_b'], b['ln2_w'], b['ln2_b']], axis=0))            # (L, 4, D)

    def qkv_w(b):
        return jnp.concatenate([(b['wq'] * scale).transpose(1, 0, 2).reshape(D, -1),
                                b['wk'].transpose(1, 0, 2).reshape(D, -1),
                                b['wv'].transpose(1, 0, 2).reshape(D, -1)], axis=1)
    pp['w_qkv'] = st(qkv_w, jnp.bfloat16)                                     # (L, D, 3D)
    pp['b_qkv'] = st(lambda b: jnp.concatenate(
        [(b['bq'] * scale).reshape(1, -1), b['bk'].reshape(1, -1),
         b['bv'].reshape(1, -1)], axis=1))                                    # (L, 1, 3D)
    pp['w_o'] = st(lambda b: b['wo'], jnp.bfloat16)                           # (L, H, dh, D)
    pp['w_in'] = st(lambda b: b['win'], jnp.bfloat16)                         # (L, D, d_mlp)
    pp['b_in'] = st(lambda b: b['bin'])                                       # (L, 1, d_mlp)
    pp['w_out'] = st(lambda b: b['wout'], jnp.bfloat16)                       # (L, d_mlp, D)
    pp['b_od'] = st(lambda b: jnp.concatenate([b['bo'], b['bout']], axis=0))  # (L, 2, D)
    pp['ln_f'] = jnp.concatenate([p['ln_f_w'], p['ln_f_b']], axis=0)          # (2, D)

    # Prediction heads: [reward | state] share the action-token stream.
    # Pad output widths to 128-lane multiples for unmasked lane-dense stores.
    w_act, b_act = _pad_cols(p['pred_act_w'], p['pred_act_b'])
    pp['w_act'] = w_act.astype(jnp.bfloat16); pp['b_act'] = b_act
    rs_w = jnp.concatenate([p['pred_rew_w'], p['pred_state_w']], axis=1)
    rs_b = jnp.concatenate([p['pred_rew_b'], p['pred_state_b']], axis=0)
    w_rs, b_rs = _pad_cols(rs_w, rs_b)
    pp['w_rs'] = w_rs.astype(jnp.bfloat16); pp['b_rs'] = b_rs
    return pp


# ----------------------------------------------------------------------------
# Decision Transformer forward
# ----------------------------------------------------------------------------

def decision_transformer_forward(pp, states, actions, rtgs, timesteps, *,
                                 d_model, n_heads, n_actions, obs_dim):
    B, S = states.shape[:2]
    D = d_model
    T = 3 * S

    # state embeddings (CNN), NHWC throughout
    imgs = states.reshape(B * S, *states.shape[2:]).astype(jnp.float32)
    s_emb = state_encoder(imgs, pp).reshape(B, S, D)

    # embedding-table gathers and rtg broadcast (plain JAX glue, fused by XLA)
    a_emb = pp['action_emb'][actions[..., 0]]                    # (B, S, D)
    t_emb = pp['time_emb'][timesteps[..., 0]]                    # (B, S, D)
    r_emb = rtgs.astype(jnp.float32) * pp['reward_w'][0]         # (B, S, D)

    # interleave per timestep: [reward, state, action] == (::3, 1::3, 2::3)
    tokens = jnp.stack([r_emb + t_emb, s_emb + t_emb, a_emb + t_emb], axis=2)
    tokens = tokens.reshape(B, T, D) + pp['W_pos'][:T][None, :, :]

    # precomputed causal mask (1 = attendable) and one-hot row selector that
    # gathers [state-token rows | action-token rows] inside the fused kernel
    pos = jnp.arange(T)
    mask = (pos[:, None] >= pos[None, :]).astype(jnp.float32)    # (T, T)
    sidx = jnp.arange(S)
    sel = jnp.zeros((2 * S, T), jnp.float32)
    sel = sel.at[sidx, 3 * sidx + 1].set(1.0)                    # state positions
    sel = sel.at[S + sidx, 3 * sidx + 2].set(1.0)                # action positions

    # fused transformer stack + final LN + prediction heads (one pallas_call)
    act_pad, rs_pad = dt_transformer_and_heads(
        tokens, mask, sel, pp, n_heads=n_heads, d_head=D // n_heads, seq_len=S)

    action_preds = act_pad[:, :, :n_actions]
    reward_preds = rs_pad[:, :, 0:1]
    state_preds = rs_pad[:, :, 1:1 + obs_dim]
    return state_preds, action_preds, reward_preds


# ----------------------------------------------------------------------------

if __name__ == "__main__":
    # Small config consistent with the module: d_model=64, 2 heads, 2 layers,
    # CNN state encoder requires 52x52x3 images (flatten -> 576).
    B, S = 2, 2
    H = W = 52
    C = 3
    d_model, n_heads, d_mlp, n_layers = 64, 2, 128, 2
    n_actions = 4
    max_timestep = 2048
    n_ctx = 3 * S                       # 3 tokens per timestep
    obs_dim = H * W * C

    raw = init_params(
        jax.random.PRNGKey(1),
        d_model=d_model, n_heads=n_heads, d_head=d_model // n_heads,
        d_mlp=d_mlp, n_layers=n_layers, n_ctx=n_ctx,
        n_actions=n_actions, max_timestep=max_timestep, obs_dim=obs_dim)
    params = prepare_params(raw, d_model=d_model, d_head=d_model // n_heads)

    key = jax.random.PRNGKey(0)
    k1, k2, k3, k4 = jax.random.split(key, 4)
    states = jax.random.uniform(k1, (B, S, H, W, C), dtype=jnp.float32)
    actions = jax.random.randint(k2, (B, S, 1), 0, n_actions)
    rtgs = jax.random.uniform(k3, (B, S, 1), dtype=jnp.float32)
    timesteps = jax.random.randint(k4, (B, S, 1), 0, 16)

    fwd = jax.jit(functools.partial(decision_transformer_forward,
                                    d_model=d_model, n_heads=n_heads,
                                    n_actions=n_actions, obs_dim=obs_dim))
    state_preds, action_preds, reward_preds = fwd(params, states, actions, rtgs, timesteps)
    jax.block_until_ready((state_preds, action_preds, reward_preds))

    assert state_preds.shape == (B, S, obs_dim)
    assert action_preds.shape == (B, S, n_actions)
    assert reward_preds.shape == (B, S, 1)
    print("KERNEL_OK")
</pallas_src>

<mosaic_0001>
module attributes {stable_mosaic.version = 11 : i64} {
  func.func @_linear_kernel(%arg0: i32, %arg1: memref<512x192xf32, #tpu.memory_space<vmem>>, %arg2: memref<192x32xbf16, #tpu.memory_space<vmem>>, %arg3: memref<1x32xf32, #tpu.memory_space<vmem>>, %arg4: memref<512x32xf32, #tpu.memory_space<vmem>>) attributes {dimension_semantics = [#tpu.dimension_semantics<parallel>], iteration_bounds = array<i64: 2>, scalar_prefetch = 0 : i64, scratch_operands = 0 : i64, tpu.core_type = #tpu.core_type<tc>, window_params = [{transform_indices = @transform_0, window_bounds = array<i64: 512, 192>}, {pipeline_mode = #tpu.pipeline_mode<synchronous>, transform_indices = @transform_1, window_bounds = array<i64: 192, 32>}, {pipeline_mode = #tpu.pipeline_mode<synchronous>, transform_indices = @transform_2, window_bounds = array<i64: 1, 32>}, {transform_indices = @transform_3, window_bounds = array<i64: 512, 32>}]} {
    %c0 = arith.constant 0 : index
    %c0_0 = arith.constant 0 : index
    %0 = vector.load %arg1[%c0, %c0_0] : memref<512x192xf32, #tpu.memory_space<vmem>>, vector<512x192xf32>
    %1 = arith.truncf %0 : vector<512x192xf32> to vector<512x192xbf16>
    %c0_1 = arith.constant 0 : index
    %c0_2 = arith.constant 0 : index
    %2 = vector.load %arg2[%c0_1, %c0_2] : memref<192x32xbf16, #tpu.memory_space<vmem>>, vector<192x32xbf16>
    %cst = arith.constant dense<0.000000e+00> : vector<512x32xf32>
    %3 = tpu.matmul %1, %2, %cst {dimension_numbers = #tpu.dot_dimension_numbers<[1], [0], [0], [1], [0, 0, 1, 1], [], []>} : vector<512x192xbf16>, vector<192x32xbf16>, vector<512x32xf32> -> vector<512x32xf32>
    %c0_3 = arith.constant 0 : index
    %c0_4 = arith.constant 0 : index
    %4 = vector.load %arg3[%c0_3, %c0_4] : memref<1x32xf32, #tpu.memory_space<vmem>>, vector<1x32xf32>
    %5 = vector.broadcast %4 : vector<1x32xf32> to vector<512x32xf32>
    %6 = arith.addf %3, %5 : vector<512x32xf32>
    %cst_5 = arith.constant 0.000000e+00 : f32
    %7 = vector.broadcast %cst_5 : f32 to vector<512x32xf32>
    %8 = arith.maximumf %6, %7 : vector<512x32xf32>
    %c0_6 = arith.constant 0 : index
    %c0_7 = arith.constant 0 : index
    %9 = vector.load %arg4[%c0_6, %c0_7] : memref<512x32xf32, #tpu.memory_space<vmem>>, vector<512x32xf32>
    tpu.vector_store %arg4[%c0_6, %c0_7], %8 {strides = array<i32>} : memref<512x32xf32, #tpu.memory_space<vmem>>, vector<512x32xf32>,
    return
  }
  func.func @transform_0(%arg0: i32) -> (i32, i32) {
    %c0_i32 = arith.constant 0 : i32
    %c0_i32_0 = arith.constant 0 : i32
    return %arg0, %c0_i32 : i32, i32
  }
  func.func @transform_1(%arg0: i32) -> (i32, i32) {
    %c0_i32 = arith.constant 0 : i32
    %c0_i32_0 = arith.constant 0 : i32
    %c0_i32_1 = arith.constant 0 : i32
    return %c0_i32, %c0_i32_0 : i32, i32
  }
  func.func @transform_2(%arg0: i32) -> (i32, i32) {
    %c0_i32 = arith.constant 0 : i32
    %c0_i32_0 = arith.constant 0 : i32
    %c0_i32_1 = arith.constant 0 : i32
    return %c0_i32, %c0_i32_0 : i32, i32
  }
  func.func @transform_3(%arg0: i32) -> (i32, i32) {
    %c0_i32 = arith.constant 0 : i32
    %c0_i32_0 = arith.constant 0 : i32
    return %arg0, %c0_i32 : i32, i32
  }
}

module attributes {stable_mosaic.version = 11 : i64} {
  func.func @_linear_kernel(%arg0: i32, %arg1: memref<100x512xf32, #tpu.memory_space<vmem>>, %arg2: memref<512x64xbf16, #tpu.memory_space<vmem>>, %arg3: memref<1x64xf32, #tpu.memory_space<vmem>>, %arg4: memref<100x64xf32, #tpu.memory_space<vmem>>) attributes {dimension_semantics = [#tpu.dimension_semantics<parallel>], iteration_bounds = array<i64: 1>, scalar_prefetch = 0 : i64, scratch_operands = 0 : i64, tpu.core_type = #tpu.core_type<tc>, window_params = [{transform_indices = @transform_0, window_bounds = array<i64: 100, 512>}, {pipeline_mode = #tpu.pipeline_mode<synchronous>, transform_indices = @transform_1, window_bounds = array<i64: 512, 64>}, {pipeline_mode = #tpu.pipeline_mode<synchronous>, transform_indices = @transform_2, window_bounds = array<i64: 1, 64>}, {transform_indices = @transform_3, window_bounds = array<i64: 100, 64>}]} {
    %c0 = arith.constant 0 : index
    %c0_0 = arith.constant 0 : index
    %0 = vector.load %arg1[%c0, %c0_0] : memref<100x512xf32, #tpu.memory_space<vmem>>, vector<100x512xf32>
    %1 = arith.truncf %0 : vector<100x512xf32> to vector<100x512xbf16>
    %c0_1 = arith.constant 0 : index
    %c0_2 = arith.constant 0 : index
    %2 = vector.load %arg2[%c0_1, %c0_2] : memref<512x64xbf16, #tpu.memory_space<vmem>>, vector<512x64xbf16>
    %cst = arith.constant dense<0.000000e+00> : vector<100x64xf32>
    %3 = tpu.matmul %1, %2, %cst {dimension_numbers = #tpu.dot_dimension_numbers<[1], [0], [0], [1], [0, 0, 1, 1], [], []>} : vector<100x512xbf16>, vector<512x64xbf16>, vector<100x64xf32> -> vector<100x64xf32>
    %c0_3 = arith.constant 0 : index
    %c0_4 = arith.constant 0 : index
    %4 = vector.load %arg3[%c0_3, %c0_4] : memref<1x64xf32, #tpu.memory_space<vmem>>, vector<1x64xf32>
    %5 = vector.broadcast %4 : vector<1x64xf32> to vector<100x64xf32>
    %6 = arith.addf %3, %5 : vector<100x64xf32>
    %cst_5 = arith.constant 0.000000e+00 : f32
    %7 = vector.broadcast %cst_5 : f32 to vector<100x64xf32>
    %8 = arith.maximumf %6, %7 : vector<100x64xf32>
    %c0_6 = arith.constant 0 : index
    %c0_7 = arith.constant 0 : index
    %9 = vector.load %arg4[%c0_6, %c0_7] : memref<100x64xf32, #tpu.memory_space<vmem>>, vector<100x64xf32>
    tpu.vector_store %arg4[%c0_6, %c0_7], %8 {strides = array<i32>} : memref<100x64xf32, #tpu.memory_space<vmem>>, vector<100x64xf32>,
    return
  }
  func.func @transform_0(%arg0: i32) -> (i32, i32) {
    %c0_i32 = arith.constant 0 : i32
    %c0_i32_0 = arith.constant 0 : i32
    return %arg0, %c0_i32 : i32, i32
  }
  func.func @transform_1(%arg0: i32) -> (i32, i32) {
    %c0_i32 = arith.constant 0 : i32
    %c0_i32_0 = arith.constant 0 : i32
    %c0_i32_1 = arith.constant 0 : i32
    return %c0_i32, %c0_i32_0 : i32, i32
  }
  func.func @transform_2(%arg0: i32) -> (i32, i32) {
    %c0_i32 = arith.constant 0 : i32
    %c0_i32_0 = arith.constant 0 : i32
    %c0_i32_1 = arith.constant 0 : i32
    return %c0_i32, %c0_i32_0 : i32, i32
  }
  func.func @transform_3(%arg0: i32) -> (i32, i32) {
    %c0_i32 = arith.constant 0 : i32
    %c0_i32_0 = arith.constant 0 : i32
    return %arg0, %c0_i32 : i32, i32
  }
}

module attributes {stable_mosaic.version = 11 : i64} {
  func.func @_linear_kernel(%arg0: i32, %arg1: memref<4x576xf32, #tpu.memory_space<vmem>>, %arg2: memref<576x64xbf16, #tpu.memory_space<vmem>>, %arg3: memref<1x64xf32, #tpu.memory_space<vmem>>, %arg4: memref<4x64xf32, #tpu.memory_space<vmem>>) attributes {dimension_semantics = [#tpu.dimension_semantics<parallel>], iteration_bounds = array<i64: 1>, scalar_prefetch = 0 : i64, scratch_operands = 0 : i64, tpu.core_type = #tpu.core_type<tc>, window_params = [{transform_indices = @transform_0, window_bounds = array<i64: 4, 576>}, {pipeline_mode = #tpu.pipeline_mode<synchronous>, transform_indices = @transform_1, window_bounds = array<i64: 576, 64>}, {pipeline_mode = #tpu.pipeline_mode<synchronous>, transform_indices = @transform_2, window_bounds = array<i64: 1, 64>}, {transform_indices = @transform_3, window_bounds = array<i64: 4, 64>}]} {
    %c0 = arith.constant 0 : index
    %c0_0 = arith.constant 0 : index
    %0 = vector.load %arg1[%c0, %c0_0] : memref<4x576xf32, #tpu.memory_space<vmem>>, vector<4x576xf32>
    %1 = arith.truncf %0 : vector<4x576xf32> to vector<4x576xbf16>
    %c0_1 = arith.constant 0 : index
    %c0_2 = arith.constant 0 : index
    %2 = vector.load %arg2[%c0_1, %c0_2] : memref<576x64xbf16, #tpu.memory_space<vmem>>, vector<576x64xbf16>
    %cst = arith.constant dense<0.000000e+00> : vector<4x64xf32>
    %3 = tpu.matmul %1, %2, %cst {dimension_numbers = #tpu.dot_dimension_numbers<[1], [0], [0], [1], [0, 0, 1, 1], [], []>} : vector<4x576xbf16>, vector<576x64xbf16>, vector<4x64xf32> -> vector<4x64xf32>
    %c0_3 = arith.constant 0 : index
    %c0_4 = arith.constant 0 : index
    %4 = vector.load %arg3[%c0_3, %c0_4] : memref<1x64xf32, #tpu.memory_space<vmem>>, vector<1x64xf32>
    %5 = vector.broadcast %4 : vector<1x64xf32> to vector<4x64xf32>
    %6 = arith.addf %3, %5 : vector<4x64xf32>
    %cst_5 = arith.constant 0.000000e+00 : f32
    %7 = vector.broadcast %cst_5 : f32 to vector<4x64xf32>
    %8 = arith.maximumf %6, %7 : vector<4x64xf32>
    %c0_6 = arith.constant 0 : index
    %c0_7 = arith.constant 0 : index
    %9 = vector.load %arg4[%c0_6, %c0_7] : memref<4x64xf32, #tpu.memory_space<vmem>>, vector<4x64xf32>
    tpu.vector_store %arg4[%c0_6, %c0_7], %8 {strides = array<i32>} : memref<4x64xf32, #tpu.memory_space<vmem>>, vector<4x64xf32>,
    return
  }
  func.func @transform_0(%arg0: i32) -> (i32, i32) {
    %c0_i32 = arith.constant 0 : i32
    %c0_i32_0 = arith.constant 0 : i32
    return %arg0, %c0_i32 : i32, i32
  }
  func.func @transform_1(%arg0: i32) -> (i32, i32) {
    %c0_i32 = arith.constant 0 : i32
    %c0_i32_0 = arith.constant 0 : i32
    %c0_i32_1 = arith.constant 0 : i32
    return %c0_i32, %c0_i32_0 : i32, i32
  }
  func.func @transform_2(%arg0: i32) -> (i32, i32) {
    %c0_i32 = arith.constant 0 : i32
    %c0_i32_0 = arith.constant 0 : i32
    %c0_i32_1 = arith.constant 0 : i32
    return %c0_i32, %c0_i32_0 : i32, i32
  }
  func.func @transform_3(%arg0: i32) -> (i32, i32) {
    %c0_i32 = arith.constant 0 : i32
    %c0_i32_0 = arith.constant 0 : i32
    return %arg0, %c0_i32 : i32, i32
  }
}

module attributes {stable_mosaic.version = 11 : i64} {
  func.func @_linear_kernel(%arg0: i32, %arg1: memref<36x576xf32, #tpu.memory_space<vmem>>, %arg2: memref<576x64xbf16, #tpu.memory_space<vmem>>, %arg3: memref<1x64xf32, #tpu.memory_space<vmem>>, %arg4: memref<36x64xf32, #tpu.memory_space<vmem>>) attributes {dimension_semantics = [#tpu.dimension_semantics<parallel>], iteration_bounds = array<i64: 1>, scalar_prefetch = 0 : i64, scratch_operands = 0 : i64, tpu.core_type = #tpu.core_type<tc>, window_params = [{transform_indices = @transform_0, window_bounds = array<i64: 36, 576>}, {pipeline_mode = #tpu.pipeline_mode<synchronous>, transform_indices = @transform_1, window_bounds = array<i64: 576, 64>}, {pipeline_mode = #tpu.pipeline_mode<synchronous>, transform_indices = @transform_2, window_bounds = array<i64: 1, 64>}, {transform_indices = @transform_3, window_bounds = array<i64: 36, 64>}]} {
    %c0 = arith.constant 0 : index
    %c0_0 = arith.constant 0 : index
    %0 = vector.load %arg1[%c0, %c0_0] : memref<36x576xf32, #tpu.memory_space<vmem>>, vector<36x576xf32>
    %1 = arith.truncf %0 : vector<36x576xf32> to vector<36x576xbf16>
    %c0_1 = arith.constant 0 : index
    %c0_2 = arith.constant 0 : index
    %2 = vector.load %arg2[%c0_1, %c0_2] : memref<576x64xbf16, #tpu.memory_space<vmem>>, vector<576x64xbf16>
    %cst = arith.constant dense<0.000000e+00> : vector<36x64xf32>
    %3 = tpu.matmul %1, %2, %cst {dimension_numbers = #tpu.dot_dimension_numbers<[1], [0], [0], [1], [0, 0, 1, 1], [], []>} : vector<36x576xbf16>, vector<576x64xbf16>, vector<36x64xf32> -> vector<36x64xf32>
    %c0_3 = arith.constant 0 : index
    %c0_4 = arith.constant 0 : index
    %4 = vector.load %arg3[%c0_3, %c0_4] : memref<1x64xf32, #tpu.memory_space<vmem>>, vector<1x64xf32>
    %5 = vector.broadcast %4 : vector<1x64xf32> to vector<36x64xf32>
    %6 = arith.addf %3, %5 : vector<36x64xf32>
    %cst_5 = arith.constant 0.000000e+00 : f32
    %7 = vector.broadcast %cst_5 : f32 to vector<36x64xf32>
    %8 = arith.maximumf %6, %7 : vector<36x64xf32>
    %c0_6 = arith.constant 0 : index
    %c0_7 = arith.constant 0 : index
    %9 = vector.load %arg4[%c0_6, %c0_7] : memref<36x64xf32, #tpu.memory_space<vmem>>, vector<36x64xf32>
    tpu.vector_store %arg4[%c0_6, %c0_7], %8 {strides = array<i32>} : memref<36x64xf32, #tpu.memory_space<vmem>>, vector<36x64xf32>,
    return
  }
  func.func @transform_0(%arg0: i32) -> (i32, i32) {
    %c0_i32 = arith.constant 0 : i32
    %c0_i32_0 = arith.constant 0 : i32
    return %arg0, %c0_i32 : i32, i32
  }
  func.func @transform_1(%arg0: i32) -> (i32, i32) {
    %c0_i32 = arith.constant 0 : i32
    %c0_i32_0 = arith.constant 0 : i32
    %c0_i32_1 = arith.constant 0 : i32
    return %c0_i32, %c0_i32_0 : i32, i32
  }
  func.func @transform_2(%arg0: i32) -> (i32, i32) {
    %c0_i32 = arith.constant 0 : i32
    %c0_i32_0 = arith.constant 0 : i32
    %c0_i32_1 = arith.constant 0 : i32
    return %c0_i32, %c0_i32_0 : i32, i32
  }
  func.func @transform_3(%arg0: i32) -> (i32, i32) {
    %c0_i32 = arith.constant 0 : i32
    %c0_i32_0 = arith.constant 0 : i32
    return %arg0, %c0_i32 : i32, i32
  }
}

module attributes {stable_mosaic.version = 11 : i64} {
  func.func @_dt_stack_kernel(%arg0: i32, %arg1: i32, %arg2: memref<1x6x64xf32, #tpu.memory_space<vmem>>, %arg3: memref<6x6xf32, #tpu.memory_space<vmem>>, %arg4: memref<4x6xf32, #tpu.memory_space<vmem>>, %arg5: memref<1x4x64xf32, #tpu.memory_space<vmem>>, %arg6: memref<1x64x192xbf16, #tpu.memory_space<vmem>>, %arg7: memref<1x1x192xf32, #tpu.memory_space<vmem>>, %arg8: memref<1x2x32x64xbf16, #tpu.memory_space<vmem>>, %arg9: memref<1x64x128xbf16, #tpu.memory_space<vmem>>, %arg10: memref<1x1x128xf32, #tpu.memory_space<vmem>>, %arg11: memref<1x128x64xbf16, #tpu.memory_space<vmem>>, %arg12: memref<1x2x64xf32, #tpu.memory_space<vmem>>, %arg13: memref<2x64xf32, #tpu.memory_space<vmem>>, %arg14: memref<64x128xbf16, #tpu.memory_space<vmem>>, %arg15: memref<1x128xf32, #tpu.memory_space<vmem>>, %arg16: memref<64x8192xbf16, #tpu.memory_space<vmem>>, %arg17: memref<1x8192xf32, #tpu.memory_space<vmem>>, %arg18: memref<1x2x128xf32, #tpu.memory_space<vmem>>, %arg19: memref<1x2x8192xf32, #tpu.memory_space<vmem>>, %arg20: memref<6x64xf32, #tpu.memory_space<vmem>>) attributes {dimension_semantics = [#tpu.dimension_semantics<parallel>, #tpu.dimension_semantics<arbitrary>], iteration_bounds = array<i64: 2, 2>, scalar_prefetch = 0 : i64, scratch_operands = 1 : i64, tpu.core_type = #tpu.core_type<tc>, window_params = [{transform_indices = @transform_0, window_bounds = array<i64: 1, 6, 64>}, {pipeline_mode = #tpu.pipeline_mode<synchronous>, transform_indices = @transform_1, window_bounds = array<i64: 6, 6>}, {pipeline_mode = #tpu.pipeline_mode<synchronous>, transform_indices = @transform_2, window_bounds = array<i64: 4, 6>}, {transform_indices = @transform_3, window_bounds = array<i64: 1, 4, 64>}, {transform_indices = @transform_4, window_bounds = array<i64: 1, 64, 192>}, {transform_indices = @transform_5, window_bounds = array<i64: 1, 1, 192>}, {transform_indices = @transform_6, window_bounds = array<i64: 1, 2, 32, 64>}, {transform_indices = @transform_7, window_bounds = array<i64: 1, 64, 128>}, {transform_indices = @transform_8, window_bounds = array<i64: 1, 1, 128>}, {transform_indices = @transform_9, window_bounds = array<i64: 1, 128, 64>}, {transform_indices = @transform_10, window_bounds = array<i64: 1, 2, 64>}, {pipeline_mode = #tpu.pipeline_mode<synchronous>, transform_indices = @transform_11, window_bounds = array<i64: 2, 64>}, {pipeline_mode = #tpu.pipeline_mode<synchronous>, transform_indices = @transform_12, window_bounds = array<i64: 64, 128>}, {pipeline_mode = #tpu.pipeline_mode<synchronous>, transform_indices = @transform_13, window_bounds = array<i64: 1, 128>}, {pipeline_mode = #tpu.pipeline_mode<synchronous>, transform_indices = @transform_14, window_bounds = array<i64: 64, 8192>}, {pipeline_mode = #tpu.pipeline_mode<synchronous>, transform_indices = @transform_15, window_bounds = array<i64: 1, 8192>}, {transform_indices = @transform_16, window_bounds = array<i64: 1, 2, 128>}, {transform_indices = @transform_17, window_bounds = array<i64: 1, 2, 8192>}]} {
    %c0_i32 = arith.constant 0 : i32
    %0 = arith.cmpi eq, %arg1, %c0_i32 : i32
    %1 = arith.extui %0 : i1 to i32
    %c0_i32_0 = arith.constant 0 : i32
    %2 = arith.cmpi ne, %1, %c0_i32_0 : i32
    scf.if %2 {
      %c0_53 = arith.constant 0 : index
      %c0_54 = arith.constant 0 : index
      %c0_55 = arith.constant 0 : index
      %131 = vector.load %arg2[%c0_53, %c0_54, %c0_55] : memref<1x6x64xf32, #tpu.memory_space<vmem>>, vector<1x6x64xf32>
      %132 = vector.shape_cast %131 : vector<1x6x64xf32> to vector<6x64xf32>
      %c0_56 = arith.constant 0 : index
      %c0_57 = arith.constant 0 : index
      %133 = vector.load %arg20[%c0_56, %c0_57] : memref<6x64xf32, #tpu.memory_space<vmem>>, vector<6x64xf32>
      tpu.vector_store %arg20[%c0_56, %c0_57], %132 {strides = array<i32>} : memref<6x64xf32, #tpu.memory_space<vmem>>, vector<6x64xf32>,
    } else {
    }
    %c0 = arith.constant 0 : index
    %c0_1 = arith.constant 0 : index
    %3 = vector.load %arg20[%c0, %c0_1] : memref<6x64xf32, #tpu.memory_space<vmem>>, vector<6x64xf32>
    %c0_2 = arith.constant 0 : index
    %c0_3 = arith.constant 0 : index
    %c0_4 = arith.constant 0 : index
    %4 = vector.load %arg5[%c0_2, %c0_3, %c0_4] : memref<1x4x64xf32, #tpu.memory_space<vmem>>, vector<1x4x64xf32>
    %5 = vector.shape_cast %4 : vector<1x4x64xf32> to vector<4x64xf32>
    %c0_5 = arith.constant 0 : index
    %c0_6 = arith.constant 0 : index
    %c0_7 = arith.constant 0 : index
    %6 = vector.load %arg12[%c0_5, %c0_6, %c0_7] : memref<1x2x64xf32, #tpu.memory_space<vmem>>, vector<1x2x64xf32>
    %7 = vector.shape_cast %6 : vector<1x2x64xf32> to vector<2x64xf32>
    %8 = vector.extract_strided_slice %5 {offsets = [0, 0], sizes = [1, 64], strides = [1, 1]} : vector<4x64xf32> to vector<1x64xf32>
    %9 = vector.extract_strided_slice %5 {offsets = [1, 0], sizes = [1, 64], strides = [1, 1]} : vector<4x64xf32> to vector<1x64xf32>
    %cst = arith.constant dense<0.000000e+00> : vector<6xf32>
    %10 = vector.multi_reduction <add>, %3, %cst [1] : vector<6x64xf32> to vector<6xf32>
    %11 = vector.shape_cast %10 : vector<6xf32> to vector<6x1xf32>
    %cst_8 = arith.constant 6.400000e+01 : f32
    %12 = vector.broadcast %cst_8 : f32 to vector<6x1xf32>
    %13 = arith.divf %11, %12 : vector<6x1xf32>
    %14 = vector.broadcast %13 : vector<6x1xf32> to vector<6x64xf32>
    %15 = arith.subf %3, %14 : vector<6x64xf32>
    %16 = arith.mulf %15, %15 : vector<6x64xf32>
    %cst_9 = arith.constant dense<0.000000e+00> : vector<6xf32>
    %17 = vector.multi_reduction <add>, %16, %cst_9 [1] : vector<6x64xf32> to vector<6xf32>
    %18 = vector.shape_cast %17 : vector<6xf32> to vector<6x1xf32>
    %cst_10 = arith.constant 6.400000e+01 : f32
    %19 = vector.broadcast %cst_10 : f32 to vector<6x1xf32>
    %20 = arith.divf %18, %19 : vector<6x1xf32>
    %cst_11 = arith.constant 9.99999974E-6 : f32
    %21 = vector.broadcast %cst_11 : f32 to vector<6x1xf32>
    %22 = arith.addf %20, %21 : vector<6x1xf32>
    %23 = math.rsqrt %22 : vector<6x1xf32>
    %24 = vector.broadcast %23 : vector<6x1xf32> to vector<6x64xf32>
    %25 = arith.mulf %15, %24 : vector<6x64xf32>
    %26 = vector.broadcast %8 : vector<1x64xf32> to vector<6x64xf32>
    %27 = arith.mulf %25, %26 : vector<6x64xf32>
    %28 = vector.broadcast %9 : vector<1x64xf32> to vector<6x64xf32>
    %29 = arith.addf %27, %28 : vector<6x64xf32>
    %30 = arith.truncf %29 : vector<6x64xf32> to vector<6x64xbf16>
    %c0_12 = arith.constant 0 : index
    %c0_13 = arith.constant 0 : index
    %c0_14 = arith.constant 0 : index
    %31 = vector.load %arg6[%c0_12, %c0_13, %c0_14] : memref<1x64x192xbf16, #tpu.memory_space<vmem>>, vector<1x64x192xbf16>
    %32 = vector.shape_cast %31 : vector<1x64x192xbf16> to vector<64x192xbf16>
    %cst_15 = arith.constant dense<0.000000e+00> : vector<6x192xf32>
    %33 = tpu.matmul %30, %32, %cst_15 {dimension_numbers = #tpu.dot_dimension_numbers<[1], [0], [0], [1], [0, 0, 1, 1], [], []>} : vector<6x64xbf16>, vector<64x192xbf16>, vector<6x192xf32> -> vector<6x192xf32>
    %c0_16 = arith.constant 0 : index
    %c0_17 = arith.constant 0 : index
    %c0_18 = arith.constant 0 : index
    %34 = vector.load %arg7[%c0_16, %c0_17, %c0_18] : memref<1x1x192xf32, #tpu.memory_space<vmem>>, vector<1x1x192xf32>
    %35 = vector.shape_cast %34 : vector<1x1x192xf32> to vector<1x192xf32>
    %36 = vector.broadcast %35 : vector<1x192xf32> to vector<6x192xf32>
    %37 = arith.addf %33, %36 : vector<6x192xf32>
    %38 = vector.extract_strided_slice %37 {offsets = [0, 0], sizes = [6, 32], strides = [1, 1]} : vector<6x192xf32> to vector<6x32xf32>
    %39 = vector.extract_strided_slice %37 {offsets = [0, 32], sizes = [6, 32], strides = [1, 1]} : vector<6x192xf32> to vector<6x32xf32>
    %40 = vector.shape_cast %38 : vector<6x32xf32> to vector<1x6x32xf32>
    %41 = vector.shape_cast %39 : vector<6x32xf32> to vector<1x6x32xf32>
    %42 = tpu.concatenate %40, %41 in 0 : vector<1x6x32xf32>, vector<1x6x32xf32> -> vector<2x6x32xf32>
    %43 = arith.truncf %42 : vector<2x6x32xf32> to vector<2x6x32xbf16>
    %44 = vector.extract_strided_slice %37 {offsets = [0, 64], sizes = [6, 32], strides = [1, 1]} : vector<6x192xf32> to vector<6x32xf32>
    %45 = vector.extract_strided_slice %37 {offsets = [0, 96], sizes = [6, 32], strides = [1, 1]} : vector<6x192xf32> to vector<6x32xf32>
    %46 = vector.shape_cast %44 : vector<6x32xf32> to vector<1x6x32xf32>
    %47 = vector.shape_cast %45 : vector<6x32xf32> to vector<1x6x32xf32>
    %48 = tpu.concatenate %46, %47 in 0 : vector<1x6x32xf32>, vector<1x6x32xf32> -> vector<2x6x32xf32>
    %49 = arith.truncf %48 : vector<2x6x32xf32> to vector<2x6x32xbf16>
    %50 = vector.extract_strided_slice %37 {offsets = [0, 128], sizes = [6, 32], strides = [1, 1]} : vector<6x192xf32> to vector<6x32xf32>
    %51 = vector.extract_strided_slice %37 {offsets = [0, 160], sizes = [6, 32], strides = [1, 1]} : vector<6x192xf32> to vector<6x32xf32>
    %52 = vector.shape_cast %50 : vector<6x32xf32> to vector<1x6x32xf32>
    %53 = vector.shape_cast %51 : vector<6x32xf32> to vector<1x6x32xf32>
    %54 = tpu.concatenate %52, %53 in 0 : vector<1x6x32xf32>, vector<1x6x32xf32> -> vector<2x6x32xf32>
    %55 = arith.truncf %54 : vector<2x6x32xf32> to vector<2x6x32xbf16>
    %cst_19 = arith.constant dense<0.000000e+00> : vector<2x6x6xf32>
    %56 = tpu.matmul %43, %49, %cst_19 {dimension_numbers = #tpu.dot_dimension_numbers<[2], [2], [1], [1], [0, 0, 0, 1, 1, 1], [0], [0]>} : vector<2x6x32xbf16>, vector<2x6x32xbf16>, vector<2x6x6xf32> -> vector<2x6x6xf32>
    %c0_20 = arith.constant 0 : index
    %c0_21 = arith.constant 0 : index
    %57 = vector.load %arg3[%c0_20, %c0_21] : memref<6x6xf32, #tpu.memory_space<vmem>>, vector<6x6xf32>
    %cst_22 = arith.constant 5.000000e-01 : f32
    %58 = vector.broadcast %cst_22 : f32 to vector<6x6xf32>
    %59 = arith.cmpf ogt, %57, %58 : vector<6x6xf32>
    %cst_23 = arith.constant -1.000000e+05 : f32
    %60 = vector.shape_cast %59 : vector<6x6xi1> to vector<1x6x6xi1>
    %61 = vector.broadcast %60 : vector<1x6x6xi1> to vector<2x6x6xi1>
    %62 = vector.broadcast %cst_23 : f32 to vector<2x6x6xf32>
    %63 = arith.select %61, %56, %62 : vector<2x6x6xi1>, vector<2x6x6xf32>
    %cst_24 = arith.constant dense<0xFF800000> : vector<2x6xf32>
    %64 = vector.multi_reduction <maximumf>, %63, %cst_24 [2] : vector<2x6x6xf32> to vector<2x6xf32>
    %65 = vector.shape_cast %64 : vector<2x6xf32> to vector<2x6x1xf32>
    %66 = vector.broadcast %65 : vector<2x6x1xf32> to vector<2x6x6xf32>
    %67 = arith.subf %63, %66 : vector<2x6x6xf32>
    %68 = math.exp %67 : vector<2x6x6xf32>
    %cst_25 = arith.constant dense<0.000000e+00> : vector<2x6xf32>
    %69 = vector.multi_reduction <add>, %68, %cst_25 [2] : vector<2x6x6xf32> to vector<2x6xf32>
    %70 = vector.shape_cast %69 : vector<2x6xf32> to vector<2x6x1xf32>
    %71 = tpu.reciprocal %70 {approx = true} : vector<2x6x1xf32> -> vector<2x6x1xf32>
    %72 = vector.broadcast %71 : vector<2x6x1xf32> to vector<2x6x6xf32>
    %73 = arith.mulf %68, %72 : vector<2x6x6xf32>
    %74 = arith.truncf %73 : vector<2x6x6xf32> to vector<2x6x6xbf16>
    %cst_26 = arith.constant dense<0.000000e+00> : vector<2x6x32xf32>
    %75 = tpu.matmul %74, %55, %cst_26 {dimension_numbers = #tpu.dot_dimension_numbers<[2], [1], [1], [2], [0, 0, 0, 1, 1, 2], [0], [0]>} : vector<2x6x6xbf16>, vector<2x6x32xbf16>, vector<2x6x32xf32> -> vector<2x6x32xf32>
    %76 = arith.truncf %75 : vector<2x6x32xf32> to vector<2x6x32xbf16>
    %c0_27 = arith.constant 0 : index
    %c0_28 = arith.constant 0 : index
    %c0_29 = arith.constant 0 : index
    %c0_30 = arith.constant 0 : index
    %77 = vector.load %arg8[%c0_27, %c0_28, %c0_29, %c0_30] : memref<1x2x32x64xbf16, #tpu.memory_space<vmem>>, vector<1x2x32x64xbf16>
    %78 = vector.shape_cast %77 : vector<1x2x32x64xbf16> to vector<2x32x64xbf16>
    %cst_31 = arith.constant dense<0.000000e+00> : vector<2x6x64xf32>
    %79 = tpu.matmul %76, %78, %cst_31 {dimension_numbers = #tpu.dot_dimension_numbers<[2], [1], [1], [2], [0, 0, 0, 1, 1, 2], [0], [0]>} : vector<2x6x32xbf16>, vector<2x32x64xbf16>, vector<2x6x64xf32> -> vector<2x6x64xf32>
    %cst_32 = arith.constant dense<0.000000e+00> : vector<6x64xf32>
    %80 = vector.multi_reduction <add>, %79, %cst_32 [0] : vector<2x6x64xf32> to vector<6x64xf32>
    %81 = arith.addf %3, %80 : vector<6x64xf32>
    %82 = vector.extract_strided_slice %7 {offsets = [0, 0], sizes = [1, 64], strides = [1, 1]} : vector<2x64xf32> to vector<1x64xf32>
    %83 = vector.broadcast %82 : vector<1x64xf32> to vector<6x64xf32>
    %84 = arith.addf %81, %83 : vector<6x64xf32>
    %85 = vector.extract_strided_slice %5 {offsets = [2, 0], sizes = [1, 64], strides = [1, 1]} : vector<4x64xf32> to vector<1x64xf32>
    %86 = vector.extract_strided_slice %5 {offsets = [3, 0], sizes = [1, 64], strides = [1, 1]} : vector<4x64xf32> to vector<1x64xf32>
    %cst_33 = arith.constant dense<0.000000e+00> : vector<6xf32>
    %87 = vector.multi_reduction <add>, %84, %cst_33 [1] : vector<6x64xf32> to vector<6xf32>
    %88 = vector.shape_cast %87 : vector<6xf32> to vector<6x1xf32>
    %cst_34 = arith.constant 6.400000e+01 : f32
    %89 = vector.broadcast %cst_34 : f32 to vector<6x1xf32>
    %90 = arith.divf %88, %89 : vector<6x1xf32>
    %91 = vector.broadcast %90 : vector<6x1xf32> to vector<6x64xf32>
    %92 = arith.subf %84, %91 : vector<6x64xf32>
    %93 = arith.mulf %92, %92 : vector<6x64xf32>
    %cst_35 = arith.constant dense<0.000000e+00> : vector<6xf32>
    %94 = vector.multi_reduction <add>, %93, %cst_35 [1] : vector<6x64xf32> to vector<6xf32>
    %95 = vector.shape_cast %94 : vector<6xf32> to vector<6x1xf32>
    %cst_36 = arith.constant 6.400000e+01 : f32
    %96 = vector.broadcast %cst_36 : f32 to vector<6x1xf32>
    %97 = arith.divf %95, %96 : vector<6x1xf32>
    %cst_37 = arith.constant 9.99999974E-6 : f32
    %98 = vector.broadcast %cst_37 : f32 to vector<6x1xf32>
    %99 = arith.addf %97, %98 : vector<6x1xf32>
    %100 = math.rsqrt %99 : vector<6x1xf32>
    %101 = vector.broadcast %100 : vector<6x1xf32> to vector<6x64xf32>
    %102 = arith.mulf %92, %101 : vector<6x64xf32>
    %103 = vector.broadcast %85 : vector<1x64xf32> to vector<6x64xf32>
    %104 = arith.mulf %102, %103 : vector<6x64xf32>
    %105 = vector.broadcast %86 : vector<1x64xf32> to vector<6x64xf32>
    %106 = arith.addf %104, %105 : vector<6x64xf32>
    %107 = arith.truncf %106 : vector<6x64xf32> to vector<6x64xbf16>
    %c0_38 = arith.constant 0 : index
    %c0_39 = arith.constant 0 : index
    %c0_40 = arith.constant 0 : index
    %108 = vector.load %arg9[%c0_38, %c0_39, %c0_40] : memref<1x64x128xbf16, #tpu.memory_space<vmem>>, vector<1x64x128xbf16>
    %109 = vector.shape_cast %108 : vector<1x64x128xbf16> to vector<64x128xbf16>
    %cst_41 = arith.constant dense<0.000000e+00> : vector<6x128xf32>
    %110 = tpu.matmul %107, %109, %cst_41 {dimension_numbers = #tpu.dot_dimension_numbers<[1], [0], [0], [1], [0, 0, 1, 1], [], []>} : vector<6x64xbf16>, vector<64x128xbf16>, vector<6x128xf32> -> vector<6x128xf32>
    %c0_42 = arith.constant 0 : index
    %c0_43 = arith.constant 0 : index
    %c0_44 = arith.constant 0 : index
    %111 = vector.load %arg10[%c0_42, %c0_43, %c0_44] : memref<1x1x128xf32, #tpu.memory_space<vmem>>, vector<1x1x128xf32>
    %112 = vector.shape_cast %111 : vector<1x1x128xf32> to vector<1x128xf32>
    %113 = vector.broadcast %112 : vector<1x128xf32> to vector<6x128xf32>
    %114 = arith.addf %110, %113 : vector<6x128xf32>
    %cst_45 = arith.constant 0.000000e+00 : f32
    %115 = vector.broadcast %cst_45 : f32 to vector<6x128xf32>
    %116 = arith.maximumf %114, %115 : vector<6x128xf32>
    %117 = arith.truncf %116 : vector<6x128xf32> to vector<6x128xbf16>
    %c0_46 = arith.constant 0 : index
    %c0_47 = arith.constant 0 : index
    %c0_48 = arith.constant 0 : index
    %118 = vector.load %arg11[%c0_46, %c0_47, %c0_48] : memref<1x128x64xbf16, #tpu.memory_space<vmem>>, vector<1x128x64xbf16>
    %119 = vector.shape_cast %118 : vector<1x128x64xbf16> to vector<128x64xbf16>
    %cst_49 = arith.constant dense<0.000000e+00> : vector<6x64xf32>
    %120 = tpu.matmul %117, %119, %cst_49 {dimension_numbers = #tpu.dot_dimension_numbers<[1], [0], [0], [1], [0, 0, 1, 1], [], []>} : vector<6x128xbf16>, vector<128x64xbf16>, vector<6x64xf32> -> vector<6x64xf32>
    %121 = arith.addf %84, %120 : vector<6x64xf32>
    %122 = vector.extract_strided_slice %7 {offsets = [1, 0], sizes = [1, 64], strides = [1, 1]} : vector<2x64xf32> to vector<1x64xf32>
    %123 = vector.broadcast %122 : vector<1x64xf32> to vector<6x64xf32>
    %124 = arith.addf %121, %123 : vector<6x64xf32>
    %c1_i32 = arith.constant 1 : i32
    %125 = arith.cmpi ne, %arg1, %c1_i32 : i32
    %126 = arith.extui %125 : i1 to i32
    %c0_i32_50 = arith.constant 0 : i32
    %127 = arith.cmpi ne, %126, %c0_i32_50 : i32
    scf.if %127 {
      %c0_53 = arith.constant 0 : index
      %c0_54 = arith.constant 0 : index
      %131 = vector.load %arg20[%c0_53, %c0_54] : memref<6x64xf32, #tpu.memory_space<vmem>>, vector<6x64xf32>
      tpu.vector_store %arg20[%c0_53, %c0_54], %124 {strides = array<i32>} : memref<6x64xf32, #tpu.memory_space<vmem>>, vector<6x64xf32>,
    } else {
    }
    %c1_i32_51 = arith.constant 1 : i32
    %128 = arith.cmpi eq, %arg1, %c1_i32_51 : i32
    %129 = arith.extui %128 : i1 to i32
    %c0_i32_52 = arith.constant 0 : i32
    %130 = arith.cmpi ne, %129, %c0_i32_52 : i32
    scf.if %130 {
      %c0_53 = arith.constant 0 : index
      %c0_54 = arith.constant 0 : index
      %131 = vector.load %arg4[%c0_53, %c0_54] : memref<4x6xf32, #tpu.memory_space<vmem>>, vector<4x6xf32>
      %cst_55 = arith.constant dense<0.000000e+00> : vector<4x64xf32>
      %132 = tpu.matmul %131, %124, %cst_55 {dimension_numbers = #tpu.dot_dimension_numbers<[1], [0], [0], [1], [0, 0, 1, 1], [], []>} : vector<4x6xf32>, vector<6x64xf32>, vector<4x64xf32> -> vector<4x64xf32>
      %c0_56 = arith.constant 0 : index
      %c0_57 = arith.constant 0 : index
      %133 = vector.load %arg13[%c0_56, %c0_57] : memref<2x64xf32, #tpu.memory_space<vmem>>, vector<2x64xf32>
      %134 = vector.extract_strided_slice %133 {offsets = [0, 0], sizes = [1, 64], strides = [1, 1]} : vector<2x64xf32> to vector<1x64xf32>
      %135 = vector.extract_strided_slice %133 {offsets = [1, 0], sizes = [1, 64], strides = [1, 1]} : vector<2x64xf32> to vector<1x64xf32>
      %cst_58 = arith.constant dense<0.000000e+00> : vector<4xf32>
      %136 = vector.multi_reduction <add>, %132, %cst_58 [1] : vector<4x64xf32> to vector<4xf32>
      %137 = vector.shape_cast %136 : vector<4xf32> to vector<4x1xf32>
      %cst_59 = arith.constant 6.400000e+01 : f32
      %138 = vector.broadcast %cst_59 : f32 to vector<4x1xf32>
      %139 = arith.divf %137, %138 : vector<4x1xf32>
      %140 = vector.broadcast %139 : vector<4x1xf32> to vector<4x64xf32>
      %141 = arith.subf %132, %140 : vector<4x64xf32>
      %142 = arith.mulf %141, %141 : vector<4x64xf32>
      %cst_60 = arith.constant dense<0.000000e+00> : vector<4xf32>
      %143 = vector.multi_reduction <add>, %142, %cst_60 [1] : vector<4x64xf32> to vector<4xf32>
      %144 = vector.shape_cast %143 : vector<4xf32> to vector<4x1xf32>
      %cst_61 = arith.constant 6.400000e+01 : f32
      %145 = vector.broadcast %cst_61 : f32 to vector<4x1xf32>
      %146 = arith.divf %144, %145 : vector<4x1xf32>
      %cst_62 = arith.constant 9.99999974E-6 : f32
      %147 = vector.broadcast %cst_62 : f32 to vector<4x1xf32>
      %148 = arith.addf %146, %147 : vector<4x1xf32>
      %149 = math.rsqrt %148 : vector<4x1xf32>
      %150 = vector.broadcast %149 : vector<4x1xf32> to vector<4x64xf32>
      %151 = arith.mulf %141, %150 : vector<4x64xf32>
      %152 = vector.broadcast %134 : vector<1x64xf32> to vector<4x64xf32>
      %153 = arith.mulf %151, %152 : vector<4x64xf32>
      %154 = vector.broadcast %135 : vector<1x64xf32> to vector<4x64xf32>
      %155 = arith.addf %153, %154 : vector<4x64xf32>
      %156 = vector.extract_strided_slice %155 {offsets = [0, 0], sizes = [2, 64], strides = [1, 1]} : vector<4x64xf32> to vector<2x64xf32>
      %157 = arith.truncf %156 : vector<2x64xf32> to vector<2x64xbf16>
      %158 = vector.extract_strided_slice %155 {offsets = [2, 0], sizes = [2, 64], strides = [1, 1]} : vector<4x64xf32> to vector<2x64xf32>
      %159 = arith.truncf %158 : vector<2x64xf32> to vector<2x64xbf16>
      %c0_63 = arith.constant 0 : index
      %c0_64 = arith.constant 0 : index
      %160 = vector.load %arg14[%c0_63, %c0_64] : memref<64x128xbf16, #tpu.memory_space<vmem>>, vector<64x128xbf16>
      %cst_65 = arith.constant dense<0.000000e+00> : vector<2x128xf32>
      %161 = tpu.matmul %157, %160, %cst_65 {dimension_numbers = #tpu.dot_dimension_numbers<[1], [0], [0], [1], [0, 0, 1, 1], [], []>} : vector<2x64xbf16>, vector<64x128xbf16>, vector<2x128xf32> -> vector<2x128xf32>
      %c0_66 = arith.constant 0 : index
      %c0_67 = arith.constant 0 : index
      %162 = vector.load %arg15[%c0_66, %c0_67] : memref<1x128xf32, #tpu.memory_space<vmem>>, vector<1x128xf32>
      %163 = vector.broadcast %162 : vector<1x128xf32> to vector<2x128xf32>
      %164 = arith.addf %161, %163 : vector<2x128xf32>
      %c0_68 = arith.constant 0 : index
      %c0_69 = arith.constant 0 : index
      %c0_70 = arith.constant 0 : index
      %165 = vector.load %arg18[%c0_68, %c0_69, %c0_70] : memref<1x2x128xf32, #tpu.memory_space<vmem>>, vector<1x2x128xf32>
      %166 = vector.shape_cast %165 : vector<1x2x128xf32> to vector<2x128xf32>
      %167 = vector.shape_cast %164 : vector<2x128xf32> to vector<1x2x128xf32>
      tpu.vector_store %arg18[%c0_68, %c0_69, %c0_70], %167 {strides = array<i32>} : memref<1x2x128xf32, #tpu.memory_space<vmem>>, vector<1x2x128xf32>,
      %c0_71 = arith.constant 0 : index
      %c0_72 = arith.constant 0 : index
      %168 = vector.load %arg16[%c0_71, %c0_72] : memref<64x8192xbf16, #tpu.memory_space<vmem>>, vector<64x8192xbf16>
      %cst_73 = arith.constant dense<0.000000e+00> : vector<2x8192xf32>
      %169 = tpu.matmul %159, %168, %cst_73 {dimension_numbers = #tpu.dot_dimension_numbers<[1], [0], [0], [1], [0, 0, 1, 1], [], []>} : vector<2x64xbf16>, vector<64x8192xbf16>, vector<2x8192xf32> -> vector<2x8192xf32>
      %c0_74 = arith.constant 0 : index
      %c0_75 = arith.constant 0 : index
      %170 = vector.load %arg17[%c0_74, %c0_75] : memref<1x8192xf32, #tpu.memory_space<vmem>>, vector<1x8192xf32>
      %171 = vector.broadcast %170 : vector<1x8192xf32> to vector<2x8192xf32>
      %172 = arith.addf %169, %171 : vector<2x8192xf32>
      %c0_76 = arith.constant 0 : index
      %c0_77 = arith.constant 0 : index
      %c0_78 = arith.constant 0 : index
      %173 = vector.load %arg19[%c0_76, %c0_77, %c0_78] : memref<1x2x8192xf32, #tpu.memory_space<vmem>>, vector<1x2x8192xf32>
      %174 = vector.shape_cast %173 : vector<1x2x8192xf32> to vector<2x8192xf32>
      %175 = vector.shape_cast %172 : vector<2x8192xf32> to vector<1x2x8192xf32>
      tpu.vector_store %arg19[%c0_76, %c0_77, %c0_78], %175 {strides = array<i32>} : memref<1x2x8192xf32, #tpu.memory_space<vmem>>, vector<1x2x8192xf32>,
    } else {
    }
    return
  }
  func.func @transform_0(%arg0: i32, %arg1: i32) -> (i32, i32, i32) {
    %c0_i32 = arith.constant 0 : i32
    %c0_i32_0 = arith.constant 0 : i32
    %c0_i32_1 = arith.constant 0 : i32
    return %arg0, %c0_i32, %c0_i32_0 : i32, i32, i32
  }
  func.func @transform_1(%arg0: i32, %arg1: i32) -> (i32, i32) {
    %c0_i32 = arith.constant 0 : i32
    %c0_i32_0 = arith.constant 0 : i32
    %c0_i32_1 = arith.constant 0 : i32
    return %c0_i32, %c0_i32_0 : i32, i32
  }
  func.func @transform_2(%arg0: i32, %arg1: i32) -> (i32, i32) {
    %c0_i32 = arith.constant 0 : i32
    %c0_i32_0 = arith.constant 0 : i32
    %c0_i32_1 = arith.constant 0 : i32
    return %c0_i32, %c0_i32_0 : i32, i32
  }
  func.func @transform_3(%arg0: i32, %arg1: i32) -> (i32, i32, i32) {
    %c0_i32 = arith.constant 0 : i32
    %c0_i32_0 = arith.constant 0 : i32
    %c0_i32_1 = arith.constant 0 : i32
    return %arg1, %c0_i32, %c0_i32_0 : i32, i32, i32
  }
  func.func @transform_4(%arg0: i32, %arg1: i32) -> (i32, i32, i32) {
    %c0_i32 = arith.constant 0 : i32
    %c0_i32_0 = arith.constant 0 : i32
    %c0_i32_1 = arith.constant 0 : i32
    return %arg1, %c0_i32, %c0_i32_0 : i32, i32, i32
  }
  func.func @transform_5(%arg0: i32, %arg1: i32) -> (i32, i32, i32) {
    %c0_i32 = arith.constant 0 : i32
    %c0_i32_0 = arith.constant 0 : i32
    %c0_i32_1 = arith.constant 0 : i32
    return %arg1, %c0_i32, %c0_i32_0 : i32, i32, i32
  }
  func.func @transform_6(%arg0: i32, %arg1: i32) -> (i32, i32, i32, i32) {
    %c0_i32 = arith.constant 0 : i32
    %c0_i32_0 = arith.constant 0 : i32
    %c0_i32_1 = arith.constant 0 : i32
    %c0_i32_2 = arith.constant 0 : i32
    return %arg1, %c0_i32, %c0_i32_0, %c0_i32_1 : i32, i32, i32, i32
  }
  func.func @transform_7(%arg0: i32, %arg1: i32) -> (i32, i32, i32) {
    %c0_i32 = arith.constant 0 : i32
    %c0_i32_0 = arith.constant 0 : i32
    %c0_i32_1 = arith.constant 0 : i32
    return %arg1, %c0_i32, %c0_i32_0 : i32, i32, i32
  }
  func.func @transform_8(%arg0: i32, %arg1: i32) -> (i32, i32, i32) {
    %c0_i32 = arith.constant 0 : i32
    %c0_i32_0 = arith.constant 0 : i32
    %c0_i32_1 = arith.constant 0 : i32
    return %arg1, %c0_i32, %c0_i32_0 : i32, i32, i32
  }
  func.func @transform_9(%arg0: i32, %arg1: i32) -> (i32, i32, i32) {
    %c0_i32 = arith.constant 0 : i32
    %c0_i32_0 = arith.constant 0 : i32
    %c0_i32_1 = arith.constant 0 : i32
    return %arg1, %c0_i32, %c0_i32_0 : i32, i32, i32
  }
  func.func @transform_10(%arg0: i32, %arg1: i32) -> (i32, i32, i32) {
    %c0_i32 = arith.constant 0 : i32
    %c0_i32_0 = arith.constant 0 : i32
    %c0_i32_1 = arith.constant 0 : i32
    return %arg1, %c0_i32, %c0_i32_0 : i32, i32, i32
  }
  func.func @transform_11(%arg0: i32, %arg1: i32) -> (i32, i32) {
    %c0_i32 = arith.constant 0 : i32
    %c0_i32_0 = arith.constant 0 : i32
    %c0_i32_1 = arith.constant 0 : i32
    return %c0_i32, %c0_i32_0 : i32, i32
  }
  func.func @transform_12(%arg0: i32, %arg1: i32) -> (i32, i32) {
    %c0_i32 = arith.constant 0 : i32
    %c0_i32_0 = arith.constant 0 : i32
    %c0_i32_1 = arith.constant 0 : i32
    return %c0_i32, %c0_i32_0 : i32, i32
  }
  func.func @transform_13(%arg0: i32, %arg1: i32) -> (i32, i32) {
    %c0_i32 = arith.constant 0 : i32
    %c0_i32_0 = arith.constant 0 : i32
    %c0_i32_1 = arith.constant 0 : i32
    return %c0_i32, %c0_i32_0 : i32, i32
  }
  func.func @transform_14(%arg0: i32, %arg1: i32) -> (i32, i32) {
    %c0_i32 = arith.constant 0 : i32
    %c0_i32_0 = arith.constant 0 : i32
    %c0_i32_1 = arith.constant 0 : i32
    return %c0_i32, %c0_i32_0 : i32, i32
  }
  func.func @transform_15(%arg0: i32, %arg1: i32) -> (i32, i32) {
    %c0_i32 = arith.constant 0 : i32
    %c0_i32_0 = arith.constant 0 : i32
    %c0_i32_1 = arith.constant 0 : i32
    return %c0_i32, %c0_i32_0 : i32, i32
  }
  func.func @transform_16(%arg0: i32, %arg1: i32) -> (i32, i32, i32) {
    %c0_i32 = arith.constant 0 : i32
    %c0_i32_0 = arith.constant 0 : i32
    %c0_i32_1 = arith.constant 0 : i32
    return %arg0, %c0_i32, %c0_i32_0 : i32, i32, i32
  }
  func.func @transform_17(%arg0: i32, %arg1: i32) -> (i32, i32, i32) {
    %c0_i32 = arith.constant 0 : i32
    %c0_i32_0 = arith.constant 0 : i32
    %c0_i32_1 = arith.constant 0 : i32
    return %arg0, %c0_i32, %c0_i32_0 : i32, i32, i32
  }
}

</mosaic_0001>

<bundles_post_ra>
// kernel: decision_transformer_forward.5
= control target key start
LH: loop header
LB: loop body
LE: loop exit
PB: predicated region body
PF: predicated region fallthrough
CT: control target
= control target key end

     0   :  { %s1786_s12 = smov 0   ;;  %s1788_s13 = smov 0   ;;  %s2451_s0 = inlined_call_operand.vmem [shape: f32[576,192], index: 0, kind: input, shape index: {}]   ;;  %s2452_s1 = inlined_call_operand.vmem [shape: bf16[192,32], index: 1, kind: input, shape index: {}]   ;;  %s2453_s2 = inlined_call_operand.vmem [shape: f32[1,32], index: 2, kind: input, shape index: {}]   ;;  %s2454_s3 = inlined_call_operand.vmem [shape: f32[576,32], index: 3, kind: output, shape index: {}]  }
   0x1   :  { %s1790_s14 = smov 0  }
   0x2 LB: > { %s1799_s15 = sadd.s32 4294967295, %s1731_s14   ;;  %s1801_s16 = sadd.s32 1, %s1731_s14   ;;  %s1731_s14 = sphi %s1790_s14, %s2463_s14   ;;  %s1727_s13 = sphi %s1788_s13, %s2462_s13   ;;  %s1723_s12 = sphi %s1786_s12, %s2461_s12  }
   0x3   : > { %s85_s17 = ssub.s32 %s1731_s14, %s1801_s16  ;;  %s88_s18 = sadd.s32 1, %s1727_s13 }
   0x4   : > { %p86_p0 = scmp.eq.s32.totalorder %s85_s17, 0  ;;  %p98_p1 = scmp.ne.s32.totalorder %s1727_s13, %s1723_s12 }
   0x5   : > { %p99_p2 = scmp.eq.s32.totalorder %s1799_s15, 1  ;;  %p1481_p3 = scmp.ge.s32.totalorder %s1731_s14, 1 }
   0x6   : > { %s1809_s19 = scalar_select %p86_p0, %s1727_s13, %s88_s18  }
   0x7   : > { %p1811_p4 = por %p99_p2, %p98_p1  ;;  %p149_p5 = scmp.lt.s32.totalorder %s1731_s14, 3 }
   0x9   : > { %p150_p6 = pnand %p1481_p3, %p149_p5 }
   0xa   : > { %v1665_v0 = vld [vmem:[%s2452_s1] sm:$0xff] (!%p150_p6)   ;;  %v1765_v1 = vmov (!%p150_p6), 0   ;;  %s1821_s23 = sshll.u32 (!%p150_p6), %s1799_s15, 6  ;;  %v1666_v2 = vld [vmem:[%s2452_s1 + $0x8] sm:$0xff] (!%p150_p6)   ;;  %v1667_v3 = vld [vmem:[%s2452_s1 + $0x10] sm:$0xff] (!%p150_p6)   ;;  %vm496_vm0 = vcmask (!%p150_p6), 523264  }
   0xb   : > { %153 = sbr.rel (%p150_p6) target bundleno = 470 (0x1d6), region = 32  ;;  %593 = vmatprep.subr.bf16.mxu0 (!%p150_p6), %v1765_v1  ;;  %1552 = vmatprep.subr.bf16.mxu1 (!%p150_p6), %v1765_v1  ;;  %p184_p7 = scmp.lt.s32.totalorder (!%p150_p6), %s1821_s23, 71  ;;  %v1668_v4 = vld [vmem:[%s2452_s1 + $0x18] sm:$0xff] (!%p150_p6)   ;;  %v1669_v10 = vld [vmem:[%s2452_s1 + $0x20] sm:$0xff] (!%p150_p6)   ;;  %v1670_v12 = vld [vmem:[%s2452_s1 + $0x28] sm:$0xff] (!%p150_p6)   ;;  %vm946_vm1 = vcmask (!%p150_p6), 261120  }
   0xc   : > { %594 = vmatpush1.bf16.msra.mxu0 (!%p150_p6), %v1665_v0  ;;  %1564 = vmatpush1.bf16.msra.mxu1 (!%p150_p6), %v1665_v0  ;;  %v1671_v13 = vld [vmem:[%s2452_s1 + $0x30] sm:$0xff] (!%p150_p6)   ;;  %v1672_v14 = vld [vmem:[%s2452_s1 + $0x38] sm:$0xff] (!%p150_p6)   ;;  %v1673_v15 = vld [vmem:[%s2452_s1 + $0x40] sm:$0xff] (!%p150_p6)   ;;  %s175_s4 = sand.u32 (!%p150_p6), 1, %s1723_s12  }
   0xd   : > { %595 = vmatprep.subr.bf16.mxu0 (!%p150_p6), %v1765_v1  ;;  %1553 = vmatprep.subr.bf16.mxu1 (!%p150_p6), %v1765_v1  ;;  %v1674_v16 = vld [vmem:[%s2452_s1 + $0x48] sm:$0xff] (!%p150_p6)   ;;  %v1675_v17 = vld [vmem:[%s2452_s1 + $0x50] sm:$0xff] (!%p150_p6)   ;;  %v1676_v18 = vld [vmem:[%s2452_s1 + $0x58] sm:$0xff] (!%p150_p6)   ;;  %s1482_s8 = sshll.u32 (!%p150_p6), %s175_s4, 9 }
   0xe   : > { %s2055_s12 = scalar_lea.vmem (!%p150_p6), [#allocation2], %s1482_s8  }
  0x10   : > { %596 = vmatpush1.bf16.msra.mxu0 (!%p150_p6), %v1666_v2  ;;  %1565 = vmatpush1.bf16.msra.mxu1 (!%p150_p6), %v1666_v2 }
  0x11   : > { %597 = vmatprep.subr.bf16.mxu0 (!%p150_p6), %v1765_v1  ;;  %1554 = vmatprep.subr.bf16.mxu1 (!%p150_p6), %v1765_v1 }
  0x12   : > { %s185_s26 = scalar_select %p184_p7, %s1821_s23, 71 }
  0x13   : > { %s1549_s9 = sshll.u32 (%p1811_p4), %s1799_s15, 9 }
  0x14   : > { %s1548_s29 = sshll.u32 %s185_s26, 4  ;;  %598 = vmatpush1.bf16.msra.mxu0 %v1667_v3  ;;  %1566 = vmatpush1.bf16.msra.mxu1 %v1667_v3  ;;  %s2252_s14 = scalar_lea.vmem (%p1811_p4), %s2454_s3, %s1549_s9  }
  0x15   : > { %s1838_s5 = scalar_lea.vmem %s2451_s0, %s1548_s29  ;;  %599 = vmatprep.subr.bf16.mxu0 %v1765_v1  ;;  %1555 = vmatprep.subr.bf16.mxu1 %v1765_v1 }
  0x16   : > { %v202_v5 = vld [vmem:[%s1838_s5 + $0x8] sm:$0xff]  ;;  %v204_v6 = vld [vmem:[%s1838_s5 + $0x18] sm:$0xff]  ;;  %v201_v19 = vld [vmem:[%s1838_s5] sm:$0xff] }
  0x17   : > { %v266_v7 = vld [vmem:[%s1838_s5 + $0x208] sm:$0xff]  ;;  %v330_v8 = vpack.c.bf16 %v204_v6, %v202_v5  ;;  %v268_v9 = vld [vmem:[%s1838_s5 + $0x218] sm:$0xff]  ;;  %v203_v20 = vld [vmem:[%s1838_s5 + $0x10] sm:$0xff] }
  0x18   : > { %600 = vmatpush1.bf16.msra.mxu0 %v1668_v4  ;;  %1567 = vmatpush1.bf16.msra.mxu1 %v1668_v4  ;;  %v362_v11 = vpack.c.bf16 %v268_v9, %v266_v7  ;;  %v265_v21 = vld [vmem:[%s1838_s5 + $0x200] sm:$0xff]  ;;  %v267_v22 = vld [vmem:[%s1838_s5 + $0x210] sm:$0xff]  ;;  %v206_v23 = vld [vmem:[%s1838_s5 + $0x28] sm:$0xff]  ;;  %v329_v27 = vpack.c.bf16 %v203_v20, %v201_v19 }
  0x19   : > { %601 = vmatprep.subr.bf16.mxu0 %v1765_v1  ;;  %1556 = vmatprep.subr.bf16.mxu1 %v1765_v1  ;;  %v208_v24 = vld [vmem:[%s1838_s5 + $0x38] sm:$0xff]  ;;  %v270_v25 = vld [vmem:[%s1838_s5 + $0x228] sm:$0xff]  ;;  %v361_v28 = vpack.c.bf16 %v267_v22, %v265_v21  ;;  %v205_v31 = vld [vmem:[%s1838_s5 + $0x20] sm:$0xff] }
  0x1a   : > { %1499 = vmatprep.mubr.msk.bf16.mxu0 %vm496_vm0, %v330_v8  ;;  %1515 = vmatprep.mubr.msk.bf16.mxu1 %vm496_vm0, %v362_v11  ;;  %v272_v26 = vld [vmem:[%s1838_s5 + $0x238] sm:$0xff]  ;;  %v332_v29 = vpack.c.bf16 %v208_v24, %v206_v23  ;;  %v207_v32 = vld [vmem:[%s1838_s5 + $0x30] sm:$0xff]  ;;  %v269_v33 = vld [vmem:[%s1838_s5 + $0x220] sm:$0xff] }
  0x1b   : > { %v364_v30 = vpack.c.bf16 %v272_v26, %v270_v25  ;;  %v271_v34 = vld [vmem:[%s1838_s5 + $0x230] sm:$0xff]  ;;  %v210_v35 = vld [vmem:[%s1838_s5 + $0x48] sm:$0xff]  ;;  %v212_v36 = vld [vmem:[%s1838_s5 + $0x58] sm:$0xff]  ;;  %v331_v39 = vpack.c.bf16 %v207_v32, %v205_v31 }
  0x1c   : > { %602 = vmatpush1.bf16.msra.mxu0 %v1669_v10  ;;  %1568 = vmatpush1.bf16.msra.mxu1 %v1669_v10  ;;  %v274_v37 = vld [vmem:[%s1838_s5 + $0x248] sm:$0xff]  ;;  %v276_v38 = vld [vmem:[%s1838_s5 + $0x258] sm:$0xff]  ;;  %v363_v40 = vpack.c.bf16 %v271_v34, %v269_v33  ;;  %v334_v41 = vpack.c.bf16 %v212_v36, %v210_v35  ;;  %v209_v43 = vld [vmem:[%s1838_s5 + $0x40] sm:$0xff] }
  0x1d   : > { %603 = vmatprep.subr.bf16.mxu0 %v1765_v1  ;;  %1557 = vmatprep.subr.bf16.mxu1 %v1765_v1  ;;  %v366_v42 = vpack.c.bf16 %v276_v38, %v274_v37  ;;  %v211_v44 = vld [vmem:[%s1838_s5 + $0x50] sm:$0xff]  ;;  %v273_v45 = vld [vmem:[%s1838_s5 + $0x240] sm:$0xff]  ;;  %v214_v47 = vld [vmem:[%s1838_s5 + $0x68] sm:$0xff] }
  0x1e   : > { %v275_v46 = vld [vmem:[%s1838_s5 + $0x250] sm:$0xff]  ;;  %v216_v48 = vld [vmem:[%s1838_s5 + $0x78] sm:$0xff]  ;;  %v278_v49 = vld [vmem:[%s1838_s5 + $0x268] sm:$0xff]  ;;  %v333_v51 = vpack.c.bf16 %v211_v44, %v209_v43 }
  0x1f   : > { %v280_v50 = vld [vmem:[%s1838_s5 + $0x278] sm:$0xff]  ;;  %v365_v52 = vpack.c.bf16 %v275_v46, %v273_v45  ;;  %v336_v53 = vpack.c.bf16 %v216_v48, %v214_v47  ;;  %v213_v55 = vld [vmem:[%s1838_s5 + $0x60] sm:$0xff]  ;;  %v215_v56 = vld [vmem:[%s1838_s5 + $0x70] sm:$0xff] }
  0x20   : > { %604 = vmatpush1.bf16.msra.mxu0 %v1670_v12  ;;  %1569 = vmatpush1.bf16.msra.mxu1 %v1670_v12  ;;  %v368_v54 = vpack.c.bf16 %v280_v50, %v278_v49  ;;  %v277_v57 = vld [vmem:[%s1838_s5 + $0x260] sm:$0xff]  ;;  %v279_v58 = vld [vmem:[%s1838_s5 + $0x270] sm:$0xff]  ;;  %v218_v59 = vld [vmem:[%s1838_s5 + $0x88] sm:$0xff]  ;;  %v335_v63 = vpack.c.bf16 %v215_v56, %v213_v55 }
  0x21   : > { %605 = vmatprep.subr.bf16.mxu0 %v1765_v1  ;;  %1558 = vmatprep.subr.bf16.mxu1 %v1765_v1  ;;  %v220_v60 = vld [vmem:[%s1838_s5 + $0x98] sm:$0xff]  ;;  %v282_v61 = vld [vmem:[%s1838_s5 + $0x288] sm:$0xff]  ;;  %v367_v0 = vpack.c.bf16 %v279_v58, %v277_v57  ;;  %v217_v3 = vld [vmem:[%s1838_s5 + $0x80] sm:$0xff] }
  0x22   : > { %v284_v62 = vld [vmem:[%s1838_s5 + $0x298] sm:$0xff]  ;;  %v219_v4 = vld [vmem:[%s1838_s5 + $0x90] sm:$0xff]  ;;  %v281_v5 = vld [vmem:[%s1838_s5 + $0x280] sm:$0xff] }
  0x23   : > { %v370_v2 = vpack.c.bf16 %v284_v62, %v282_v61  ;;  %v283_v6 = vld [vmem:[%s1838_s5 + $0x290] sm:$0xff]  ;;  %v222_v7 = vld [vmem:[%s1838_s5 + $0xa8] sm:$0xff]  ;;  %v224_v8 = vld [vmem:[%s1838_s5 + $0xb8] sm:$0xff]  ;;  %v337_v11 = vpack.c.bf16 %v219_v4, %v217_v3 }
  0x24   : > { %606 = vmatpush1.bf16.msra.mxu0 %v1671_v13  ;;  %1570 = vmatpush1.bf16.msra.mxu1 %v1671_v13  ;;  %v286_v9 = vld [vmem:[%s1838_s5 + $0x2a8] sm:$0xff]  ;;  %v288_v10 = vld [vmem:[%s1838_s5 + $0x2b8] sm:$0xff]  ;;  %v369_v12 = vpack.c.bf16 %v283_v6, %v281_v5  ;;  %v340_v13 = vpack.c.bf16 %v224_v8, %v222_v7 }
  0x25   : > { %607 = vmatprep.subr.bf16.mxu0 %v1765_v1  ;;  %1559 = vmatprep.subr.bf16.mxu1 %v1765_v1  ;;  %v226_v19 = vld [vmem:[%s1838_s5 + $0xc8] sm:$0xff]  ;;  %v228_v20 = vld [vmem:[%s1838_s5 + $0xd8] sm:$0xff] }
  0x26   : > { %v290_v21 = vld [vmem:[%s1838_s5 + $0x2c8] sm:$0xff]  ;;  %v292_v22 = vld [vmem:[%s1838_s5 + $0x2d8] sm:$0xff]  ;;  %v342_v25 = vpack.c.bf16 %v228_v20, %v226_v19 }
  0x27   : > { %v374_v26 = vpack.c.bf16 %v292_v22, %v290_v21  ;;  %v230_v31 = vld [vmem:[%s1838_s5 + $0xe8] sm:$0xff]  ;;  %v232_v32 = vld [vmem:[%s1838_s5 + $0xf8] sm:$0xff] }
  0x28   : > { %608 = vmatpush1.bf16.msra.mxu0 %v1672_v14  ;;  %1571 = vmatpush1.bf16.msra.mxu1 %v1672_v14  ;;  %v372_v14 = vpack.c.bf16 %v288_v10, %v286_v9  ;;  %v294_v33 = vld [vmem:[%s1838_s5 + $0x2e8] sm:$0xff]  ;;  %v296_v34 = vld [vmem:[%s1838_s5 + $0x2f8] sm:$0xff]  ;;  %v344_v37 = vpack.c.bf16 %v232_v32, %v230_v31 }
  0x29   : > { %609 = vmatprep.subr.bf16.mxu0 %v1765_v1  ;;  %1560 = vmatprep.subr.bf16.mxu1 %v1765_v1  ;;  %v376_v38 = vpack.c.bf16 %v296_v34, %v294_v33  ;;  %v234_v43 = vld [vmem:[%s1838_s5 + $0x108] sm:$0xff]  ;;  %v236_v44 = vld [vmem:[%s1838_s5 + $0x118] sm:$0xff] }
  0x2a   : > { %v298_v45 = vld [vmem:[%s1838_s5 + $0x308] sm:$0xff]  ;;  %v300_v46 = vld [vmem:[%s1838_s5 + $0x318] sm:$0xff]  ;;  %v346_v49 = vpack.c.bf16 %v236_v44, %v234_v43 }
  0x2b   : > { %v378_v50 = vpack.c.bf16 %v300_v46, %v298_v45  ;;  %v238_v55 = vld [vmem:[%s1838_s5 + $0x128] sm:$0xff]  ;;  %v240_v56 = vld [vmem:[%s1838_s5 + $0x138] sm:$0xff] }
  0x2c   : > { %610 = vmatpush1.bf16.msra.mxu0 %v1673_v15  ;;  %1572 = vmatpush1.bf16.msra.mxu1 %v1673_v15  ;;  %v221_v15 = vld [vmem:[%s1838_s5 + $0xa0] sm:$0xff]  ;;  %v302_v57 = vld [vmem:[%s1838_s5 + $0x328] sm:$0xff]  ;;  %v304_v58 = vld [vmem:[%s1838_s5 + $0x338] sm:$0xff]  ;;  %v348_v61 = vpack.c.bf16 %v240_v56, %v238_v55 }
  0x2d   : > { %611 = vmatprep.subr.bf16.mxu0 %v1765_v1  ;;  %1561 = vmatprep.subr.bf16.mxu1 %v1765_v1  ;;  %v380_v62 = vpack.c.bf16 %v304_v58, %v302_v57  ;;  %v242_v3 = vld [vmem:[%s1838_s5 + $0x148] sm:$0xff]  ;;  %v244_v4 = vld [vmem:[%s1838_s5 + $0x158] sm:$0xff] }
  0x2e   : > { %v306_v5 = vld [vmem:[%s1838_s5 + $0x348] sm:$0xff]  ;;  %v308_v6 = vld [vmem:[%s1838_s5 + $0x358] sm:$0xff]  ;;  %v350_v9 = vpack.c.bf16 %v244_v4, %v242_v3 }
  0x2f   : > { %v382_v10 = vpack.c.bf16 %v308_v6, %v306_v5 }
  0x30   : > { %612 = vmatpush1.bf16.msra.mxu0 %v1674_v16  ;;  %1573 = vmatpush1.bf16.msra.mxu1 %v1674_v16  ;;  %v223_v16 = vld [vmem:[%s1838_s5 + $0xb0] sm:$0xff] }
  0x31   : > { %613 = vmatprep.subr.bf16.mxu0 %v1765_v1  ;;  %1562 = vmatprep.subr.bf16.mxu1 %v1765_v1  ;;  %v339_v23 = vpack.c.bf16 %v223_v16, %v221_v15  ;;  %v246_v15 = vld [vmem:[%s1838_s5 + $0x168] sm:$0xff]  ;;  %v248_v16 = vld [vmem:[%s1838_s5 + $0x178] sm:$0xff] }
  0x32   : > { %v352_v21 = vpack.c.bf16 %v248_v16, %v246_v15 }
  0x34   : > { %614 = vmatpush1.bf16.msra.mxu0 %v1675_v17  ;;  %1574 = vmatpush1.bf16.msra.mxu1 %v1675_v17  ;;  %v285_v17 = vld [vmem:[%s1838_s5 + $0x2a0] sm:$0xff] }
  0x35   : > { %615 = vmatprep.subr.bf16.mxu0 %v1765_v1  ;;  %1563 = vmatprep.subr.bf16.mxu1 %v1765_v1  ;;  %v338_v1 = vpack.c.bf16 %v220_v60, %v218_v59 }
  0x38   : > { %616 = vmatpush1.bf16.msra.mxu0 %v1676_v18  ;;  %1575 = vmatpush1.bf16.msra.mxu1 %v1676_v18  ;;  %v287_v18 = vld [vmem:[%s1838_s5 + $0x2b0] sm:$0xff] }
  0x39   : > { %v371_v24 = vpack.c.bf16 %v287_v18, %v285_v17  ;;  %v310_v17 = vld [vmem:[%s1838_s5 + $0x368] sm:$0xff]  ;;  %v312_v18 = vld [vmem:[%s1838_s5 + $0x378] sm:$0xff] }
  0x3a   : > { %v384_v22 = vpack.c.bf16 %v312_v18, %v310_v17 }
  0x3b   : > { %626 = vmatmul.mubr.bf16.vlgmr.msra.gmra.mrb[0].mxu0 %v329_v27  ;;  %754 = vmatmul.mubr.bf16.vlgmr.msra.gmra.mrb[0].mxu1 %v361_v28  ;;  %v225_v27 = vld [vmem:[%s1838_s5 + $0xc0] sm:$0xff]  ;;  %v227_v28 = vld [vmem:[%s1838_s5 + $0xd0] sm:$0xff] }
  0x3c   : > { %1500 = vmatprep.mubr.msk.bf16.mxu0 %vm496_vm0, %v332_v29  ;;  %1516 = vmatprep.mubr.msk.bf16.mxu1 %vm496_vm0, %v364_v30  ;;  %v289_v29 = vld [vmem:[%s1838_s5 + $0x2c0] sm:$0xff]  ;;  %v291_v30 = vld [vmem:[%s1838_s5 + $0x2d0] sm:$0xff]  ;;  %v341_v35 = vpack.c.bf16 %v227_v28, %v225_v27  ;;  %v250_v27 = vld [vmem:[%s1838_s5 + $0x188] sm:$0xff] }
  0x3d   : > { %v373_v36 = vpack.c.bf16 %v291_v30, %v289_v29  ;;  %v252_v28 = vld [vmem:[%s1838_s5 + $0x198] sm:$0xff]  ;;  %v314_v29 = vld [vmem:[%s1838_s5 + $0x388] sm:$0xff] }
  0x3e   : > { %v316_v30 = vld [vmem:[%s1838_s5 + $0x398] sm:$0xff]  ;;  %v354_v33 = vpack.c.bf16 %v252_v28, %v250_v27 }
  0x3f   : > { %v386_v34 = vpack.c.bf16 %v316_v30, %v314_v29 }
  0x43   : > { %634 = vmatmul.mubr.bf16.gmra.mrb[4].mxu0 %v331_v39  ;;  %762 = vmatmul.mubr.bf16.gmra.mrb[4].mxu1 %v363_v40  ;;  %v229_v39 = vld [vmem:[%s1838_s5 + $0xe0] sm:$0xff]  ;;  %v231_v40 = vld [vmem:[%s1838_s5 + $0xf0] sm:$0xff] }
  0x44   : > { %1501 = vmatprep.mubr.msk.bf16.mxu0 %vm496_vm0, %v334_v41  ;;  %1517 = vmatprep.mubr.msk.bf16.mxu1 %vm496_vm0, %v366_v42  ;;  %v293_v41 = vld [vmem:[%s1838_s5 + $0x2e0] sm:$0xff]  ;;  %v295_v42 = vld [vmem:[%s1838_s5 + $0x2f0] sm:$0xff]  ;;  %v343_v47 = vpack.c.bf16 %v231_v40, %v229_v39  ;;  %v254_v39 = vld [vmem:[%s1838_s5 + $0x1a8] sm:$0xff] }
  0x45   : > { %v375_v48 = vpack.c.bf16 %v295_v42, %v293_v41  ;;  %v256_v40 = vld [vmem:[%s1838_s5 + $0x1b8] sm:$0xff]  ;;  %v318_v41 = vld [vmem:[%s1838_s5 + $0x3a8] sm:$0xff] }
  0x46   : > { %v320_v42 = vld [vmem:[%s1838_s5 + $0x3b8] sm:$0xff]  ;;  %v356_v45 = vpack.c.bf16 %v256_v40, %v254_v39 }
  0x47   : > { %v388_v46 = vpack.c.bf16 %v320_v42, %v318_v41 }
  0x4b   : > { %642 = vmatmul.mubr.bf16.gmra.mrb[8].mxu0 %v333_v51  ;;  %770 = vmatmul.mubr.bf16.gmra.mrb[8].mxu1 %v365_v52  ;;  %v233_v51 = vld [vmem:[%s1838_s5 + $0x100] sm:$0xff]  ;;  %v235_v52 = vld [vmem:[%s1838_s5 + $0x110] sm:$0xff] }
  0x4c   : > { %1502 = vmatprep.mubr.msk.bf16.mxu0 %vm496_vm0, %v336_v53  ;;  %1518 = vmatprep.mubr.msk.bf16.mxu1 %vm496_vm0, %v368_v54  ;;  %v297_v53 = vld [vmem:[%s1838_s5 + $0x300] sm:$0xff]  ;;  %v299_v54 = vld [vmem:[%s1838_s5 + $0x310] sm:$0xff]  ;;  %v345_v59 = vpack.c.bf16 %v235_v52, %v233_v51  ;;  %v258_v51 = vld [vmem:[%s1838_s5 + $0x1c8] sm:$0xff] }
  0x4d   : > { %v377_v60 = vpack.c.bf16 %v299_v54, %v297_v53  ;;  %v260_v52 = vld [vmem:[%s1838_s5 + $0x1d8] sm:$0xff]  ;;  %v322_v53 = vld [vmem:[%s1838_s5 + $0x3c8] sm:$0xff] }
  0x4e   : > { %v324_v54 = vld [vmem:[%s1838_s5 + $0x3d8] sm:$0xff]  ;;  %v358_v57 = vpack.c.bf16 %v260_v52, %v258_v51 }
  0x4f   : > { %v390_v58 = vpack.c.bf16 %v324_v54, %v322_v53 }
  0x53   : > { %650 = vmatmul.mubr.bf16.gmra.mrb[12].mxu0 %v335_v63  ;;  %778 = vmatmul.mubr.bf16.gmra.mrb[12].mxu1 %v367_v0  ;;  %v237_v63 = vld [vmem:[%s1838_s5 + $0x120] sm:$0xff]  ;;  %v239_v0 = vld [vmem:[%s1838_s5 + $0x130] sm:$0xff] }
  0x54   : > { %1503 = vmatprep.mubr.msk.bf16.mxu0 %vm496_vm0, %v338_v1  ;;  %1519 = vmatprep.mubr.msk.bf16.mxu1 %vm496_vm0, %v370_v2  ;;  %v301_v1 = vld [vmem:[%s1838_s5 + $0x320] sm:$0xff]  ;;  %v303_v2 = vld [vmem:[%s1838_s5 + $0x330] sm:$0xff]  ;;  %v347_v7 = vpack.c.bf16 %v239_v0, %v237_v63  ;;  %v262_v63 = vld [vmem:[%s1838_s5 + $0x1e8] sm:$0xff] }
  0x55   : > { %v379_v8 = vpack.c.bf16 %v303_v2, %v301_v1  ;;  %v264_v0 = vld [vmem:[%s1838_s5 + $0x1f8] sm:$0xff]  ;;  %v326_v1 = vld [vmem:[%s1838_s5 + $0x3e8] sm:$0xff] }
  0x56   : > { %v328_v2 = vld [vmem:[%s1838_s5 + $0x3f8] sm:$0xff]  ;;  %v360_v5 = vpack.c.bf16 %v264_v0, %v262_v63 }
  0x57   : > { %v392_v6 = vpack.c.bf16 %v328_v2, %v326_v1 }
  0x5b   : > { %658 = vmatmul.mubr.bf16.gmra.mrb[16].mxu0 %v337_v11  ;;  %786 = vmatmul.mubr.bf16.gmra.mrb[16].mxu1 %v369_v12  ;;  %v241_v11 = vld [vmem:[%s1838_s5 + $0x140] sm:$0xff]  ;;  %v243_v12 = vld [vmem:[%s1838_s5 + $0x150] sm:$0xff] }
  0x5c   : > { %1504 = vmatprep.mubr.msk.bf16.mxu0 %vm496_vm0, %v340_v13  ;;  %1520 = vmatprep.mubr.msk.bf16.mxu1 %vm496_vm0, %v372_v14  ;;  %v305_v13 = vld [vmem:[%s1838_s5 + $0x340] sm:$0xff]  ;;  %v307_v14 = vld [vmem:[%s1838_s5 + $0x350] sm:$0xff]  ;;  %v349_v19 = vpack.c.bf16 %v243_v12, %v241_v11 }
  0x5d   : > { %v381_v20 = vpack.c.bf16 %v307_v14, %v305_v13  ;;  %v2049_v13 = vld [vmem:[%s2453_s2] ss:$0 sm:$0xff] }
  0x63   : > { %666 = vmatmul.mubr.bf16.gmra.mrb[20].mxu0 %v339_v23  ;;  %794 = vmatmul.mubr.bf16.gmra.mrb[20].mxu1 %v371_v24  ;;  %v245_v23 = vld [vmem:[%s1838_s5 + $0x160] sm:$0xff]  ;;  %v247_v24 = vld [vmem:[%s1838_s5 + $0x170] sm:$0xff] }
  0x64   : > { %1505 = vmatprep.mubr.msk.bf16.mxu0 %vm496_vm0, %v342_v25  ;;  %1521 = vmatprep.mubr.msk.bf16.mxu1 %vm496_vm0, %v374_v26  ;;  %v309_v25 = vld [vmem:[%s1838_s5 + $0x360] sm:$0xff]  ;;  %v311_v26 = vld [vmem:[%s1838_s5 + $0x370] sm:$0xff]  ;;  %v351_v31 = vpack.c.bf16 %v247_v24, %v245_v23 }
  0x65   : > { %v383_v32 = vpack.c.bf16 %v311_v26, %v309_v25 }
  0x6b   : > { %674 = vmatmul.mubr.bf16.gmra.mrb[24].mxu0 %v341_v35  ;;  %802 = vmatmul.mubr.bf16.gmra.mrb[24].mxu1 %v373_v36  ;;  %v249_v35 = vld [vmem:[%s1838_s5 + $0x180] sm:$0xff]  ;;  %v251_v36 = vld [vmem:[%s1838_s5 + $0x190] sm:$0xff] }
  0x6c   : > { %1506 = vmatprep.mubr.msk.bf16.mxu0 %vm496_vm0, %v344_v37  ;;  %1522 = vmatprep.mubr.msk.bf16.mxu1 %vm496_vm0, %v376_v38  ;;  %v313_v37 = vld [vmem:[%s1838_s5 + $0x380] sm:$0xff]  ;;  %v315_v38 = vld [vmem:[%s1838_s5 + $0x390] sm:$0xff]  ;;  %v353_v43 = vpack.c.bf16 %v251_v36, %v249_v35 }
  0x6d   : > { %v385_v44 = vpack.c.bf16 %v315_v38, %v313_v37 }
  0x73   : > { %682 = vmatmul.mubr.bf16.gmra.mrb[28].mxu0 %v343_v47  ;;  %810 = vmatmul.mubr.bf16.gmra.mrb[28].mxu1 %v375_v48  ;;  %v253_v47 = vld [vmem:[%s1838_s5 + $0x1a0] sm:$0xff]  ;;  %v255_v48 = vld [vmem:[%s1838_s5 + $0x1b0] sm:$0xff] }
  0x74   : > { %1507 = vmatprep.mubr.msk.bf16.mxu0 %vm496_vm0, %v346_v49  ;;  %1523 = vmatprep.mubr.msk.bf16.mxu1 %vm496_vm0, %v378_v50  ;;  %v317_v49 = vld [vmem:[%s1838_s5 + $0x3a0] sm:$0xff]  ;;  %v319_v50 = vld [vmem:[%s1838_s5 + $0x3b0] sm:$0xff]  ;;  %v355_v55 = vpack.c.bf16 %v255_v48, %v253_v47 }
  0x75   : > { %v387_v56 = vpack.c.bf16 %v319_v50, %v317_v49 }
  0x7b   : > { %690 = vmatmul.mubr.bf16.gmra.mrb[32].mxu0 %v345_v59  ;;  %818 = vmatmul.mubr.bf16.gmra.mrb[32].mxu1 %v377_v60  ;;  %v257_v59 = vld [vmem:[%s1838_s5 + $0x1c0] sm:$0xff]  ;;  %v259_v60 = vld [vmem:[%s1838_s5 + $0x1d0] sm:$0xff] }
  0x7c   : > { %1508 = vmatprep.mubr.msk.bf16.mxu0 %vm496_vm0, %v348_v61  ;;  %1524 = vmatprep.mubr.msk.bf16.mxu1 %vm496_vm0, %v380_v62  ;;  %v321_v61 = vld [vmem:[%s1838_s5 + $0x3c0] sm:$0xff]  ;;  %v323_v62 = vld [vmem:[%s1838_s5 + $0x3d0] sm:$0xff]  ;;  %v357_v3 = vpack.c.bf16 %v259_v60, %v257_v59 }
  0x7d   : > { %v389_v4 = vpack.c.bf16 %v323_v62, %v321_v61 }
  0x83   : > { %698 = vmatmul.mubr.bf16.gmra.mrb[36].mxu0 %v347_v7  ;;  %826 = vmatmul.mubr.bf16.gmra.mrb[36].mxu1 %v379_v8  ;;  %v261_v7 = vld [vmem:[%s1838_s5 + $0x1e0] sm:$0xff]  ;;  %v263_v8 = vld [vmem:[%s1838_s5 + $0x1f0] sm:$0xff] }
  0x84   : > { %1509 = vmatprep.mubr.msk.bf16.mxu0 %vm496_vm0, %v350_v9  ;;  %1525 = vmatprep.mubr.msk.bf16.mxu1 %vm496_vm0, %v382_v10  ;;  %v325_v9 = vld [vmem:[%s1838_s5 + $0x3e0] sm:$0xff]  ;;  %v327_v10 = vld [vmem:[%s1838_s5 + $0x3f0] sm:$0xff]  ;;  %v359_v11 = vpack.c.bf16 %v263_v8, %v261_v7  ;;  %s1019_s5 = ssub.s32 (%p1811_p4), 72, %s1821_s23 }
  0x85   : > { %v391_v12 = vpack.c.bf16 %v327_v10, %v325_v9  ;;  %p1020_p8 = scmp.lt.s32.totalorder (%p1811_p4), %s1019_s5, 64 }
  0x8b   : > { %706 = vmatmul.mubr.bf16.gmra.mrb[40].mxu0 %v349_v19  ;;  %834 = vmatmul.mubr.bf16.gmra.mrb[40].mxu1 %v381_v20 }
  0x8c   : > { %1510 = vmatprep.mubr.msk.bf16.mxu0 %vm496_vm0, %v352_v21  ;;  %1526 = vmatprep.mubr.msk.bf16.mxu1 %vm496_vm0, %v384_v22 }
  0x93   : > { %714 = vmatmul.mubr.bf16.gmra.mrb[44].mxu0 %v351_v31  ;;  %842 = vmatmul.mubr.bf16.gmra.mrb[44].mxu1 %v383_v32 }
  0x94   : > { %1511 = vmatprep.mubr.msk.bf16.mxu0 %vm496_vm0, %v354_v33  ;;  %1527 = vmatprep.mubr.msk.bf16.mxu1 %vm496_vm0, %v386_v34 }
  0x9b   : > { %722 = vmatmul.mubr.bf16.gmra.mrb[48].mxu0 %v353_v43  ;;  %850 = vmatmul.mubr.bf16.gmra.mrb[48].mxu1 %v385_v44 }
  0x9c   : > { %1512 = vmatprep.mubr.msk.bf16.mxu0 %vm496_vm0, %v356_v45  ;;  %1528 = vmatprep.mubr.msk.bf16.mxu1 %vm496_vm0, %v388_v46 }
  0xa3   : > { %730 = vmatmul.mubr.bf16.gmra.mrb[52].mxu0 %v355_v55  ;;  %858 = vmatmul.mubr.bf16.gmra.mrb[52].mxu1 %v387_v56 }
  0xa4   : > { %1513 = vmatprep.mubr.msk.bf16.mxu0 %vm496_vm0, %v358_v57  ;;  %1529 = vmatprep.mubr.msk.bf16.mxu1 %vm496_vm0, %v390_v58 }
  0xab   : > { %738 = vmatmul.mubr.bf16.gmra.mrb[56].mxu0 %v357_v3  ;;  %866 = vmatmul.mubr.bf16.gmra.mrb[56].mxu1 %v389_v4 }
  0xac   : > { %1514 = vmatprep.mubr.msk.bf16.mxu0 %vm496_vm0, %v360_v5  ;;  %1530 = vmatprep.mubr.msk.bf16.mxu1 %vm496_vm0, %v392_v6 }
  0xb3   : > { %746 = vmatmul.mubr.bf16.gmra.mrb[60].mxu0 %v359_v11  ;;  %874 = vmatmul.mubr.bf16.gmra.mrb[60].mxu1 %v391_v12 }
 0x10e   : > { %v627_v14 = vpop.f32.mrb[0].mxu0  ;;  %v755_v15 = vpop.f32.mrb[0].mxu1 }
 0x10f   : > { %v628_v16 = vadd.f32 %v2049_v13, %v627_v14  ;;  %v756_v17 = vadd.f32 %v2049_v13, %v755_v15  ;;  %v629_v18 = vpop.f32.mrb[1].mxu0  ;;  %v757_v19 = vpop.f32.mrb[1].mxu1 }
 0x110   : > { %v630_v20 = vpop.f32.mrb[2].mxu0  ;;  %v758_v21 = vpop.f32.mrb[2].mxu1 }
 0x111   : > { %v882_v22 = vmax.f32 %v628_v16, 0.0  ;;  %v914_v23 = vmax.f32 %v756_v17, 0.0  ;;  %v631_v24 = vadd.f32 %v2049_v13, %v630_v20  ;;  %v759_v25 = vadd.f32 %v2049_v13, %v758_v21  ;;  %v632_v26 = vpop.f32.mrb[3].mxu0  ;;  %v760_v27 = vpop.f32.mrb[3].mxu1 }
 0x113   : > { %947 = vst.msk [vmem:[%s2055_s12] sm:$0xff] %vm946_vm1, %v882_v22  ;;  %979 = vst.msk [vmem:[%s2055_s12 + $0x100] sm:$0xff] %vm946_vm1, %v914_v23  ;;  %v883_v28 = vmax.f32 %v631_v24, 0.0  ;;  %v915_v29 = vmax.f32 %v759_v25, 0.0 }
 0x115   : > { %948 = vst.msk [vmem:[%s2055_s12 + $0x8] sm:$0xff] %vm946_vm1, %v883_v28  ;;  %980 = vst.msk [vmem:[%s2055_s12 + $0x108] sm:$0xff] %vm946_vm1, %v915_v29 }
 0x116   : > { %v635_v30 = vpop.f32.mrb[4].mxu0  ;;  %v763_v31 = vpop.f32.mrb[4].mxu1 }
 0x117   : > { %v636_v32 = vadd.f32 %v2049_v13, %v635_v30  ;;  %v764_v33 = vadd.f32 %v2049_v13, %v763_v31  ;;  %v637_v34 = vpop.f32.mrb[5].mxu0  ;;  %v765_v35 = vpop.f32.mrb[5].mxu1 }
 0x118   : > { %v638_v36 = vpop.f32.mrb[6].mxu0  ;;  %v766_v37 = vpop.f32.mrb[6].mxu1 }
 0x119   : > { %v884_v38 = vmax.f32 %v636_v32, 0.0  ;;  %v916_v39 = vmax.f32 %v764_v33, 0.0  ;;  %v639_v40 = vadd.f32 %v2049_v13, %v638_v36  ;;  %v767_v41 = vadd.f32 %v2049_v13, %v766_v37  ;;  %v640_v42 = vpop.f32.mrb[7].mxu0  ;;  %v768_v43 = vpop.f32.mrb[7].mxu1 }
 0x11b   : > { %949 = vst.msk [vmem:[%s2055_s12 + $0x10] sm:$0xff] %vm946_vm1, %v884_v38  ;;  %981 = vst.msk [vmem:[%s2055_s12 + $0x110] sm:$0xff] %vm946_vm1, %v916_v39  ;;  %v885_v44 = vmax.f32 %v639_v40, 0.0  ;;  %v917_v45 = vmax.f32 %v767_v41, 0.0 }
 0x11d   : > { %950 = vst.msk [vmem:[%s2055_s12 + $0x18] sm:$0xff] %vm946_vm1, %v885_v44  ;;  %982 = vst.msk [vmem:[%s2055_s12 + $0x118] sm:$0xff] %vm946_vm1, %v917_v45 }
 0x11e   : > { %v643_v46 = vpop.f32.mrb[8].mxu0  ;;  %v771_v47 = vpop.f32.mrb[8].mxu1 }
 0x11f   : > { %v644_v48 = vadd.f32 %v2049_v13, %v643_v46  ;;  %v772_v49 = vadd.f32 %v2049_v13, %v771_v47  ;;  %v645_v50 = vpop.f32.mrb[9].mxu0  ;;  %v773_v51 = vpop.f32.mrb[9].mxu1 }
 0x120   : > { %v646_v52 = vpop.f32.mrb[10].mxu0  ;;  %v774_v53 = vpop.f32.mrb[10].mxu1 }
 0x121   : > { %v886_v54 = vmax.f32 %v644_v48, 0.0  ;;  %v918_v55 = vmax.f32 %v772_v49, 0.0  ;;  %v647_v56 = vadd.f32 %v2049_v13, %v646_v52  ;;  %v775_v57 = vadd.f32 %v2049_v13, %v774_v53  ;;  %v648_v58 = vpop.f32.mrb[11].mxu0  ;;  %v776_v59 = vpop.f32.mrb[11].mxu1 }
 0x123   : > { %951 = vst.msk [vmem:[%s2055_s12 + $0x20] sm:$0xff] %vm946_vm1, %v886_v54  ;;  %983 = vst.msk [vmem:[%s2055_s12 + $0x120] sm:$0xff] %vm946_vm1, %v918_v55  ;;  %v887_v60 = vmax.f32 %v647_v56, 0.0  ;;  %v919_v61 = vmax.f32 %v775_v57, 0.0 }
 0x125   : > { %952 = vst.msk [vmem:[%s2055_s12 + $0x28] sm:$0xff] %vm946_vm1, %v887_v60  ;;  %984 = vst.msk [vmem:[%s2055_s12 + $0x128] sm:$0xff] %vm946_vm1, %v919_v61 }
 0x126   : > { %v651_v62 = vpop.f32.mrb[12].mxu0  ;;  %v779_v63 = vpop.f32.mrb[12].mxu1 }
 0x127   : > { %v652_v0 = vadd.f32 %v2049_v13, %v651_v62  ;;  %v780_v1 = vadd.f32 %v2049_v13, %v779_v63  ;;  %v653_v2 = vpop.f32.mrb[13].mxu0  ;;  %v781_v3 = vpop.f32.mrb[13].mxu1 }
 0x128   : > { %v654_v4 = vpop.f32.mrb[14].mxu0  ;;  %v782_v5 = vpop.f32.mrb[14].mxu1 }
 0x129   : > { %v888_v6 = vmax.f32 %v652_v0, 0.0  ;;  %v920_v7 = vmax.f32 %v780_v1, 0.0  ;;  %v655_v8 = vadd.f32 %v2049_v13, %v654_v4  ;;  %v783_v9 = vadd.f32 %v2049_v13, %v782_v5  ;;  %v656_v10 = vpop.f32.mrb[15].mxu0  ;;  %v784_v11 = vpop.f32.mrb[15].mxu1 }
 0x12b   : > { %953 = vst.msk [vmem:[%s2055_s12 + $0x30] sm:$0xff] %vm946_vm1, %v888_v6  ;;  %985 = vst.msk [vmem:[%s2055_s12 + $0x130] sm:$0xff] %vm946_vm1, %v920_v7  ;;  %v889_v12 = vmax.f32 %v655_v8, 0.0  ;;  %v921_v14 = vmax.f32 %v783_v9, 0.0 }
 0x12d   : > { %954 = vst.msk [vmem:[%s2055_s12 + $0x38] sm:$0xff] %vm946_vm1, %v889_v12  ;;  %986 = vst.msk [vmem:[%s2055_s12 + $0x138] sm:$0xff] %vm946_vm1, %v921_v14 }
 0x12e   : > { %v659_v15 = vpop.f32.mrb[16].mxu0  ;;  %v787_v16 = vpop.f32.mrb[16].mxu1 }
 0x12f   : > { %v660_v17 = vadd.f32 %v2049_v13, %v659_v15  ;;  %v788_v18 = vadd.f32 %v2049_v13, %v787_v16  ;;  %v661_v19 = vpop.f32.mrb[17].mxu0  ;;  %v789_v20 = vpop.f32.mrb[17].mxu1 }
 0x130   : > { %v662_v21 = vpop.f32.mrb[18].mxu0  ;;  %v790_v22 = vpop.f32.mrb[18].mxu1 }
 0x131   : > { %v890_v23 = vmax.f32 %v660_v17, 0.0  ;;  %v922_v24 = vmax.f32 %v788_v18, 0.0  ;;  %v663_v25 = vadd.f32 %v2049_v13, %v662_v21  ;;  %v791_v26 = vadd.f32 %v2049_v13, %v790_v22  ;;  %v664_v27 = vpop.f32.mrb[19].mxu0  ;;  %v792_v28 = vpop.f32.mrb[19].mxu1 }
 0x133   : > { %955 = vst.msk [vmem:[%s2055_s12 + $0x40] sm:$0xff] %vm946_vm1, %v890_v23  ;;  %987 = vst.msk [vmem:[%s2055_s12 + $0x140] sm:$0xff] %vm946_vm1, %v922_v24  ;;  %v891_v29 = vmax.f32 %v663_v25, 0.0  ;;  %v923_v30 = vmax.f32 %v791_v26, 0.0 }
 0x135   : > { %956 = vst.msk [vmem:[%s2055_s12 + $0x48] sm:$0xff] %vm946_vm1, %v891_v29  ;;  %988 = vst.msk [vmem:[%s2055_s12 + $0x148] sm:$0xff] %vm946_vm1, %v923_v30 }
 0x136   : > { %v667_v31 = vpop.f32.mrb[20].mxu0  ;;  %v795_v32 = vpop.f32.mrb[20].mxu1 }
 0x137   : > { %v668_v33 = vadd.f32 %v2049_v13, %v667_v31  ;;  %v796_v34 = vadd.f32 %v2049_v13, %v795_v32  ;;  %v669_v35 = vpop.f32.mrb[21].mxu0  ;;  %v797_v36 = vpop.f32.mrb[21].mxu1 }
 0x138   : > { %v670_v37 = vpop.f32.mrb[22].mxu0  ;;  %v798_v38 = vpop.f32.mrb[22].mxu1 }
 0x139   : > { %v892_v39 = vmax.f32 %v668_v33, 0.0  ;;  %v924_v40 = vmax.f32 %v796_v34, 0.0  ;;  %v671_v41 = vadd.f32 %v2049_v13, %v670_v37  ;;  %v799_v42 = vadd.f32 %v2049_v13, %v798_v38  ;;  %v672_v43 = vpop.f32.mrb[23].mxu0  ;;  %v800_v44 = vpop.f32.mrb[23].mxu1 }
 0x13b   : > { %957 = vst.msk [vmem:[%s2055_s12 + $0x50] sm:$0xff] %vm946_vm1, %v892_v39  ;;  %989 = vst.msk [vmem:[%s2055_s12 + $0x150] sm:$0xff] %vm946_vm1, %v924_v40  ;;  %v893_v45 = vmax.f32 %v671_v41, 0.0  ;;  %v925_v46 = vmax.f32 %v799_v42, 0.0 }
 0x13d   : > { %958 = vst.msk [vmem:[%s2055_s12 + $0x58] sm:$0xff] %vm946_vm1, %v893_v45  ;;  %990 = vst.msk [vmem:[%s2055_s12 + $0x158] sm:$0xff] %vm946_vm1, %v925_v46 }
 0x13e   : > { %v675_v47 = vpop.f32.mrb[24].mxu0  ;;  %v803_v48 = vpop.f32.mrb[24].mxu1 }
 0x13f   : > { %v676_v49 = vadd.f32 %v2049_v13, %v675_v47  ;;  %v804_v50 = vadd.f32 %v2049_v13, %v803_v48  ;;  %v677_v51 = vpop.f32.mrb[25].mxu0  ;;  %v805_v52 = vpop.f32.mrb[25].mxu1 }
 0x140   : > { %v678_v53 = vpop.f32.mrb[26].mxu0  ;;  %v806_v54 = vpop.f32.mrb[26].mxu1 }
 0x141   : > { %v894_v55 = vmax.f32 %v676_v49, 0.0  ;;  %v926_v56 = vmax.f32 %v804_v50, 0.0  ;;  %v679_v57 = vadd.f32 %v2049_v13, %v678_v53  ;;  %v807_v58 = vadd.f32 %v2049_v13, %v806_v54  ;;  %v680_v59 = vpop.f32.mrb[27].mxu0  ;;  %v808_v60 = vpop.f32.mrb[27].mxu1 }
 0x143   : > { %959 = vst.msk [vmem:[%s2055_s12 + $0x60] sm:$0xff] %vm946_vm1, %v894_v55  ;;  %991 = vst.msk [vmem:[%s2055_s12 + $0x160] sm:$0xff] %vm946_vm1, %v926_v56  ;;  %v895_v61 = vmax.f32 %v679_v57, 0.0  ;;  %v927_v62 = vmax.f32 %v807_v58, 0.0 }
 0x145   : > { %960 = vst.msk [vmem:[%s2055_s12 + $0x68] sm:$0xff] %vm946_vm1, %v895_v61  ;;  %992 = vst.msk [vmem:[%s2055_s12 + $0x168] sm:$0xff] %vm946_vm1, %v927_v62 }
 0x146   : > { %v683_v63 = vpop.f32.mrb[28].mxu0  ;;  %v811_v0 = vpop.f32.mrb[28].mxu1 }
 0x147   : > { %v684_v1 = vadd.f32 %v2049_v13, %v683_v63  ;;  %v812_v2 = vadd.f32 %v2049_v13, %v811_v0  ;;  %v685_v3 = vpop.f32.mrb[29].mxu0  ;;  %v813_v4 = vpop.f32.mrb[29].mxu1 }
 0x148   : > { %v686_v5 = vpop.f32.mrb[30].mxu0  ;;  %v814_v6 = vpop.f32.mrb[30].mxu1 }
 0x149   : > { %v896_v7 = vmax.f32 %v684_v1, 0.0  ;;  %v928_v8 = vmax.f32 %v812_v2, 0.0  ;;  %v687_v9 = vadd.f32 %v2049_v13, %v686_v5  ;;  %v815_v10 = vadd.f32 %v2049_v13, %v814_v6  ;;  %v688_v11 = vpop.f32.mrb[31].mxu0  ;;  %v816_v12 = vpop.f32.mrb[31].mxu1 }
 0x14b   : > { %961 = vst.msk [vmem:[%s2055_s12 + $0x70] sm:$0xff] %vm946_vm1, %v896_v7  ;;  %993 = vst.msk [vmem:[%s2055_s12 + $0x170] sm:$0xff] %vm946_vm1, %v928_v8  ;;  %v897_v14 = vmax.f32 %v687_v9, 0.0  ;;  %v929_v15 = vmax.f32 %v815_v10, 0.0 }
 0x14d   : > { %962 = vst.msk [vmem:[%s2055_s12 + $0x78] sm:$0xff] %vm946_vm1, %v897_v14  ;;  %994 = vst.msk [vmem:[%s2055_s12 + $0x178] sm:$0xff] %vm946_vm1, %v929_v15 }
 0x14e   : > { %v691_v16 = vpop.f32.mrb[32].mxu0  ;;  %v819_v17 = vpop.f32.mrb[32].mxu1 }
 0x14f   : > { %v692_v18 = vadd.f32 %v2049_v13, %v691_v16  ;;  %v820_v19 = vadd.f32 %v2049_v13, %v819_v17  ;;  %v693_v20 = vpop.f32.mrb[33].mxu0  ;;  %v821_v21 = vpop.f32.mrb[33].mxu1 }
 0x150   : > { %v694_v22 = vpop.f32.mrb[34].mxu0  ;;  %v822_v23 = vpop.f32.mrb[34].mxu1 }
 0x151   : > { %v898_v24 = vmax.f32 %v692_v18, 0.0  ;;  %v930_v25 = vmax.f32 %v820_v19, 0.0  ;;  %v695_v26 = vadd.f32 %v2049_v13, %v694_v22  ;;  %v823_v27 = vadd.f32 %v2049_v13, %v822_v23  ;;  %v696_v28 = vpop.f32.mrb[35].mxu0  ;;  %v824_v29 = vpop.f32.mrb[35].mxu1 }
 0x153   : > { %963 = vst.msk [vmem:[%s2055_s12 + $0x80] sm:$0xff] %vm946_vm1, %v898_v24  ;;  %995 = vst.msk [vmem:[%s2055_s12 + $0x180] sm:$0xff] %vm946_vm1, %v930_v25  ;;  %v899_v30 = vmax.f32 %v695_v26, 0.0  ;;  %v931_v31 = vmax.f32 %v823_v27, 0.0 }
 0x155   : > { %964 = vst.msk [vmem:[%s2055_s12 + $0x88] sm:$0xff] %vm946_vm1, %v899_v30  ;;  %996 = vst.msk [vmem:[%s2055_s12 + $0x188] sm:$0xff] %vm946_vm1, %v931_v31 }
 0x156   : > { %v699_v32 = vpop.f32.mrb[36].mxu0  ;;  %v827_v33 = vpop.f32.mrb[36].mxu1 }
 0x157   : > { %v700_v34 = vadd.f32 %v2049_v13, %v699_v32  ;;  %v828_v35 = vadd.f32 %v2049_v13, %v827_v33  ;;  %v701_v36 = vpop.f32.mrb[37].mxu0  ;;  %v829_v37 = vpop.f32.mrb[37].mxu1 }
 0x158   : > { %v702_v38 = vpop.f32.mrb[38].mxu0  ;;  %v830_v39 = vpop.f32.mrb[38].mxu1 }
 0x159   : > { %v900_v40 = vmax.f32 %v700_v34, 0.0  ;;  %v932_v41 = vmax.f32 %v828_v35, 0.0  ;;  %v703_v42 = vadd.f32 %v2049_v13, %v702_v38  ;;  %v831_v43 = vadd.f32 %v2049_v13, %v830_v39  ;;  %v704_v44 = vpop.f32.mrb[39].mxu0  ;;  %v832_v45 = vpop.f32.mrb[39].mxu1 }
 0x15b   : > { %965 = vst.msk [vmem:[%s2055_s12 + $0x90] sm:$0xff] %vm946_vm1, %v900_v40  ;;  %997 = vst.msk [vmem:[%s2055_s12 + $0x190] sm:$0xff] %vm946_vm1, %v932_v41  ;;  %v901_v46 = vmax.f32 %v703_v42, 0.0  ;;  %v933_v47 = vmax.f32 %v831_v43, 0.0 }
 0x15d   : > { %966 = vst.msk [vmem:[%s2055_s12 + $0x98] sm:$0xff] %vm946_vm1, %v901_v46  ;;  %998 = vst.msk [vmem:[%s2055_s12 + $0x198] sm:$0xff] %vm946_vm1, %v933_v47 }
 0x15e   : > { %v707_v48 = vpop.f32.mrb[40].mxu0  ;;  %v835_v49 = vpop.f32.mrb[40].mxu1 }
 0x15f   : > { %v708_v50 = vadd.f32 %v2049_v13, %v707_v48  ;;  %v836_v51 = vadd.f32 %v2049_v13, %v835_v49  ;;  %v709_v52 = vpop.f32.mrb[41].mxu0  ;;  %v837_v53 = vpop.f32.mrb[41].mxu1 }
 0x160   : > { %v710_v54 = vpop.f32.mrb[42].mxu0  ;;  %v838_v55 = vpop.f32.mrb[42].mxu1 }
 0x161   : > { %v902_v56 = vmax.f32 %v708_v50, 0.0  ;;  %v934_v57 = vmax.f32 %v836_v51, 0.0  ;;  %v711_v58 = vadd.f32 %v2049_v13, %v710_v54  ;;  %v839_v59 = vadd.f32 %v2049_v13, %v838_v55  ;;  %v712_v60 = vpop.f32.mrb[43].mxu0  ;;  %v840_v61 = vpop.f32.mrb[43].mxu1 }
 0x163   : > { %967 = vst.msk [vmem:[%s2055_s12 + $0xa0] sm:$0xff] %vm946_vm1, %v902_v56  ;;  %999 = vst.msk [vmem:[%s2055_s12 + $0x1a0] sm:$0xff] %vm946_vm1, %v934_v57  ;;  %v903_v62 = vmax.f32 %v711_v58, 0.0  ;;  %v935_v63 = vmax.f32 %v839_v59, 0.0 }
 0x165   : > { %968 = vst.msk [vmem:[%s2055_s12 + $0xa8] sm:$0xff] %vm946_vm1, %v903_v62  ;;  %1000 = vst.msk [vmem:[%s2055_s12 + $0x1a8] sm:$0xff] %vm946_vm1, %v935_v63 }
 0x166   : > { %v715_v0 = vpop.f32.mrb[44].mxu0  ;;  %v843_v1 = vpop.f32.mrb[44].mxu1 }
 0x167   : > { %v716_v2 = vadd.f32 %v2049_v13, %v715_v0  ;;  %v844_v3 = vadd.f32 %v2049_v13, %v843_v1  ;;  %v717_v4 = vpop.f32.mrb[45].mxu0  ;;  %v845_v5 = vpop.f32.mrb[45].mxu1 }
 0x168   : > { %v718_v6 = vpop.f32.mrb[46].mxu0  ;;  %v846_v7 = vpop.f32.mrb[46].mxu1 }
 0x169   : > { %v904_v8 = vmax.f32 %v716_v2, 0.0  ;;  %v936_v9 = vmax.f32 %v844_v3, 0.0  ;;  %v719_v10 = vadd.f32 %v2049_v13, %v718_v6  ;;  %v847_v11 = vadd.f32 %v2049_v13, %v846_v7  ;;  %v720_v12 = vpop.f32.mrb[47].mxu0  ;;  %v848_v14 = vpop.f32.mrb[47].mxu1 }
 0x16b   : > { %969 = vst.msk [vmem:[%s2055_s12 + $0xb0] sm:$0xff] %vm946_vm1, %v904_v8  ;;  %1001 = vst.msk [vmem:[%s2055_s12 + $0x1b0] sm:$0xff] %vm946_vm1, %v936_v9  ;;  %v905_v15 = vmax.f32 %v719_v10, 0.0  ;;  %v937_v16 = vmax.f32 %v847_v11, 0.0 }
 0x16d   : > { %970 = vst.msk [vmem:[%s2055_s12 + $0xb8] sm:$0xff] %vm946_vm1, %v905_v15  ;;  %1002 = vst.msk [vmem:[%s2055_s12 + $0x1b8] sm:$0xff] %vm946_vm1, %v937_v16 }
 0x16e   : > { %v723_v17 = vpop.f32.mrb[48].mxu0  ;;  %v851_v18 = vpop.f32.mrb[48].mxu1 }
 0x16f   : > { %v724_v19 = vadd.f32 %v2049_v13, %v723_v17  ;;  %v852_v20 = vadd.f32 %v2049_v13, %v851_v18  ;;  %v725_v21 = vpop.f32.mrb[49].mxu0  ;;  %v853_v22 = vpop.f32.mrb[49].mxu1 }
 0x170   : > { %v726_v23 = vpop.f32.mrb[50].mxu0  ;;  %v854_v24 = vpop.f32.mrb[50].mxu1 }
 0x171   : > { %v906_v25 = vmax.f32 %v724_v19, 0.0  ;;  %v938_v26 = vmax.f32 %v852_v20, 0.0  ;;  %v727_v27 = vadd.f32 %v2049_v13, %v726_v23  ;;  %v855_v28 = vadd.f32 %v2049_v13, %v854_v24  ;;  %v728_v29 = vpop.f32.mrb[51].mxu0  ;;  %v856_v30 = vpop.f32.mrb[51].mxu1 }
 0x173   : > { %971 = vst.msk [vmem:[%s2055_s12 + $0xc0] sm:$0xff] %vm946_vm1, %v906_v25  ;;  %1003 = vst.msk [vmem:[%s2055_s12 + $0x1c0] sm:$0xff] %vm946_vm1, %v938_v26  ;;  %v907_v31 = vmax.f32 %v727_v27, 0.0  ;;  %v939_v32 = vmax.f32 %v855_v28, 0.0 }
 0x175   : > { %972 = vst.msk [vmem:[%s2055_s12 + $0xc8] sm:$0xff] %vm946_vm1, %v907_v31  ;;  %1004 = vst.msk [vmem:[%s2055_s12 + $0x1c8] sm:$0xff] %vm946_vm1, %v939_v32 }
 0x176   : > { %v731_v33 = vpop.f32.mrb[52].mxu0  ;;  %v859_v34 = vpop.f32.mrb[52].mxu1 }
 0x177   : > { %v732_v35 = vadd.f32 %v2049_v13, %v731_v33  ;;  %v860_v36 = vadd.f32 %v2049_v13, %v859_v34  ;;  %v733_v37 = vpop.f32.mrb[53].mxu0  ;;  %v861_v38 = vpop.f32.mrb[53].mxu1 }
 0x178   : > { %v734_v39 = vpop.f32.mrb[54].mxu0  ;;  %v862_v40 = vpop.f32.mrb[54].mxu1 }
 0x179   : > { %v908_v41 = vmax.f32 %v732_v35, 0.0  ;;  %v940_v42 = vmax.f32 %v860_v36, 0.0  ;;  %v735_v43 = vadd.f32 %v2049_v13, %v734_v39  ;;  %v863_v44 = vadd.f32 %v2049_v13, %v862_v40  ;;  %v736_v45 = vpop.f32.mrb[55].mxu0  ;;  %v864_v46 = vpop.f32.mrb[55].mxu1 }
 0x17b   : > { %973 = vst.msk [vmem:[%s2055_s12 + $0xd0] sm:$0xff] %vm946_vm1, %v908_v41  ;;  %1005 = vst.msk [vmem:[%s2055_s12 + $0x1d0] sm:$0xff] %vm946_vm1, %v940_v42  ;;  %v909_v47 = vmax.f32 %v735_v43, 0.0  ;;  %v941_v48 = vmax.f32 %v863_v44, 0.0 }
 0x17d   : > { %974 = vst.msk [vmem:[%s2055_s12 + $0xd8] sm:$0xff] %vm946_vm1, %v909_v47  ;;  %1006 = vst.msk [vmem:[%s2055_s12 + $0x1d8] sm:$0xff] %vm946_vm1, %v941_v48 }
 0x17e   : > { %v739_v49 = vpop.f32.mrb[56].mxu0  ;;  %v867_v50 = vpop.f32.mrb[56].mxu1 }
 0x17f   : > { %v740_v51 = vadd.f32 %v2049_v13, %v739_v49  ;;  %v868_v52 = vadd.f32 %v2049_v13, %v867_v50  ;;  %v741_v53 = vpop.f32.mrb[57].mxu0  ;;  %v869_v54 = vpop.f32.mrb[57].mxu1 }
 0x180   : > { %v742_v55 = vpop.f32.mrb[58].mxu0  ;;  %v870_v56 = vpop.f32.mrb[58].mxu1 }
 0x181   : > { %v910_v57 = vmax.f32 %v740_v51, 0.0  ;;  %v942_v58 = vmax.f32 %v868_v52, 0.0  ;;  %v743_v59 = vadd.f32 %v2049_v13, %v742_v55  ;;  %v871_v60 = vadd.f32 %v2049_v13, %v870_v56  ;;  %v744_v61 = vpop.f32.mrb[59].mxu0  ;;  %v872_v62 = vpop.f32.mrb[59].mxu1 }
 0x183   : > { %975 = vst.msk [vmem:[%s2055_s12 + $0xe0] sm:$0xff] %vm946_vm1, %v910_v57  ;;  %1007 = vst.msk [vmem:[%s2055_s12 + $0x1e0] sm:$0xff] %vm946_vm1, %v942_v58  ;;  %v911_v63 = vmax.f32 %v743_v59, 0.0  ;;  %v943_v0 = vmax.f32 %v871_v60, 0.0 }
 0x185   : > { %976 = vst.msk [vmem:[%s2055_s12 + $0xe8] sm:$0xff] %vm946_vm1, %v911_v63  ;;  %1008 = vst.msk [vmem:[%s2055_s12 + $0x1e8] sm:$0xff] %vm946_vm1, %v943_v0 }
 0x186   : > { %v747_v1 = vpop.f32.mrb[60].mxu0  ;;  %v875_v2 = vpop.f32.mrb[60].mxu1 }
 0x187   : > { %v748_v3 = vadd.f32 %v2049_v13, %v747_v1  ;;  %v876_v4 = vadd.f32 %v2049_v13, %v875_v2  ;;  %v749_v5 = vpop.f32.mrb[61].mxu0  ;;  %v877_v6 = vpop.f32.mrb[61].mxu1  ;;  %1017 = sbr.rel (!%p1811_p4) target bundleno = 470 (0x1d6), region = 36 }
 0x188   : > { %v750_v7 = vpop.f32.mrb[62].mxu0  ;;  %v878_v8 = vpop.f32.mrb[62].mxu1 }
 0x189   : > { %v912_v9 = vmax.f32 %v748_v3, 0.0  ;;  %v944_v10 = vmax.f32 %v876_v4, 0.0  ;;  %v751_v11 = vadd.f32 %v2049_v13, %v750_v7  ;;  %v879_v12 = vadd.f32 %v2049_v13, %v878_v8  ;;  %v752_v14 = vpop.f32.mrb[63].mxu0  ;;  %v880_v15 = vpop.f32.mrb[63].mxu1 }
 0x18b   : > { %977 = vst.msk [vmem:[%s2055_s12 + $0xf0] sm:$0xff] %vm946_vm1, %v912_v9  ;;  %1009 = vst.msk [vmem:[%s2055_s12 + $0x1f0] sm:$0xff] %vm946_vm1, %v944_v10  ;;  %v913_v16 = vmax.f32 %v751_v11, 0.0  ;;  %v945_v17 = vmax.f32 %v879_v12, 0.0 }
 0x18d   : > { %978 = vst.msk [vmem:[%s2055_s12 + $0xf8] sm:$0xff] %vm946_vm1, %v913_v16  ;;  %1010 = vst.msk [vmem:[%s2055_s12 + $0x1f8] sm:$0xff] %vm946_vm1, %v945_v17 }
 0x18e   : > { %s2465_s5 = smov (!%p1020_p8, %s1019_s5), 64 }
 0x18f   : > { %s1533_s17 = sshll.u32 %s2465_s5, 7 }
 0x190   : > { %p1536_p9 = scmp.eq.s32.totalorder %s1533_s17, 0 }
 0x191   : > { %s2258_s18 = sshrl.u32 (!%p1536_p9), %s2465_s5, 6 }
 0x192   : > { %1028 = sbr.rel (%p1536_p9) target bundleno = 470 (0x1d6), region = 40  ;;  %p1537_p10 = scmp.le.s32.totalorder (!%p1536_p9), %s2258_s18, 0 }
 0x199   : > { %1434 = sbr.rel (%p1537_p10) target bundleno = 449 (0x1c1), region = 116  ;;  %s2456_s15 = smov (!%p1537_p10), %s2252_s14 }
 0x19a   : > { %s2457_s20 = smov (!%p1537_p10), %s2055_s12  ;;  %s2267_s23 = smov (!%p1537_p10), 0  }
 0x19b   : > { %s2269_s21 = smov (!%p1537_p10), 0  }
 0x1a0 LB: >> { %v1216_v13 = vld [vmem:[%s1739_s20] sm:$0xff]  ;;  %v1218_v18 = vld [vmem:[%s1739_s20 + $0x8] sm:$0xff]  ;;  %v1220_v19 = vld [vmem:[%s1739_s20 + $0x10] sm:$0xff]  ;;  %s1344_s22 = sadd.s32 1, %s1743_s23  ;;  %s1210_s21 = sadd.s32 1, %s1747_s21   ;;  %s1747_s21 = sphi %s2269_s21, %s1210_s21   ;;  %s1743_s23 = sphi %s2267_s23, %s2460_s23   ;;  %s1739_s20 = sphi %s2457_s20, %s2459_s20   ;;  %s1735_s15 = sphi %s2456_s15, %s2458_s15  }
 0x1a1   : >> { %1217 = vst [vmem:[%s1735_s15] sm:$0xff] %v1216_v13  ;;  %1219 = vst [vmem:[%s1735_s15 + $0x8] sm:$0xff] %v1218_v18  ;;  %v1222_v20 = vld [vmem:[%s1739_s20 + $0x18] sm:$0xff]  ;;  %v1224_v21 = vld [vmem:[%s1739_s20 + $0x20] sm:$0xff]  ;;  %p1345_p11 = scmp.ge.s32.totalorder %s1344_s22, %s2258_s18  ;;  %p1209_p12 = scmp.ge.s32.totalorder %s1210_s21, %s2258_s18 }
 0x1a2   : >> { %1221 = vst [vmem:[%s1735_s15 + $0x10] sm:$0xff] %v1220_v19  ;;  %v1226_v22 = vld [vmem:[%s1739_s20 + $0x28] sm:$0xff]  ;;  %1223 = vst [vmem:[%s1735_s15 + $0x18] sm:$0xff] %v1222_v20  ;;  %v1228_v23 = vld [vmem:[%s1739_s20 + $0x30] sm:$0xff] }
 0x1a3   : >> { %1225 = vst [vmem:[%s1735_s15 + $0x20] sm:$0xff] %v1224_v21  ;;  %1227 = vst [vmem:[%s1735_s15 + $0x28] sm:$0xff] %v1226_v22  ;;  %v1230_v24 = vld [vmem:[%s1739_s20 + $0x38] sm:$0xff]  ;;  %v1232_v25 = vld [vmem:[%s1739_s20 + $0x40] sm:$0xff]  ;;  %s2467_s22 = smov (%p1345_p11, %s1344_s22), 0 }
 0x1a4   : >> { %1229 = vst [vmem:[%s1735_s15 + $0x30] sm:$0xff] %v1228_v23  ;;  %1231 = vst [vmem:[%s1735_s15 + $0x38] sm:$0xff] %v1230_v24  ;;  %v1234_v26 = vld [vmem:[%s1739_s20 + $0x48] sm:$0xff]  ;;  %v1236_v27 = vld [vmem:[%s1739_s20 + $0x50] sm:$0xff]  ;;  %s1538_s24 = sshll.u32 %s2467_s22, 9  ;;  %s2460_s23 = smov %s2467_s22 }
 0x1a5   : >> { %1233 = vst [vmem:[%s1735_s15 + $0x40] sm:$0xff] %v1232_v25  ;;  %v1238_v28 = vld [vmem:[%s1739_s20 + $0x58] sm:$0xff]  ;;  %1235 = vst [vmem:[%s1735_s15 + $0x48] sm:$0xff] %v1234_v26  ;;  %v1240_v29 = vld [vmem:[%s1739_s20 + $0x60] sm:$0xff]  ;;  %s2325_s25 = scalar_lea.vmem %s2055_s12, %s1538_s24 [#allocation2]   ;;  %s2328_s26 = scalar_lea.vmem %s2252_s14, %s1538_s24  }
 0x1a6   : >> { %1237 = vst [vmem:[%s1735_s15 + $0x50] sm:$0xff] %v1236_v27  ;;  %1239 = vst [vmem:[%s1735_s15 + $0x58] sm:$0xff] %v1238_v28  ;;  %v1242_v30 = vld [vmem:[%s1739_s20 + $0x68] sm:$0xff]  ;;  %v1244_v31 = vld [vmem:[%s1739_s20 + $0x70] sm:$0xff] }
 0x1a7   : >> { %1241 = vst [vmem:[%s1735_s15 + $0x60] sm:$0xff] %v1240_v29  ;;  %1243 = vst [vmem:[%s1735_s15 + $0x68] sm:$0xff] %v1242_v30  ;;  %v1246_v32 = vld [vmem:[%s1739_s20 + $0x78] sm:$0xff]  ;;  %v1248_v33 = vld [vmem:[%s1739_s20 + $0x80] sm:$0xff] }
 0x1a8   : >> { %1245 = vst [vmem:[%s1735_s15 + $0x70] sm:$0xff] %v1244_v31  ;;  %v1250_v34 = vld [vmem:[%s1739_s20 + $0x88] sm:$0xff]  ;;  %1247 = vst [vmem:[%s1735_s15 + $0x78] sm:$0xff] %v1246_v32  ;;  %v1252_v35 = vld [vmem:[%s1739_s20 + $0x90] sm:$0xff] }
 0x1a9   : >> { %1249 = vst [vmem:[%s1735_s15 + $0x80] sm:$0xff] %v1248_v33  ;;  %1251 = vst [vmem:[%s1735_s15 + $0x88] sm:$0xff] %v1250_v34  ;;  %v1254_v36 = vld [vmem:[%s1739_s20 + $0x98] sm:$0xff]  ;;  %v1256_v37 = vld [vmem:[%s1739_s20 + $0xa0] sm:$0xff] }
 0x1aa   : >> { %1253 = vst [vmem:[%s1735_s15 + $0x90] sm:$0xff] %v1252_v35  ;;  %1255 = vst [vmem:[%s1735_s15 + $0x98] sm:$0xff] %v1254_v36  ;;  %v1258_v38 = vld [vmem:[%s1739_s20 + $0xa8] sm:$0xff]  ;;  %v1260_v39 = vld [vmem:[%s1739_s20 + $0xb0] sm:$0xff] }
 0x1ab   : >> { %1257 = vst [vmem:[%s1735_s15 + $0xa0] sm:$0xff] %v1256_v37  ;;  %v1262_v40 = vld [vmem:[%s1739_s20 + $0xb8] sm:$0xff]  ;;  %1259 = vst [vmem:[%s1735_s15 + $0xa8] sm:$0xff] %v1258_v38  ;;  %v1264_v41 = vld [vmem:[%s1739_s20 + $0xc0] sm:$0xff] }
 0x1ac   : >> { %1261 = vst [vmem:[%s1735_s15 + $0xb0] sm:$0xff] %v1260_v39  ;;  %1263 = vst [vmem:[%s1735_s15 + $0xb8] sm:$0xff] %v1262_v40  ;;  %v1266_v42 = vld [vmem:[%s1739_s20 + $0xc8] sm:$0xff]  ;;  %v1268_v43 = vld [vmem:[%s1739_s20 + $0xd0] sm:$0xff] }
 0x1ad   : >> { %1265 = vst [vmem:[%s1735_s15 + $0xc0] sm:$0xff] %v1264_v41  ;;  %1267 = vst [vmem:[%s1735_s15 + $0xc8] sm:$0xff] %v1266_v42  ;;  %v1270_v44 = vld [vmem:[%s1739_s20 + $0xd8] sm:$0xff]  ;;  %v1272_v45 = vld [vmem:[%s1739_s20 + $0xe0] sm:$0xff] }
 0x1ae   : >> { %1269 = vst [vmem:[%s1735_s15 + $0xd0] sm:$0xff] %v1268_v43  ;;  %v1274_v46 = vld [vmem:[%s1739_s20 + $0xe8] sm:$0xff]  ;;  %1271 = vst [vmem:[%s1735_s15 + $0xd8] sm:$0xff] %v1270_v44  ;;  %v1276_v47 = vld [vmem:[%s1739_s20 + $0xf0] sm:$0xff] }
 0x1af   : >> { %1273 = vst [vmem:[%s1735_s15 + $0xe0] sm:$0xff] %v1272_v45  ;;  %1275 = vst [vmem:[%s1735_s15 + $0xe8] sm:$0xff] %v1274_v46  ;;  %v1278_v48 = vld [vmem:[%s1739_s20 + $0xf8] sm:$0xff]  ;;  %v1280_v49 = vld [vmem:[%s1739_s20 + $0x100] sm:$0xff] }
 0x1b0   : >> { %1277 = vst [vmem:[%s1735_s15 + $0xf0] sm:$0xff] %v1276_v47  ;;  %1279 = vst [vmem:[%s1735_s15 + $0xf8] sm:$0xff] %v1278_v48  ;;  %v1282_v50 = vld [vmem:[%s1739_s20 + $0x108] sm:$0xff]  ;;  %v1284_v51 = vld [vmem:[%s1739_s20 + $0x110] sm:$0xff] }
 0x1b1   : >> { %1281 = vst [vmem:[%s1735_s15 + $0x100] sm:$0xff] %v1280_v49  ;;  %v1286_v52 = vld [vmem:[%s1739_s20 + $0x118] sm:$0xff]  ;;  %1283 = vst [vmem:[%s1735_s15 + $0x108] sm:$0xff] %v1282_v50  ;;  %v1288_v53 = vld [vmem:[%s1739_s20 + $0x120] sm:$0xff] }
 0x1b2   : >> { %1285 = vst [vmem:[%s1735_s15 + $0x110] sm:$0xff] %v1284_v51  ;;  %1287 = vst [vmem:[%s1735_s15 + $0x118] sm:$0xff] %v1286_v52  ;;  %v1290_v54 = vld [vmem:[%s1739_s20 + $0x128] sm:$0xff]  ;;  %v1292_v55 = vld [vmem:[%s1739_s20 + $0x130] sm:$0xff] }
 0x1b3   : >> { %1289 = vst [vmem:[%s1735_s15 + $0x120] sm:$0xff] %v1288_v53  ;;  %1291 = vst [vmem:[%s1735_s15 + $0x128] sm:$0xff] %v1290_v54  ;;  %v1294_v56 = vld [vmem:[%s1739_s20 + $0x138] sm:$0xff]  ;;  %v1296_v57 = vld [vmem:[%s1739_s20 + $0x140] sm:$0xff] }
 0x1b4   : >> { %1293 = vst [vmem:[%s1735_s15 + $0x130] sm:$0xff] %v1292_v55  ;;  %v1298_v58 = vld [vmem:[%s1739_s20 + $0x148] sm:$0xff]  ;;  %1295 = vst [vmem:[%s1735_s15 + $0x138] sm:$0xff] %v1294_v56  ;;  %v1300_v59 = vld [vmem:[%s1739_s20 + $0x150] sm:$0xff] }
 0x1b5   : >> { %1297 = vst [vmem:[%s1735_s15 + $0x140] sm:$0xff] %v1296_v57  ;;  %1299 = vst [vmem:[%s1735_s15 + $0x148] sm:$0xff] %v1298_v58  ;;  %v1302_v60 = vld [vmem:[%s1739_s20 + $0x158] sm:$0xff]  ;;  %v1304_v61 = vld [vmem:[%s1739_s20 + $0x160] sm:$0xff] }
 0x1b6   : >> { %1301 = vst [vmem:[%s1735_s15 + $0x150] sm:$0xff] %v1300_v59  ;;  %1303 = vst [vmem:[%s1735_s15 + $0x158] sm:$0xff] %v1302_v60  ;;  %v1306_v62 = vld [vmem:[%s1739_s20 + $0x168] sm:$0xff]  ;;  %v1308_v63 = vld [vmem:[%s1739_s20 + $0x170] sm:$0xff] }
 0x1b7   : >> { %1305 = vst [vmem:[%s1735_s15 + $0x160] sm:$0xff] %v1304_v61  ;;  %v1310_v0 = vld [vmem:[%s1739_s20 + $0x178] sm:$0xff]  ;;  %1307 = vst [vmem:[%s1735_s15 + $0x168] sm:$0xff] %v1306_v62  ;;  %v1312_v1 = vld [vmem:[%s1739_s20 + $0x180] sm:$0xff] }
 0x1b8   : >> { %1309 = vst [vmem:[%s1735_s15 + $0x170] sm:$0xff] %v1308_v63  ;;  %1311 = vst [vmem:[%s1735_s15 + $0x178] sm:$0xff] %v1310_v0  ;;  %v1314_v2 = vld [vmem:[%s1739_s20 + $0x188] sm:$0xff]  ;;  %v1316_v3 = vld [vmem:[%s1739_s20 + $0x190] sm:$0xff] }
 0x1b9   : >> { %1313 = vst [vmem:[%s1735_s15 + $0x180] sm:$0xff] %v1312_v1  ;;  %1315 = vst [vmem:[%s1735_s15 + $0x188] sm:$0xff] %v1314_v2  ;;  %v1318_v4 = vld [vmem:[%s1739_s20 + $0x198] sm:$0xff]  ;;  %v1320_v5 = vld [vmem:[%s1739_s20 + $0x1a0] sm:$0xff] }
 0x1ba   : >> { %1317 = vst [vmem:[%s1735_s15 + $0x190] sm:$0xff] %v1316_v3  ;;  %v1322_v6 = vld [vmem:[%s1739_s20 + $0x1a8] sm:$0xff]  ;;  %1319 = vst [vmem:[%s1735_s15 + $0x198] sm:$0xff] %v1318_v4  ;;  %v1324_v7 = vld [vmem:[%s1739_s20 + $0x1b0] sm:$0xff]  ;;  %1212 = sbr.rel (!%p1209_p12) target bundleno = 416 (0x1a0), region = 122 }
 0x1bb   : >> { %1321 = vst [vmem:[%s1735_s15 + $0x1a0] sm:$0xff] %v1320_v5  ;;  %1323 = vst [vmem:[%s1735_s15 + $0x1a8] sm:$0xff] %v1322_v6  ;;  %v1326_v8 = vld [vmem:[%s1739_s20 + $0x1b8] sm:$0xff]  ;;  %v1328_v9 = vld [vmem:[%s1739_s20 + $0x1c0] sm:$0xff] }
 0x1bc   : >> { %1325 = vst [vmem:[%s1735_s15 + $0x1b0] sm:$0xff] %v1324_v7  ;;  %1327 = vst [vmem:[%s1735_s15 + $0x1b8] sm:$0xff] %v1326_v8  ;;  %v1330_v10 = vld [vmem:[%s1739_s20 + $0x1c8] sm:$0xff]  ;;  %v1332_v11 = vld [vmem:[%s1739_s20 + $0x1d0] sm:$0xff] }
 0x1bd   : >> { %1329 = vst [vmem:[%s1735_s15 + $0x1c0] sm:$0xff] %v1328_v9  ;;  %v1334_v12 = vld [vmem:[%s1739_s20 + $0x1d8] sm:$0xff]  ;;  %1331 = vst [vmem:[%s1735_s15 + $0x1c8] sm:$0xff] %v1330_v10  ;;  %v1336_v14 = vld [vmem:[%s1739_s20 + $0x1e0] sm:$0xff] }
 0x1be   : >> { %1333 = vst [vmem:[%s1735_s15 + $0x1d0] sm:$0xff] %v1332_v11  ;;  %1335 = vst [vmem:[%s1735_s15 + $0x1d8] sm:$0xff] %v1334_v12  ;;  %v1338_v15 = vld [vmem:[%s1739_s20 + $0x1e8] sm:$0xff]  ;;  %v1340_v16 = vld [vmem:[%s1739_s20 + $0x1f0] sm:$0xff] }
 0x1bf   : >> { %1337 = vst [vmem:[%s1735_s15 + $0x1e0] sm:$0xff] %v1336_v14  ;;  %1339 = vst [vmem:[%s1735_s15 + $0x1e8] sm:$0xff] %v1338_v15  ;;  %v1342_v17 = vld [vmem:[%s1739_s20 + $0x1f8] sm:$0xff]  ;;  %s2459_s20 = smov %s2325_s25 }
 0x1c0   : >> { %1341 = vst [vmem:[%s1735_s15 + $0x1f0] sm:$0xff] %v1340_v16  ;;  %1343 = vst [vmem:[%s1735_s15 + $0x1f8] sm:$0xff] %v1342_v17  ;;  %s2458_s15 = smov %s2328_s26 }
 0x1c1 PF: > { %s2433_s27 = sand.u32 63, %s2465_s5   ;;  %s1550_s28 = sshll.u32 %s2258_s18, 9 }
 0x1c2   : > { %s1355_s29 = scalar_lea.vmem %s2055_s12, %s1550_s28 [#allocation2]   ;;  %s1357_s30 = scalar_lea.vmem %s2252_s14, %s1550_s28  }
 0x1c3   : > { %p1543_p13 = scmp.le.s32.totalorder %s2433_s27, 0 }
 0x1c4   : > { %s1749_s4 = smov (!%p1543_p13), %s1357_s30   ;;  %s1753_s6 = smov (!%p1543_p13), %s1355_s29  }
 0x1c5   : > { %1448 = sbr.rel (%p1543_p13) target bundleno = 470 (0x1d6), region = 127  ;;  %s1757_s7 = smov (!%p1543_p13), 0  }
 0x1c6   : > { %s1761_s8 = smov (!%p1543_p13), 0  }
 0x1cc LB: >> { %v1367_v13 = vld [vmem:[%s1755_s6] sm:$0xff]  ;;  %s1369_s5 = sadd.s32 1, %s1759_s7  ;;  %s1361_s8 = sadd.s32 1, %s1763_s8   ;;  %s1763_s8 = sphi %s1761_s8, %s1361_s8   ;;  %s1759_s7 = sphi %s1757_s7, %s1758_s7   ;;  %s1755_s6 = sphi %s1753_s6, %s1374_s6   ;;  %s1751_s4 = sphi %s1749_s4, %s1375_s4  }
 0x1cd   : >> { %1368 = vst [vmem:[%s1751_s4] sm:$0xff] %v1367_v13  ;;  %p1370_p0 = scmp.ge.s32.totalorder %s1369_s5, %s2433_s27  ;;  %p1360_p1 = scmp.ge.s32.totalorder %s1361_s8, %s2433_s27 }
 0x1cf   : >> { %s2469_s5 = smov (%p1370_p0, %s1369_s5), 0  ;;  %1363 = sbr.rel (!%p1360_p1) target bundleno = 460 (0x1cc), region = 133 }
 0x1d0   : >> { %s1544_s12 = sshll.u32 %s2469_s5, 3  ;;  %s1758_s7 = smov %s2469_s5  }
 0x1d1   : >> { %s1374_s6 = scalar_lea.vmem %s1355_s29, %s1544_s12 [#allocation2]   ;;  %s1375_s4 = scalar_lea.vmem %s1357_s30, %s1544_s12  }
 0x1d6 PF: > { %p10_p2 = scmp.ge.s32.totalorder %s1801_s16, 4   ;;  %s2461_s12 = smov %s1727_s13 }
 0x1d7   : > { %s2462_s13 = smov %s1809_s19  ;;  %s2463_s14 = smov %s1801_s16 }
 0x1d8   :  { %12 = sbr.rel (!%p10_p2) target bundleno = 2 (0x2), region = 144 }

// kernel: decision_transformer_forward.6
= control target key start
LH: loop header
LB: loop body
LE: loop exit
PB: predicated region body
PF: predicated region fallthrough
CT: control target
= control target key end

     0   :  { %vm547_vm0 = vcmask 523264   ;;  %vm560_vm1 = vcmask 519168   ;;  %s1088_s1 = inlined_call_operand.vmem [shape: bf16[512,64], index: 1, kind: input, shape index: {}]   ;;  %s1089_s0 = inlined_call_operand.vmem [shape: f32[100,512], index: 0, kind: input, shape index: {}]   ;;  %s1090_s2 = inlined_call_operand.vmem [shape: f32[1,64], index: 2, kind: input, shape index: {}]   ;;  %s1091_s3 = inlined_call_operand.vmem [shape: f32[100,64], index: 3, kind: output, shape index: {}]  }
   0x1   :  { %v715_v0 = vld [vmem:[%s1088_s1 + $0x40] sm:$0xff]   ;;  %v719_v4 = vld [vmem:[%s1088_s1 + $0x48] sm:$0xff]   ;;  %v723_v8 = vld [vmem:[%s1088_s1 + $0x50] sm:$0xff]  }
   0x2   :  { %v716_v1 = vld [vmem:[%s1088_s1 + $0xc0] sm:$0xff]   ;;  %599 = vmatprep.subr.bf16.mxu0 %v715_v0  ;;  %v720_v5 = vld [vmem:[%s1088_s1 + $0xc8] sm:$0xff]   ;;  %v724_v9 = vld [vmem:[%s1088_s1 + $0xd0] sm:$0xff]  }
   0x3   :  { %v717_v2 = vld [vmem:[%s1088_s1] sm:$0xff]   ;;  %657 = vmatprep.subr.bf16.mxu1 %v716_v1  ;;  %v721_v6 = vld [vmem:[%s1088_s1 + $0x8] sm:$0xff]   ;;  %v725_v10 = vld [vmem:[%s1088_s1 + $0x10] sm:$0xff]  }
   0x4   :  { %v718_v3 = vld [vmem:[%s1088_s1 + $0x80] sm:$0xff]   ;;  %600 = vmatpush3.bf16.msra.mxu0 %v717_v2  ;;  %v722_v7 = vld [vmem:[%s1088_s1 + $0x88] sm:$0xff]   ;;  %v726_v11 = vld [vmem:[%s1088_s1 + $0x90] sm:$0xff]  }
   0x5   :  { %658 = vmatpush3.bf16.msra.mxu1 %v718_v3  ;;  %601 = vmatprep.subr.bf16.mxu0 %v719_v4  ;;  %v727_v12 = vld [vmem:[%s1088_s1 + $0x58] sm:$0xff]   ;;  %v731_v16 = vld [vmem:[%s1088_s1 + $0x60] sm:$0xff]   ;;  %v735_v20 = vld [vmem:[%s1088_s1 + $0x68] sm:$0xff]  }
   0x6   :  { %659 = vmatprep.subr.bf16.mxu1 %v720_v5  ;;  %v728_v13 = vld [vmem:[%s1088_s1 + $0xd8] sm:$0xff]   ;;  %v732_v17 = vld [vmem:[%s1088_s1 + $0xe0] sm:$0xff]   ;;  %v736_v21 = vld [vmem:[%s1088_s1 + $0xe8] sm:$0xff]  }
   0x7   :  { %v729_v14 = vld [vmem:[%s1088_s1 + $0x18] sm:$0xff]   ;;  %v733_v18 = vld [vmem:[%s1088_s1 + $0x20] sm:$0xff]   ;;  %v737_v22 = vld [vmem:[%s1088_s1 + $0x28] sm:$0xff]  }
   0x8   :  { %602 = vmatpush3.bf16.msra.mxu0 %v721_v6  ;;  %v730_v15 = vld [vmem:[%s1088_s1 + $0x98] sm:$0xff]   ;;  %v734_v19 = vld [vmem:[%s1088_s1 + $0xa0] sm:$0xff]   ;;  %v738_v23 = vld [vmem:[%s1088_s1 + $0xa8] sm:$0xff]  }
   0x9   :  { %660 = vmatpush3.bf16.msra.mxu1 %v722_v7  ;;  %603 = vmatprep.subr.bf16.mxu0 %v723_v8  ;;  %v739_v24 = vld [vmem:[%s1088_s1 + $0x70] sm:$0xff]   ;;  %v743_v28 = vld [vmem:[%s1088_s1 + $0x78] sm:$0xff]   ;;  %v16_v32 = vld [vmem:[%s1089_s0 + $0x8] sm:$0xff] }
   0xa   :  { %661 = vmatprep.subr.bf16.mxu1 %v724_v9  ;;  %v740_v25 = vld [vmem:[%s1088_s1 + $0xf0] sm:$0xff]   ;;  %v744_v29 = vld [vmem:[%s1088_s1 + $0xf8] sm:$0xff]   ;;  %v20_v33 = vld [vmem:[%s1089_s0 + $0x28] sm:$0xff] }
   0xb   :  { %v741_v26 = vld [vmem:[%s1088_s1 + $0x30] sm:$0xff]   ;;  %v745_v30 = vld [vmem:[%s1088_s1 + $0x38] sm:$0xff]   ;;  %v68_v35 = vpack.c.bf16 %v20_v33, %v16_v32  ;;  %v15_v37 = vld [vmem:[%s1089_s0] sm:$0xff] }
   0xc   :  { %604 = vmatpush3.bf16.msra.mxu0 %v725_v10  ;;  %v742_v27 = vld [vmem:[%s1088_s1 + $0xb0] sm:$0xff]   ;;  %v746_v31 = vld [vmem:[%s1088_s1 + $0xb8] sm:$0xff]   ;;  %v19_v38 = vld [vmem:[%s1089_s0 + $0x20] sm:$0xff] }
   0xd   :  { %662 = vmatpush3.bf16.msra.mxu1 %v726_v11  ;;  %605 = vmatprep.subr.bf16.mxu0 %v727_v12  ;;  %v18_v34 = vld [vmem:[%s1089_s0 + $0x18] sm:$0xff]  ;;  %v67_v40 = vpack.c.bf16 %v19_v38, %v15_v37  ;;  %v17_v41 = vld [vmem:[%s1089_s0 + $0x10] sm:$0xff]  ;;  %v24_v43 = vld [vmem:[%s1089_s0 + $0x48] sm:$0xff] }
   0xe   :  { %663 = vmatprep.subr.bf16.mxu1 %v728_v13  ;;  %v22_v36 = vld [vmem:[%s1089_s0 + $0x38] sm:$0xff]  ;;  %v21_v42 = vld [vmem:[%s1089_s0 + $0x30] sm:$0xff]  ;;  %390 = vmatprep.mubr.bf16.mxu0 %v68_v35  ;;  %v28_v45 = vld [vmem:[%s1089_s0 + $0x68] sm:$0xff] }
   0xf   :  { %v70_v39 = vpack.c.bf16 %v22_v36, %v18_v34  ;;  %v69_v44 = vpack.c.bf16 %v21_v42, %v17_v41  ;;  %v26_v46 = vld [vmem:[%s1089_s0 + $0x58] sm:$0xff]  ;;  %v72_v48 = vpack.c.bf16 %v28_v45, %v24_v43  ;;  %v23_v50 = vld [vmem:[%s1089_s0 + $0x40] sm:$0xff]  ;;  %v25_v52 = vld [vmem:[%s1089_s0 + $0x50] sm:$0xff] }
  0x10   :  { %606 = vmatpush3.bf16.msra.mxu0 %v729_v14  ;;  %v30_v47 = vld [vmem:[%s1089_s0 + $0x78] sm:$0xff]  ;;  %v27_v51 = vld [vmem:[%s1089_s0 + $0x60] sm:$0xff]  ;;  %v29_v53 = vld [vmem:[%s1089_s0 + $0x70] sm:$0xff] }
  0x11   :  { %664 = vmatpush3.bf16.msra.mxu1 %v730_v15  ;;  %607 = vmatprep.subr.bf16.mxu0 %v731_v16  ;;  %v74_v49 = vpack.c.bf16 %v30_v47, %v26_v46  ;;  %v32_v54 = vld [vmem:[%s1089_s0 + $0x88] sm:$0xff]  ;;  %v34_v56 = vld [vmem:[%s1089_s0 + $0x98] sm:$0xff]  ;;  %v71_v58 = vpack.c.bf16 %v27_v51, %v23_v50  ;;  %v73_v59 = vpack.c.bf16 %v29_v53, %v25_v52  ;;  %v31_v62 = vld [vmem:[%s1089_s0 + $0x80] sm:$0xff] }
  0x12   :  { %665 = vmatprep.subr.bf16.mxu1 %v732_v17  ;;  %478 = vmatprep.mubr.bf16.mxu1 %v70_v39  ;;  %v36_v55 = vld [vmem:[%s1089_s0 + $0xa8] sm:$0xff]  ;;  %v38_v57 = vld [vmem:[%s1089_s0 + $0xb8] sm:$0xff]  ;;  %v35_v63 = vld [vmem:[%s1089_s0 + $0xa0] sm:$0xff] }
  0x13   :  { %v76_v60 = vpack.c.bf16 %v36_v55, %v32_v54  ;;  %v78_v61 = vpack.c.bf16 %v38_v57, %v34_v56  ;;  %v33_v0 = vld [vmem:[%s1089_s0 + $0x90] sm:$0xff]  ;;  %v40_v2 = vld [vmem:[%s1089_s0 + $0xc8] sm:$0xff]  ;;  %v42_v4 = vld [vmem:[%s1089_s0 + $0xd8] sm:$0xff]  ;;  %v75_v6 = vpack.c.bf16 %v35_v63, %v31_v62 }
  0x14   :  { %608 = vmatpush3.bf16.msra.mxu0 %v733_v18  ;;  %v37_v1 = vld [vmem:[%s1089_s0 + $0xb0] sm:$0xff]  ;;  %v44_v3 = vld [vmem:[%s1089_s0 + $0xe8] sm:$0xff]  ;;  %v46_v5 = vld [vmem:[%s1089_s0 + $0xf8] sm:$0xff] }
  0x15   :  { %666 = vmatpush3.bf16.msra.mxu1 %v734_v19  ;;  %609 = vmatprep.subr.bf16.mxu0 %v735_v20  ;;  %v77_v7 = vpack.c.bf16 %v37_v1, %v33_v0  ;;  %v80_v8 = vpack.c.bf16 %v44_v3, %v40_v2  ;;  %v82_v9 = vpack.c.bf16 %v46_v5, %v42_v4  ;;  %v39_v10 = vld [vmem:[%s1089_s0 + $0xc0] sm:$0xff]  ;;  %v41_v12 = vld [vmem:[%s1089_s0 + $0xd0] sm:$0xff]  ;;  %v48_v14 = vld [vmem:[%s1089_s0 + $0x108] sm:$0xff] }
  0x16   :  { %667 = vmatprep.subr.bf16.mxu1 %v736_v21  ;;  %v43_v11 = vld [vmem:[%s1089_s0 + $0xe0] sm:$0xff]  ;;  %v45_v13 = vld [vmem:[%s1089_s0 + $0xf0] sm:$0xff]  ;;  %v52_v15 = vld [vmem:[%s1089_s0 + $0x128] sm:$0xff] }
  0x17   :  { %v50_v16 = vld [vmem:[%s1089_s0 + $0x118] sm:$0xff]  ;;  %v79_v18 = vpack.c.bf16 %v43_v11, %v39_v10  ;;  %v81_v19 = vpack.c.bf16 %v45_v13, %v41_v12  ;;  %v84_v20 = vpack.c.bf16 %v52_v15, %v48_v14  ;;  %v55_v34 = vld [vmem:[%s1089_s0 + $0x140] sm:$0xff]  ;;  %v57_v36 = vld [vmem:[%s1089_s0 + $0x150] sm:$0xff] }
  0x18   :  { %610 = vmatpush3.bf16.msra.mxu0 %v737_v22  ;;  %v54_v17 = vld [vmem:[%s1089_s0 + $0x138] sm:$0xff]  ;;  %v47_v22 = vld [vmem:[%s1089_s0 + $0x100] sm:$0xff]  ;;  %v61_v37 = vld [vmem:[%s1089_s0 + $0x170] sm:$0xff] }
  0x19   :  { %668 = vmatpush3.bf16.msra.mxu1 %v738_v23  ;;  %611 = vmatprep.subr.bf16.mxu0 %v739_v24  ;;  %v86_v21 = vpack.c.bf16 %v54_v17, %v50_v16  ;;  %v51_v23 = vld [vmem:[%s1089_s0 + $0x120] sm:$0xff]  ;;  %v49_v24 = vld [vmem:[%s1089_s0 + $0x110] sm:$0xff]  ;;  %v64_v38 = vld [vmem:[%s1089_s0 + $0x188] sm:$0xf]  ;;  %v89_v41 = vpack.c.bf16 %v61_v37, %v57_v36 }
  0x1a   :  { %669 = vmatprep.subr.bf16.mxu1 %v740_v25  ;;  %v53_v25 = vld [vmem:[%s1089_s0 + $0x130] sm:$0xff]  ;;  %v59_v35 = vld [vmem:[%s1089_s0 + $0x160] sm:$0xff]  ;;  %v66_v39 = vld [vmem:[%s1089_s0 + $0x198] sm:$0xf]  ;;  %v92_v42 = vpack.c.bf16 %v64_v38, %v64_v38 }
  0x1b   :  { %v94_v43 = vpack.c.bf16 %v66_v39, %v66_v39  ;;  %v65_v45 = vld [vmem:[%s1089_s0 + $0x190] sm:$0xf]  ;;  %v1022_v50 = vld [vmem:[%s1090_s2] ss:$0 sm:$0xff] }
  0x1c   :  { %612 = vmatpush3.bf16.msra.mxu0 %v741_v26  ;;  %v56_v26 = vld [vmem:[%s1089_s0 + $0x148] sm:$0xff]  ;;  %v93_v47 = vpack.c.bf16 %v65_v45, %v65_v45 }
  0x1d   :  { %670 = vmatpush3.bf16.msra.mxu1 %v742_v27  ;;  %613 = vmatprep.subr.bf16.mxu0 %v743_v28  ;;  %v60_v27 = vld [vmem:[%s1089_s0 + $0x168] sm:$0xff]  ;;  %v58_v28 = vld [vmem:[%s1089_s0 + $0x158] sm:$0xff] }
  0x1e   :  { %671 = vmatprep.subr.bf16.mxu1 %v744_v29  ;;  %v62_v29 = vld [vmem:[%s1089_s0 + $0x178] sm:$0xff]  ;;  %v88_v32 = vpack.c.bf16 %v60_v27, %v56_v26 }
  0x1f   :  { %v90_v33 = vpack.c.bf16 %v62_v29, %v58_v28 }
  0x20   :  { %614 = vmatpush3.bf16.msra.mxu0 %v745_v30  ;;  %v83_v30 = vpack.c.bf16 %v51_v23, %v47_v22 }
  0x21   :  { %672 = vmatpush3.bf16.msra.mxu1 %v746_v31  ;;  %v85_v31 = vpack.c.bf16 %v53_v25, %v49_v24 }
  0x23   :  { %391 = vmatmul.mubr.bf16.vlgmr.msra.gmra.mrb[0].mxu0 %v67_v40  ;;  %v87_v40 = vpack.c.bf16 %v59_v35, %v55_v34 }
  0x24   :  { %479 = vmatmul.mubr.bf16.vlgmr.msra.gmra.mrb[0].mxu1 %v69_v44  ;;  %398 = vmatprep.mubr.bf16.mxu0 %v72_v48  ;;  %v63_v44 = vld [vmem:[%s1089_s0 + $0x180] sm:$0xf] }
  0x25   :  { %486 = vmatprep.mubr.bf16.mxu1 %v74_v49  ;;  %v91_v46 = vpack.c.bf16 %v63_v44, %v63_v44 }
  0x2b   :  { %399 = vmatmul.mubr.bf16.gmra.mrb[4].mxu0 %v71_v58 }
  0x2c   :  { %487 = vmatmul.mubr.bf16.gmra.mrb[4].mxu1 %v73_v59  ;;  %406 = vmatprep.mubr.bf16.mxu0 %v76_v60 }
  0x2d   :  { %494 = vmatprep.mubr.bf16.mxu1 %v78_v61 }
  0x33   :  { %407 = vmatmul.mubr.bf16.gmra.mrb[8].mxu0 %v75_v6 }
  0x34   :  { %495 = vmatmul.mubr.bf16.gmra.mrb[8].mxu1 %v77_v7  ;;  %414 = vmatprep.mubr.bf16.mxu0 %v80_v8 }
  0x35   :  { %502 = vmatprep.mubr.bf16.mxu1 %v82_v9 }
  0x3b   :  { %415 = vmatmul.mubr.bf16.gmra.mrb[12].mxu0 %v79_v18 }
  0x3c   :  { %503 = vmatmul.mubr.bf16.gmra.mrb[12].mxu1 %v81_v19  ;;  %422 = vmatprep.mubr.bf16.mxu0 %v84_v20 }
  0x3d   :  { %510 = vmatprep.mubr.bf16.mxu1 %v86_v21 }
  0x43   :  { %423 = vmatmul.mubr.bf16.gmra.mrb[16].mxu0 %v83_v30 }
  0x44   :  { %511 = vmatmul.mubr.bf16.gmra.mrb[16].mxu1 %v85_v31  ;;  %430 = vmatprep.mubr.bf16.mxu0 %v88_v32 }
  0x45   :  { %518 = vmatprep.mubr.bf16.mxu1 %v90_v33 }
  0x4b   :  { %431 = vmatmul.mubr.bf16.gmra.mrb[20].mxu0 %v87_v40 }
  0x4c   :  { %519 = vmatmul.mubr.bf16.gmra.mrb[20].mxu1 %v89_v41  ;;  %438 = vmatprep.mubr.bf16.mxu0 %v92_v42 }
  0x4d   :  { %526 = vmatprep.mubr.bf16.mxu1 %v94_v43 }
  0x53   :  { %439 = vmatmul.mubr.bf16.gmra.mrb[24].mxu0 %v91_v46 }
  0x54   :  { %527 = vmatmul.mubr.bf16.gmra.mrb[24].mxu1 %v93_v47 }
  0xf6   :  { %v615_v48 = vpop.f32.mrb[0].mxu0 }
  0xf7   :  { %v673_v49 = vpop.f32.mrb[0].mxu1  ;;  %v616_v51 = vpop.f32.mrb[1].mxu0 }
  0xf8   :  { %v617_v52 = vadd.f32 %v616_v51, %v615_v48  ;;  %v674_v53 = vpop.f32.mrb[1].mxu1  ;;  %v618_v54 = vpop.f32.mrb[2].mxu0 }
  0xf9   :  { %v675_v55 = vadd.f32 %v674_v53, %v673_v49  ;;  %v676_v56 = vpop.f32.mrb[2].mxu1  ;;  %v619_v57 = vpop.f32.mrb[3].mxu0 }
  0xfa   :  { %v393_v58 = vadd.f32 %v617_v52, %v1022_v50  ;;  %v620_v59 = vadd.f32 %v619_v57, %v618_v54  ;;  %v677_v60 = vpop.f32.mrb[3].mxu1 }
  0xfb   :  { %v678_v61 = vadd.f32 %v677_v60, %v676_v56 }
  0xfc   :  { %v481_v62 = vadd.f32 %v675_v55, %v393_v58  ;;  %v396_v63 = vadd.f32 %v620_v59, %v1022_v50 }
  0xfe   :  { %v534_v0 = vmax.f32 %v481_v62, 0.0  ;;  %v484_v1 = vadd.f32 %v678_v61, %v396_v63  ;;  %v621_v2 = vpop.f32.mrb[4].mxu0 }
  0xff   :  { %v679_v3 = vpop.f32.mrb[4].mxu1  ;;  %v622_v4 = vpop.f32.mrb[5].mxu0 }
 0x100   :  { %548 = vst.msk [vmem:[%s1091_s3] sm:$0xff] %vm547_vm0, %v534_v0  ;;  %v535_v5 = vmax.f32 %v484_v1, 0.0  ;;  %v623_v6 = vadd.f32 %v622_v4, %v621_v2  ;;  %v680_v7 = vpop.f32.mrb[5].mxu1  ;;  %v624_v8 = vpop.f32.mrb[6].mxu0 }
 0x101   :  { %v681_v9 = vadd.f32 %v680_v7, %v679_v3  ;;  %v682_v10 = vpop.f32.mrb[6].mxu1  ;;  %v625_v11 = vpop.f32.mrb[7].mxu0 }
 0x102   :  { %549 = vst.msk [vmem:[%s1091_s3 + $0x8] sm:$0xff] %vm547_vm0, %v535_v5  ;;  %v401_v12 = vadd.f32 %v623_v6, %v1022_v50  ;;  %v626_v13 = vadd.f32 %v625_v11, %v624_v8  ;;  %v683_v14 = vpop.f32.mrb[7].mxu1 }
 0x103   :  { %v684_v15 = vadd.f32 %v683_v14, %v682_v10 }
 0x104   :  { %v489_v16 = vadd.f32 %v681_v9, %v401_v12  ;;  %v404_v17 = vadd.f32 %v626_v13, %v1022_v50 }
 0x106   :  { %v536_v18 = vmax.f32 %v489_v16, 0.0  ;;  %v492_v19 = vadd.f32 %v684_v15, %v404_v17  ;;  %v627_v20 = vpop.f32.mrb[8].mxu0 }
 0x107   :  { %v685_v21 = vpop.f32.mrb[8].mxu1  ;;  %v628_v22 = vpop.f32.mrb[9].mxu0 }
 0x108   :  { %550 = vst.msk [vmem:[%s1091_s3 + $0x10] sm:$0xff] %vm547_vm0, %v536_v18  ;;  %v537_v23 = vmax.f32 %v492_v19, 0.0  ;;  %v629_v24 = vadd.f32 %v628_v22, %v627_v20  ;;  %v686_v25 = vpop.f32.mrb[9].mxu1  ;;  %v630_v26 = vpop.f32.mrb[10].mxu0 }
 0x109   :  { %v687_v27 = vadd.f32 %v686_v25, %v685_v21  ;;  %v688_v28 = vpop.f32.mrb[10].mxu1  ;;  %v631_v29 = vpop.f32.mrb[11].mxu0 }
 0x10a   :  { %551 = vst.msk [vmem:[%s1091_s3 + $0x18] sm:$0xff] %vm547_vm0, %v537_v23  ;;  %v409_v30 = vadd.f32 %v629_v24, %v1022_v50  ;;  %v632_v31 = vadd.f32 %v631_v29, %v630_v26  ;;  %v689_v32 = vpop.f32.mrb[11].mxu1 }
 0x10b   :  { %v690_v33 = vadd.f32 %v689_v32, %v688_v28 }
 0x10c   :  { %v497_v34 = vadd.f32 %v687_v27, %v409_v30  ;;  %v412_v35 = vadd.f32 %v632_v31, %v1022_v50 }
 0x10e   :  { %v538_v36 = vmax.f32 %v497_v34, 0.0  ;;  %v500_v37 = vadd.f32 %v690_v33, %v412_v35  ;;  %v633_v38 = vpop.f32.mrb[12].mxu0 }
 0x10f   :  { %v691_v39 = vpop.f32.mrb[12].mxu1  ;;  %v634_v40 = vpop.f32.mrb[13].mxu0 }
 0x110   :  { %552 = vst.msk [vmem:[%s1091_s3 + $0x20] sm:$0xff] %vm547_vm0, %v538_v36  ;;  %v539_v41 = vmax.f32 %v500_v37, 0.0  ;;  %v635_v42 = vadd.f32 %v634_v40, %v633_v38  ;;  %v692_v43 = vpop.f32.mrb[13].mxu1  ;;  %v636_v44 = vpop.f32.mrb[14].mxu0 }
 0x111   :  { %v693_v45 = vadd.f32 %v692_v43, %v691_v39  ;;  %v694_v46 = vpop.f32.mrb[14].mxu1  ;;  %v637_v47 = vpop.f32.mrb[15].mxu0 }
 0x112   :  { %553 = vst.msk [vmem:[%s1091_s3 + $0x28] sm:$0xff] %vm547_vm0, %v539_v41  ;;  %v417_v48 = vadd.f32 %v635_v42, %v1022_v50  ;;  %v638_v49 = vadd.f32 %v637_v47, %v636_v44  ;;  %v695_v51 = vpop.f32.mrb[15].mxu1 }
 0x113   :  { %v696_v52 = vadd.f32 %v695_v51, %v694_v46 }
 0x114   :  { %v505_v53 = vadd.f32 %v693_v45, %v417_v48  ;;  %v420_v54 = vadd.f32 %v638_v49, %v1022_v50 }
 0x116   :  { %v540_v55 = vmax.f32 %v505_v53, 0.0  ;;  %v508_v56 = vadd.f32 %v696_v52, %v420_v54  ;;  %v639_v57 = vpop.f32.mrb[16].mxu0 }
 0x117   :  { %v697_v58 = vpop.f32.mrb[16].mxu1  ;;  %v640_v59 = vpop.f32.mrb[17].mxu0 }
 0x118   :  { %554 = vst.msk [vmem:[%s1091_s3 + $0x30] sm:$0xff] %vm547_vm0, %v540_v55  ;;  %v541_v60 = vmax.f32 %v508_v56, 0.0  ;;  %v641_v61 = vadd.f32 %v640_v59, %v639_v57  ;;  %v698_v62 = vpop.f32.mrb[17].mxu1  ;;  %v642_v63 = vpop.f32.mrb[18].mxu0 }
 0x119   :  { %v699_v0 = vadd.f32 %v698_v62, %v697_v58  ;;  %v700_v1 = vpop.f32.mrb[18].mxu1  ;;  %v643_v2 = vpop.f32.mrb[19].mxu0 }
 0x11a   :  { %555 = vst.msk [vmem:[%s1091_s3 + $0x38] sm:$0xff] %vm547_vm0, %v541_v60  ;;  %v425_v3 = vadd.f32 %v641_v61, %v1022_v50  ;;  %v644_v4 = vadd.f32 %v643_v2, %v642_v63  ;;  %v701_v5 = vpop.f32.mrb[19].mxu1 }
 0x11b   :  { %v702_v6 = vadd.f32 %v701_v5, %v700_v1 }
 0x11c   :  { %v513_v7 = vadd.f32 %v699_v0, %v425_v3  ;;  %v428_v8 = vadd.f32 %v644_v4, %v1022_v50 }
 0x11e   :  { %v542_v9 = vmax.f32 %v513_v7, 0.0  ;;  %v516_v10 = vadd.f32 %v702_v6, %v428_v8  ;;  %v645_v11 = vpop.f32.mrb[20].mxu0 }
 0x11f   :  { %v703_v12 = vpop.f32.mrb[20].mxu1  ;;  %v646_v13 = vpop.f32.mrb[21].mxu0 }
 0x120   :  { %556 = vst.msk [vmem:[%s1091_s3 + $0x40] sm:$0xff] %vm547_vm0, %v542_v9  ;;  %v543_v14 = vmax.f32 %v516_v10, 0.0  ;;  %v647_v15 = vadd.f32 %v646_v13, %v645_v11  ;;  %v704_v16 = vpop.f32.mrb[21].mxu1  ;;  %v648_v17 = vpop.f32.mrb[22].mxu0 }
 0x121   :  { %v705_v18 = vadd.f32 %v704_v16, %v703_v12  ;;  %v706_v19 = vpop.f32.mrb[22].mxu1  ;;  %v649_v20 = vpop.f32.mrb[23].mxu0 }
 0x122   :  { %557 = vst.msk [vmem:[%s1091_s3 + $0x48] sm:$0xff] %vm547_vm0, %v543_v14  ;;  %v433_v21 = vadd.f32 %v647_v15, %v1022_v50  ;;  %v650_v22 = vadd.f32 %v649_v20, %v648_v17  ;;  %v707_v23 = vpop.f32.mrb[23].mxu1 }
 0x123   :  { %v708_v24 = vadd.f32 %v707_v23, %v706_v19 }
 0x124   :  { %v521_v25 = vadd.f32 %v705_v18, %v433_v21  ;;  %v436_v26 = vadd.f32 %v650_v22, %v1022_v50 }
 0x126   :  { %v544_v27 = vmax.f32 %v521_v25, 0.0  ;;  %v524_v28 = vadd.f32 %v708_v24, %v436_v26  ;;  %v651_v29 = vpop.f32.mrb[24].mxu0 }
 0x127   :  { %v709_v30 = vpop.f32.mrb[24].mxu1  ;;  %v652_v31 = vpop.f32.mrb[25].mxu0 }
 0x128   :  { %558 = vst.msk [vmem:[%s1091_s3 + $0x50] sm:$0xff] %vm547_vm0, %v544_v27  ;;  %v545_v32 = vmax.f32 %v524_v28, 0.0  ;;  %v653_v33 = vadd.f32 %v652_v31, %v651_v29  ;;  %v710_v34 = vpop.f32.mrb[25].mxu1  ;;  %v654_v35 = vpop.f32.mrb[26].mxu0 }
 0x129   :  { %v711_v36 = vadd.f32 %v710_v34, %v709_v30  ;;  %v712_v37 = vpop.f32.mrb[26].mxu1  ;;  %v655_v38 = vpop.f32.mrb[27].mxu0 }
 0x12a   :  { %559 = vst.msk [vmem:[%s1091_s3 + $0x58] sm:$0xff] %vm547_vm0, %v545_v32  ;;  %v441_v39 = vadd.f32 %v653_v33, %v1022_v50  ;;  %v713_v40 = vpop.f32.mrb[27].mxu1 }
 0x12c   :  { %v529_v41 = vadd.f32 %v711_v36, %v441_v39 }
 0x12e   :  { %v546_v42 = vmax.f32 %v529_v41, 0.0 }
 0x130   :  { %561 = vst.msk [vmem:[%s1091_s3 + $0x60] sm:$0xf] %vm560_vm1, %v546_v42 }

// kernel: decision_transformer_forward.8
= control target key start
LH: loop header
LB: loop body
LE: loop exit
PB: predicated region body
PF: predicated region fallthrough
CT: control target
= control target key end

     0   :  { %v594_v34 = vmov 0.0   ;;  %vm595_vm0 = vmmov 0   ;;  %vm324_vm1 = vcmask 523264   ;;  %vm449_vm2 = vcmask 519168   ;;  %s739_s1 = inlined_call_operand.vmem [shape: bf16[576,64], index: 1, kind: input, shape index: {}]   ;;  %s740_s0 = inlined_call_operand.vmem [shape: f32[4,576], index: 0, kind: input, shape index: {}]   ;;  %s741_s2 = inlined_call_operand.vmem [shape: f32[1,64], index: 2, kind: input, shape index: {}]   ;;  %s742_s3 = inlined_call_operand.vmem [shape: f32[4,64], index: 3, kind: output, shape index: {}]  }
   0x1   :  { %v556_v0 = vld [vmem:[%s739_s1 + $0x40] sm:$0xff]   ;;  %v560_v4 = vld [vmem:[%s739_s1 + $0x48] sm:$0xff]   ;;  %v564_v8 = vld [vmem:[%s739_s1 + $0x50] sm:$0xff]  }
   0x2   :  { %v557_v1 = vld [vmem:[%s739_s1] sm:$0xff]   ;;  %493 = vmatprep.subr.bf16.mxu0 %v556_v0  ;;  %v561_v5 = vld [vmem:[%s739_s1 + $0x8] sm:$0xff]   ;;  %v565_v9 = vld [vmem:[%s739_s1 + $0x10] sm:$0xff]  }
   0x3   :  { %v558_v2 = vld [vmem:[%s739_s1 + $0xc0] sm:$0xff]   ;;  %494 = vmatpush3.bf16.msra.mxu0 %v557_v1  ;;  %v562_v6 = vld [vmem:[%s739_s1 + $0xc8] sm:$0xff]   ;;  %v566_v10 = vld [vmem:[%s739_s1 + $0xd0] sm:$0xff]  }
   0x4   :  { %v559_v3 = vld [vmem:[%s739_s1 + $0x80] sm:$0xff]   ;;  %515 = vmatprep.subr.bf16.mxu1 %v558_v2  ;;  %495 = vmatprep.subr.bf16.mxu0 %v560_v4  ;;  %v563_v7 = vld [vmem:[%s739_s1 + $0x88] sm:$0xff]   ;;  %v567_v11 = vld [vmem:[%s739_s1 + $0x90] sm:$0xff]  }
   0x5   :  { %516 = vmatpush3.bf16.msra.mxu1 %v559_v3  ;;  %v568_v12 = vld [vmem:[%s739_s1 + $0x58] sm:$0xff]   ;;  %v572_v16 = vld [vmem:[%s739_s1 + $0x60] sm:$0xff]   ;;  %v576_v20 = vld [vmem:[%s739_s1 + $0x68] sm:$0xff]  }
   0x6   :  { %517 = vmatprep.subr.bf16.mxu1 %v562_v6  ;;  %v569_v13 = vld [vmem:[%s739_s1 + $0x18] sm:$0xff]   ;;  %v573_v17 = vld [vmem:[%s739_s1 + $0x20] sm:$0xff]   ;;  %v577_v21 = vld [vmem:[%s739_s1 + $0x28] sm:$0xff]  }
   0x7   :  { %496 = vmatpush3.bf16.msra.mxu0 %v561_v5  ;;  %v570_v14 = vld [vmem:[%s739_s1 + $0xd8] sm:$0xff]   ;;  %v574_v18 = vld [vmem:[%s739_s1 + $0xe0] sm:$0xff]   ;;  %v578_v22 = vld [vmem:[%s739_s1 + $0xe8] sm:$0xff]  }
   0x8   :  { %497 = vmatprep.subr.bf16.mxu0 %v564_v8  ;;  %v571_v15 = vld [vmem:[%s739_s1 + $0x98] sm:$0xff]   ;;  %v575_v19 = vld [vmem:[%s739_s1 + $0xa0] sm:$0xff]   ;;  %v579_v23 = vld [vmem:[%s739_s1 + $0xa8] sm:$0xff]  }
   0x9   :  { %518 = vmatpush3.bf16.msra.mxu1 %v563_v7  ;;  %v580_v24 = vld [vmem:[%s739_s1 + $0x70] sm:$0xff]   ;;  %v584_v28 = vld [vmem:[%s739_s1 + $0x78] sm:$0xff]   ;;  %v15_v31 = vld [vmem:[%s740_s0] sm:$0xff] }
   0xa   :  { %519 = vmatprep.subr.bf16.mxu1 %v566_v10  ;;  %v581_v25 = vld [vmem:[%s739_s1 + $0x30] sm:$0xff]   ;;  %v585_v29 = vld [vmem:[%s739_s1 + $0x38] sm:$0xff]   ;;  %v20_v32 = vcombine.high %v15_v31, %v15_v31  ;;  %v16_v35 = vld [vmem:[%s740_s0 + $0x8] sm:$0xff]  ;;  %v24_v36 = vpack.c.bf16 %v15_v31, %v15_v31 }
   0xb   :  { %498 = vmatpush3.bf16.msra.mxu0 %v565_v9  ;;  %v582_v26 = vld [vmem:[%s739_s1 + $0xf0] sm:$0xff]   ;;  %v586_v30 = vld [vmem:[%s739_s1 + $0xf8] sm:$0xff]   ;;  %v21_v37 = vcombine.high %v16_v35, %v16_v35  ;;  %v26_v39 = vpack.c.bf16 %v16_v35, %v16_v35  ;;  %v590_v40 = vld [vmem:[%s739_s1 + $0x100] sm:$0xff]  }
   0xc   :  { %499 = vmatprep.subr.bf16.mxu0 %v568_v12  ;;  %v583_v27 = vld [vmem:[%s739_s1 + $0xb0] sm:$0xff]   ;;  %v588_v33 = vld [vmem:[%s739_s1 + $0xb8] sm:$0xff]   ;;  %v25_v38 = vpack.c.bf16 %v20_v32, %v20_v32  ;;  %v591_v42 = vld [vmem:[%s739_s1 + $0x108] sm:$0xff]  }
   0xd   :  { %520 = vmatpush3.bf16.msra.mxu1 %v567_v11  ;;  %v27_v41 = vpack.c.bf16 %v21_v37, %v21_v37  ;;  %v592_v43 = vld [vmem:[%s739_s1 + $0x110] sm:$0xff]   ;;  %v593_v45 = vld [vmem:[%s739_s1 + $0x118] sm:$0xff]   ;;  %v455_v48 = vld [vmem:[%s741_s2] ss:$0 sm:$0xff] }
   0xe   :  { %521 = vmatprep.subr.bf16.mxu1 %v570_v14  ;;  %360 = vmatprep.mubr.bf16.mxu0 %v25_v38  ;;  %v17_v44 = vld [vmem:[%s740_s0 + $0x10] sm:$0xf] }
   0xf   :  { %500 = vmatpush3.bf16.msra.mxu0 %v569_v13  ;;  %400 = vmatprep.mubr.bf16.mxu1 %v27_v41  ;;  %v28_v46 = vpack.c.bf16 %v17_v44, %v17_v44 }
  0x10   :  { %501 = vmatprep.subr.bf16.mxu0 %v572_v16 }
  0x11   :  { %522 = vmatpush3.bf16.msra.mxu1 %v571_v15 }
  0x12   :  { %523 = vmatprep.subr.bf16.mxu1 %v574_v18 }
  0x13   :  { %502 = vmatpush3.bf16.msra.mxu0 %v573_v17 }
  0x14   :  { %503 = vmatprep.subr.bf16.mxu0 %v576_v20 }
  0x15   :  { %524 = vmatpush3.bf16.msra.mxu1 %v575_v19 }
  0x16   :  { %525 = vmatprep.subr.bf16.mxu1 %v578_v22 }
  0x17   :  { %504 = vmatpush3.bf16.msra.mxu0 %v577_v21 }
  0x18   :  { %505 = vmatprep.subr.bf16.mxu0 %v580_v24 }
  0x19   :  { %526 = vmatpush3.bf16.msra.mxu1 %v579_v23 }
  0x1a   :  { %527 = vmatprep.subr.bf16.mxu1 %v582_v26 }
  0x1b   :  { %506 = vmatpush3.bf16.msra.mxu0 %v581_v25 }
  0x1c   :  { %507 = vmatprep.subr.bf16.mxu0 %v584_v28 }
  0x1d   :  { %528 = vmatpush3.bf16.msra.mxu1 %v583_v27 }
  0x1e   :  { %529 = vmatprep.subr.bf16.mxu1 %v586_v30 }
  0x1f   :  { %508 = vmatpush3.bf16.msra.mxu0 %v585_v29 }
  0x20   :  { %542 = vmatprep.subr.bf16.mxu0 %v594_v34 }
  0x21   :  { %530 = vmatpush3.bf16.msra.mxu1 %v588_v33 }
  0x22   :  { %361 = vmatmul.mubr.bf16.vlgmr.msra.gmra.mrb[0].mxu0 %v24_v36 }
  0x23   :  { %543 = vmatpush3.bf16.msra.mxu0 %v590_v40  ;;  %550 = vmatprep.mubr.msk.bf16.mxu0 %vm595_vm0, %v594_v34 }
  0x24   :  { %401 = vmatmul.mubr.bf16.vlgmr.msra.gmra.mrb[0].mxu1 %v26_v39  ;;  %544 = vmatprep.subr.bf16.mxu0 %v594_v34 }
  0x27   :  { %545 = vmatpush3.bf16.msra.mxu0 %v591_v42 }
  0x28   :  { %546 = vmatprep.subr.bf16.mxu0 %v594_v34 }
  0x2b   :  { %547 = vmatpush3.bf16.msra.mxu0 %v592_v43 }
  0x2c   :  { %548 = vmatprep.subr.bf16.mxu0 %v594_v34 }
  0x2f   :  { %549 = vmatpush3.bf16.msra.mxu0 %v593_v45 }
  0x32   :  { %551 = vmatmul.mubr.msk.bf16.vlgmr.msra.gmra.mrb[4].mxu0 %vm324_vm1, %v28_v46 }
  0xf5   :  { %v509_v47 = vpop.f32.mrb[0].mxu0 }
  0xf6   :  { %v510_v49 = vpop.f32.mrb[1].mxu0 }
  0xf7   :  { %v531_v50 = vpop.f32.mrb[0].mxu1  ;;  %v511_v51 = vadd.f32 %v510_v49, %v509_v47  ;;  %v512_v52 = vpop.f32.mrb[2].mxu0 }
  0xf8   :  { %v532_v53 = vpop.f32.mrb[1].mxu1  ;;  %v513_v54 = vpop.f32.mrb[3].mxu0 }
  0xf9   :  { %v533_v55 = vadd.f32 %v532_v53, %v531_v50  ;;  %v534_v56 = vpop.f32.mrb[2].mxu1  ;;  %v363_v57 = vadd.f32 %v511_v51, %v455_v48 }
  0xfa   :  { %v535_v58 = vpop.f32.mrb[3].mxu1 }
  0xfb   :  { %v403_v59 = vadd.f32 %v533_v55, %v363_v57 }
 0x105   :  { %v442_v60 = vpop.f32.mrb[4].mxu0 }
 0x106   :  { %v443_v61 = vadd.f32 %v442_v60, %v403_v59  ;;  %v552_v62 = vpop.f32.mrb[5].mxu0 }
 0x107   :  { %v445_v63 = vpop.f32.mrb[6].mxu0 }
 0x108   :  { %v448_v0 = vmax.f32 %v443_v61, 0.0  ;;  %v553_v1 = vpop.f32.mrb[7].mxu0 }
 0x10a   :  { %450 = vst.msk [vmem:[%s742_s3] sm:$0xf] %vm449_vm2, %v448_v0 }

// kernel: decision_transformer_forward.7
= control target key start
LH: loop header
LB: loop body
LE: loop exit
PB: predicated region body
PF: predicated region fallthrough
CT: control target
= control target key end

     0   :  { %v724_v39 = vmov 0.0   ;;  %vm725_vm0 = vmmov 0   ;;  %vm350_vm1 = vcmask 523264   ;;  %vm537_vm2 = vcmask 519168   ;;  %s965_s1 = inlined_call_operand.vmem [shape: bf16[576,64], index: 1, kind: input, shape index: {}]   ;;  %s966_s0 = inlined_call_operand.vmem [shape: f32[36,576], index: 0, kind: input, shape index: {}]   ;;  %s967_s2 = inlined_call_operand.vmem [shape: f32[1,64], index: 2, kind: input, shape index: {}]   ;;  %s968_s3 = inlined_call_operand.vmem [shape: f32[36,64], index: 3, kind: output, shape index: {}]  }
   0x1   :  { %v688_v0 = vld [vmem:[%s965_s1 + $0x40] sm:$0xff]   ;;  %v692_v4 = vld [vmem:[%s965_s1 + $0x48] sm:$0xff]   ;;  %v696_v8 = vld [vmem:[%s965_s1 + $0x50] sm:$0xff]  }
   0x2   :  { %v689_v1 = vld [vmem:[%s965_s1 + $0xc0] sm:$0xff]   ;;  %583 = vmatprep.subr.bf16.mxu0 %v688_v0  ;;  %v693_v5 = vld [vmem:[%s965_s1 + $0xc8] sm:$0xff]   ;;  %v697_v9 = vld [vmem:[%s965_s1 + $0xd0] sm:$0xff]  }
   0x3   :  { %v690_v2 = vld [vmem:[%s965_s1] sm:$0xff]   ;;  %617 = vmatprep.subr.bf16.mxu1 %v689_v1  ;;  %v694_v6 = vld [vmem:[%s965_s1 + $0x8] sm:$0xff]   ;;  %v698_v10 = vld [vmem:[%s965_s1 + $0x10] sm:$0xff]  }
   0x4   :  { %v691_v3 = vld [vmem:[%s965_s1 + $0x80] sm:$0xff]   ;;  %584 = vmatpush3.bf16.msra.mxu0 %v690_v2  ;;  %v695_v7 = vld [vmem:[%s965_s1 + $0x88] sm:$0xff]   ;;  %v699_v11 = vld [vmem:[%s965_s1 + $0x90] sm:$0xff]  }
   0x5   :  { %618 = vmatpush3.bf16.msra.mxu1 %v691_v3  ;;  %585 = vmatprep.subr.bf16.mxu0 %v692_v4  ;;  %v700_v12 = vld [vmem:[%s965_s1 + $0x58] sm:$0xff]   ;;  %v704_v16 = vld [vmem:[%s965_s1 + $0x60] sm:$0xff]   ;;  %v708_v20 = vld [vmem:[%s965_s1 + $0x68] sm:$0xff]  }
   0x6   :  { %619 = vmatprep.subr.bf16.mxu1 %v693_v5  ;;  %v701_v13 = vld [vmem:[%s965_s1 + $0xd8] sm:$0xff]   ;;  %v705_v17 = vld [vmem:[%s965_s1 + $0xe0] sm:$0xff]   ;;  %v709_v21 = vld [vmem:[%s965_s1 + $0xe8] sm:$0xff]  }
   0x7   :  { %v702_v14 = vld [vmem:[%s965_s1 + $0x18] sm:$0xff]   ;;  %v706_v18 = vld [vmem:[%s965_s1 + $0x20] sm:$0xff]   ;;  %v710_v22 = vld [vmem:[%s965_s1 + $0x28] sm:$0xff]  }
   0x8   :  { %586 = vmatpush3.bf16.msra.mxu0 %v694_v6  ;;  %v703_v15 = vld [vmem:[%s965_s1 + $0x98] sm:$0xff]   ;;  %v707_v19 = vld [vmem:[%s965_s1 + $0xa0] sm:$0xff]   ;;  %v711_v23 = vld [vmem:[%s965_s1 + $0xa8] sm:$0xff]  }
   0x9   :  { %620 = vmatpush3.bf16.msra.mxu1 %v695_v7  ;;  %587 = vmatprep.subr.bf16.mxu0 %v696_v8  ;;  %v712_v24 = vld [vmem:[%s965_s1 + $0x70] sm:$0xff]   ;;  %v716_v28 = vld [vmem:[%s965_s1 + $0x78] sm:$0xff]   ;;  %v16_v32 = vld [vmem:[%s966_s0 + $0x8] sm:$0xff] }
   0xa   :  { %621 = vmatprep.subr.bf16.mxu1 %v697_v9  ;;  %v713_v25 = vld [vmem:[%s965_s1 + $0xf0] sm:$0xff]   ;;  %v717_v29 = vld [vmem:[%s965_s1 + $0xf8] sm:$0xff]   ;;  %v23_v36 = vld [vmem:[%s966_s0 + $0x40] sm:$0xff] }
   0xb   :  { %v714_v26 = vld [vmem:[%s965_s1 + $0x30] sm:$0xff]   ;;  %v718_v30 = vld [vmem:[%s965_s1 + $0x38] sm:$0xff]   ;;  %v15_v37 = vld [vmem:[%s966_s0] sm:$0xff] }
   0xc   :  { %588 = vmatpush3.bf16.msra.mxu0 %v698_v10  ;;  %v715_v27 = vld [vmem:[%s965_s1 + $0xb0] sm:$0xff]   ;;  %v719_v31 = vld [vmem:[%s965_s1 + $0xb8] sm:$0xff]   ;;  %v20_v38 = vld [vmem:[%s966_s0 + $0x28] sm:$0xff] }
   0xd   :  { %622 = vmatpush3.bf16.msra.mxu1 %v699_v11  ;;  %589 = vmatprep.subr.bf16.mxu0 %v700_v12  ;;  %v21_v33 = vld [vmem:[%s966_s0 + $0x30] sm:$0xff]  ;;  %v18_v34 = vld [vmem:[%s966_s0 + $0x18] sm:$0xff]  ;;  %v40_v41 = vpack.c.bf16 %v20_v38, %v15_v37  ;;  %v720_v45 = vld [vmem:[%s965_s1 + $0x100] sm:$0xff]  }
   0xe   :  { %623 = vmatprep.subr.bf16.mxu1 %v701_v13  ;;  %v41_v35 = vpack.c.bf16 %v21_v33, %v16_v32  ;;  %v43_v40 = vpack.c.bf16 %v23_v36, %v18_v34  ;;  %v17_v42 = vld [vmem:[%s966_s0 + $0x10] sm:$0xff]  ;;  %v22_v43 = vld [vmem:[%s966_s0 + $0x38] sm:$0xff]  ;;  %v31_v47 = vld [vmem:[%s966_s0 + $0x80] sm:$0xff] }
   0xf   :  { %v42_v44 = vpack.c.bf16 %v22_v43, %v17_v42  ;;  %v26_v46 = vld [vmem:[%s966_s0 + $0x58] sm:$0xff]  ;;  %v28_v48 = vld [vmem:[%s966_s0 + $0x68] sm:$0xff]  ;;  %v33_v49 = vld [vmem:[%s966_s0 + $0x90] sm:$0xff] }
  0x10   :  { %590 = vmatpush3.bf16.msra.mxu0 %v702_v14  ;;  %392 = vmatprep.mubr.bf16.mxu0 %v41_v35  ;;  %v46_v50 = vpack.c.bf16 %v31_v47, %v26_v46  ;;  %v48_v51 = vpack.c.bf16 %v33_v49, %v28_v48  ;;  %v721_v52 = vld [vmem:[%s965_s1 + $0x108] sm:$0xff]   ;;  %v25_v53 = vld [vmem:[%s966_s0 + $0x50] sm:$0xff]  ;;  %v30_v54 = vld [vmem:[%s966_s0 + $0x78] sm:$0xff] }
  0x11   :  { %624 = vmatpush3.bf16.msra.mxu1 %v703_v15  ;;  %591 = vmatprep.subr.bf16.mxu0 %v704_v16  ;;  %v27_v55 = vld [vmem:[%s966_s0 + $0x60] sm:$0xff]  ;;  %v32_v56 = vld [vmem:[%s966_s0 + $0x88] sm:$0xff]  ;;  %v45_v57 = vpack.c.bf16 %v30_v54, %v25_v53  ;;  %v38_v59 = vld [vmem:[%s966_s0 + $0xb8] sm:$0xf] }
  0x12   :  { %625 = vmatprep.subr.bf16.mxu1 %v705_v17  ;;  %448 = vmatprep.mubr.bf16.mxu1 %v43_v40  ;;  %v36_v58 = vld [vmem:[%s966_s0 + $0xa8] sm:$0xf]  ;;  %v47_v60 = vpack.c.bf16 %v32_v56, %v27_v55  ;;  %v722_v62 = vld [vmem:[%s965_s1 + $0x110] sm:$0xff]   ;;  %v53_v63 = vpack.c.bf16 %v38_v59, %v38_v59  ;;  %v35_v0 = vld [vmem:[%s966_s0 + $0xa0] sm:$0xf] }
  0x13   :  { %v51_v61 = vpack.c.bf16 %v36_v58, %v36_v58  ;;  %v37_v1 = vld [vmem:[%s966_s0 + $0xb0] sm:$0xf]  ;;  %v723_v2 = vld [vmem:[%s965_s1 + $0x118] sm:$0xff]   ;;  %v50_v3 = vpack.c.bf16 %v35_v0, %v35_v0  ;;  %v19_v5 = vld [vmem:[%s966_s0 + $0x20] sm:$0xff] }
  0x14   :  { %592 = vmatpush3.bf16.msra.mxu0 %v706_v18  ;;  %v52_v4 = vpack.c.bf16 %v37_v1, %v37_v1  ;;  %v24_v6 = vld [vmem:[%s966_s0 + $0x48] sm:$0xff]  ;;  %v29_v7 = vld [vmem:[%s966_s0 + $0x70] sm:$0xff]  ;;  %v34_v8 = vld [vmem:[%s966_s0 + $0x98] sm:$0xff] }
  0x15   :  { %626 = vmatpush3.bf16.msra.mxu1 %v707_v19  ;;  %593 = vmatprep.subr.bf16.mxu0 %v708_v20  ;;  %v44_v9 = vpack.c.bf16 %v24_v6, %v19_v5  ;;  %v49_v10 = vpack.c.bf16 %v34_v8, %v29_v7  ;;  %v39_v11 = vld [vmem:[%s966_s0 + $0xc0] sm:$0xf] }
  0x16   :  { %627 = vmatprep.subr.bf16.mxu1 %v709_v21  ;;  %v54_v12 = vpack.c.bf16 %v39_v11, %v39_v11  ;;  %v543_v15 = vld [vmem:[%s967_s2] ss:$0 sm:$0xff] }
  0x18   :  { %594 = vmatpush3.bf16.msra.mxu0 %v710_v22 }
  0x19   :  { %628 = vmatpush3.bf16.msra.mxu1 %v711_v23  ;;  %595 = vmatprep.subr.bf16.mxu0 %v712_v24 }
  0x1a   :  { %629 = vmatprep.subr.bf16.mxu1 %v713_v25 }
  0x1c   :  { %596 = vmatpush3.bf16.msra.mxu0 %v714_v26 }
  0x1d   :  { %630 = vmatpush3.bf16.msra.mxu1 %v715_v27  ;;  %597 = vmatprep.subr.bf16.mxu0 %v716_v28 }
  0x1e   :  { %631 = vmatprep.subr.bf16.mxu1 %v717_v29 }
  0x20   :  { %598 = vmatpush3.bf16.msra.mxu0 %v718_v30 }
  0x21   :  { %632 = vmatpush3.bf16.msra.mxu1 %v719_v31  ;;  %658 = vmatprep.subr.bf16.mxu0 %v724_v39 }
  0x22   :  { %678 = vmatprep.subr.bf16.mxu1 %v724_v39 }
  0x23   :  { %393 = vmatmul.mubr.bf16.vlgmr.msra.gmra.mrb[0].mxu0 %v40_v41 }
  0x24   :  { %449 = vmatmul.mubr.bf16.vlgmr.msra.gmra.mrb[0].mxu1 %v42_v44  ;;  %659 = vmatpush3.bf16.msra.mxu0 %v720_v45 }
  0x25   :  { %682 = vmatpush3.bf16.msra.mxu1 %v720_v45  ;;  %660 = vmatprep.subr.bf16.mxu0 %v724_v39 }
  0x26   :  { %679 = vmatprep.subr.bf16.mxu1 %v724_v39  ;;  %400 = vmatprep.mubr.bf16.mxu0 %v46_v50 }
  0x27   :  { %456 = vmatprep.mubr.bf16.mxu1 %v48_v51 }
  0x28   :  { %661 = vmatpush3.bf16.msra.mxu0 %v721_v52 }
  0x29   :  { %683 = vmatpush3.bf16.msra.mxu1 %v721_v52  ;;  %662 = vmatprep.subr.bf16.mxu0 %v724_v39 }
  0x2a   :  { %680 = vmatprep.subr.bf16.mxu1 %v724_v39 }
  0x2b   :  { %401 = vmatmul.mubr.bf16.gmra.mrb[4].mxu0 %v45_v57 }
  0x2c   :  { %457 = vmatmul.mubr.bf16.gmra.mrb[4].mxu1 %v47_v60  ;;  %408 = vmatprep.mubr.bf16.mxu0 %v51_v61 }
  0x2d   :  { %684 = vmatpush3.bf16.msra.mxu1 %v722_v62  ;;  %464 = vmatprep.mubr.bf16.mxu1 %v53_v63 }
  0x2e   :  { %663 = vmatpush3.bf16.msra.mxu0 %v722_v62  ;;  %681 = vmatprep.subr.bf16.mxu1 %v724_v39 }
  0x2f   :  { %664 = vmatprep.subr.bf16.mxu0 %v724_v39 }
  0x31   :  { %685 = vmatpush3.bf16.msra.mxu1 %v723_v2 }
  0x32   :  { %665 = vmatpush3.bf16.msra.mxu0 %v723_v2 }
  0x33   :  { %409 = vmatmul.mubr.bf16.gmra.mrb[8].mxu0 %v50_v3 }
  0x34   :  { %465 = vmatmul.mubr.bf16.gmra.mrb[8].mxu1 %v52_v4  ;;  %666 = vmatprep.mubr.msk.bf16.mxu0 %vm725_vm0, %v724_v39 }
  0x35   :  { %670 = vmatprep.mubr.msk.bf16.mxu1 %vm725_vm0, %v724_v39 }
  0x3b   :  { %667 = vmatmul.mubr.msk.bf16.vlgmr.msra.gmra.mrb[12].mxu0 %vm350_vm1, %v44_v9 }
  0x3c   :  { %671 = vmatmul.mubr.msk.bf16.vlgmr.msra.gmra.mrb[12].mxu1 %vm350_vm1, %v49_v10 }
  0x3d   :  { %674 = vmatprep.mubr.msk.bf16.mxu1 %vm725_vm0, %v724_v39 }
  0x44   :  { %675 = vmatmul.mubr.msk.bf16.gmra.mrb[16].mxu1 %vm350_vm1, %v54_v12 }
  0xf6   :  { %v599_v13 = vpop.f32.mrb[0].mxu0 }
  0xf7   :  { %v633_v14 = vpop.f32.mrb[0].mxu1  ;;  %v600_v16 = vpop.f32.mrb[1].mxu0 }
  0xf8   :  { %v601_v17 = vadd.f32 %v600_v16, %v599_v13  ;;  %v634_v18 = vpop.f32.mrb[1].mxu1  ;;  %v602_v19 = vpop.f32.mrb[2].mxu0 }
  0xf9   :  { %v635_v20 = vadd.f32 %v634_v18, %v633_v14  ;;  %v636_v21 = vpop.f32.mrb[2].mxu1  ;;  %v603_v22 = vpop.f32.mrb[3].mxu0 }
  0xfa   :  { %v395_v23 = vadd.f32 %v601_v17, %v543_v15  ;;  %v604_v24 = vadd.f32 %v603_v22, %v602_v19  ;;  %v637_v25 = vpop.f32.mrb[3].mxu1 }
  0xfb   :  { %v638_v26 = vadd.f32 %v637_v25, %v636_v21 }
  0xfc   :  { %v398_v27 = vadd.f32 %v604_v24, %v543_v15  ;;  %v451_v28 = vadd.f32 %v635_v20, %v395_v23 }
  0xfe   :  { %v605_v29 = vpop.f32.mrb[4].mxu0  ;;  %v454_v30 = vadd.f32 %v638_v26, %v398_v27 }
  0xff   :  { %v639_v31 = vpop.f32.mrb[4].mxu1  ;;  %v606_v32 = vpop.f32.mrb[5].mxu0 }
 0x100   :  { %v607_v33 = vadd.f32 %v606_v32, %v605_v29  ;;  %v640_v34 = vpop.f32.mrb[5].mxu1  ;;  %v608_v35 = vpop.f32.mrb[6].mxu0 }
 0x101   :  { %v641_v36 = vadd.f32 %v640_v34, %v639_v31  ;;  %v642_v37 = vpop.f32.mrb[6].mxu1  ;;  %v609_v38 = vpop.f32.mrb[7].mxu0 }
 0x102   :  { %v403_v39 = vadd.f32 %v607_v33, %v543_v15  ;;  %v610_v40 = vadd.f32 %v609_v38, %v608_v35  ;;  %v643_v41 = vpop.f32.mrb[7].mxu1 }
 0x103   :  { %v644_v42 = vadd.f32 %v643_v41, %v642_v37 }
 0x104   :  { %v406_v43 = vadd.f32 %v610_v40, %v543_v15  ;;  %v459_v44 = vadd.f32 %v641_v36, %v403_v39 }
 0x106   :  { %v611_v45 = vpop.f32.mrb[8].mxu0  ;;  %v462_v46 = vadd.f32 %v644_v42, %v406_v43 }
 0x107   :  { %v645_v47 = vpop.f32.mrb[8].mxu1  ;;  %v612_v48 = vpop.f32.mrb[9].mxu0 }
 0x108   :  { %v613_v49 = vadd.f32 %v612_v48, %v611_v45  ;;  %v646_v50 = vpop.f32.mrb[9].mxu1  ;;  %v614_v51 = vpop.f32.mrb[10].mxu0 }
 0x109   :  { %v647_v52 = vadd.f32 %v646_v50, %v645_v47  ;;  %v648_v53 = vpop.f32.mrb[10].mxu1  ;;  %v615_v54 = vpop.f32.mrb[11].mxu0 }
 0x10a   :  { %v411_v55 = vadd.f32 %v613_v49, %v543_v15  ;;  %v649_v56 = vpop.f32.mrb[11].mxu1 }
 0x10c   :  { %v467_v57 = vadd.f32 %v647_v52, %v411_v55 }
 0x10e   :  { %v506_v58 = vpop.f32.mrb[12].mxu0 }
 0x10f   :  { %v507_v59 = vadd.f32 %v506_v58, %v451_v28  ;;  %v514_v60 = vpop.f32.mrb[12].mxu1  ;;  %v668_v61 = vpop.f32.mrb[13].mxu0 }
 0x110   :  { %v515_v62 = vadd.f32 %v514_v60, %v459_v44  ;;  %v672_v63 = vpop.f32.mrb[13].mxu1  ;;  %v509_v0 = vpop.f32.mrb[14].mxu0 }
 0x111   :  { %v528_v1 = vmax.f32 %v507_v59, 0.0  ;;  %v510_v2 = vadd.f32 %v509_v0, %v454_v30  ;;  %v517_v3 = vpop.f32.mrb[14].mxu1  ;;  %v669_v4 = vpop.f32.mrb[15].mxu0 }
 0x112   :  { %v530_v5 = vmax.f32 %v515_v62, 0.0  ;;  %v518_v6 = vadd.f32 %v517_v3, %v462_v46  ;;  %v673_v7 = vpop.f32.mrb[15].mxu1 }
 0x113   :  { %533 = vst.msk [vmem:[%s968_s3] sm:$0xff] %vm350_vm1, %v528_v1  ;;  %v529_v8 = vmax.f32 %v510_v2, 0.0 }
 0x114   :  { %535 = vst.msk [vmem:[%s968_s3 + $0x10] sm:$0xff] %vm350_vm1, %v530_v5  ;;  %v531_v9 = vmax.f32 %v518_v6, 0.0 }
 0x115   :  { %534 = vst.msk [vmem:[%s968_s3 + $0x8] sm:$0xff] %vm350_vm1, %v529_v8 }
 0x116   :  { %536 = vst.msk [vmem:[%s968_s3 + $0x18] sm:$0xff] %vm350_vm1, %v531_v9 }
 0x117   :  { %v522_v10 = vpop.f32.mrb[16].mxu1 }
 0x118   :  { %v523_v11 = vadd.f32 %v522_v10, %v467_v57  ;;  %v676_v12 = vpop.f32.mrb[17].mxu1 }
 0x119   :  { %v525_v13 = vpop.f32.mrb[18].mxu1 }
 0x11a   :  { %v532_v14 = vmax.f32 %v523_v11, 0.0  ;;  %v677_v15 = vpop.f32.mrb[19].mxu1 }
 0x11c   :  { %538 = vst.msk [vmem:[%s968_s3 + $0x20] sm:$0xf] %vm537_vm2, %v532_v14 }

// kernel: decision_transformer_forward.9
= control target key start
LH: loop header
LB: loop body
LE: loop exit
PB: predicated region body
PF: predicated region fallthrough
CT: control target
= control target key end

     0   :  { %s7616_s0 = inlined_call_operand.vmem [shape: f32[2,6,64], index: 0, kind: input, shape index: {}]   ;;  %s7617_s1 = inlined_call_operand.vmem [shape: f32[6,6], index: 1, kind: input, shape index: {}]   ;;  %s7618_s2 = inlined_call_operand.vmem [shape: f32[4,6], index: 2, kind: input, shape index: {}]   ;;  %s7619_s3 = inlined_call_operand.vmem [shape: f32[2,4,64], index: 3, kind: input, shape index: {}]   ;;  %s7620_s4 = inlined_call_operand.vmem [shape: bf16[2,64,192], index: 4, kind: input, shape index: {}]   ;;  %s7621_s5 = inlined_call_operand.vmem [shape: f32[2,1,192], index: 5, kind: input, shape index: {}]   ;;  %s7622_s6 = inlined_call_operand.vmem [shape: bf16[2,2,32,64], index: 6, kind: input, shape index: {}]   ;;  %s7623_s7 = inlined_call_operand.vmem [shape: bf16[2,64,128], index: 7, kind: input, shape index: {}]   ;;  %s7624_s8 = inlined_call_operand.vmem [shape: f32[2,1,128], index: 8, kind: input, shape index: {}]   ;;  %s7625_s9 = inlined_call_operand.vmem [shape: bf16[2,128,64], index: 9, kind: input, shape index: {}]   ;;  %s7626_s10 = inlined_call_operand.vmem [shape: f32[2,2,64], index: 10, kind: input, shape index: {}]   ;;  %s7627_s11 = inlined_call_operand.vmem [shape: f32[2,64], index: 11, kind: input, shape index: {}]   ;;  %s7628_s12 = inlined_call_operand.vmem [shape: bf16[64,128], index: 12, kind: input, shape index: {}]   ;;  %s7629_s13 = inlined_call_operand.vmem [shape: f32[1,128], index: 13, kind: input, shape index: {}]   ;;  %s7630_s14 = inlined_call_operand.vmem [shape: bf16[64,8192], index: 14, kind: input, shape index: {}]   ;;  %s7631_s15 = inlined_call_operand.vmem [shape: f32[1,8192], index: 15, kind: input, shape index: {}]   ;;  %s7632_s16 = inlined_call_operand.hbm [shape: f32[2,2,128], index: 16, kind: output, shape index: {0}]   ;;  %s7633_s17 = inlined_call_operand.vmem [shape: f32[2,2,8192], index: 17, kind: output, shape index: {1}]  }
   0x1   :  { %7651 = sst [smem:[#allocation18_spill]] %s7616_s0 }
   0x2   :  { %7652 = sst [smem:[#allocation19_spill]] %s7617_s1 }
   0x3   :  { %7653 = sst [smem:[#allocation20_spill]] %s7618_s2 }
   0x4   :  { %7654 = sst [smem:[#allocation21_spill]] %s7619_s3 }
   0x5   :  { %7655 = sst [smem:[#allocation22_spill]] %s7620_s4 }
   0x6   :  { %7656 = sst [smem:[#allocation23_spill]] %s7621_s5 }
   0x7   :  { %7657 = sst [smem:[#allocation24_spill]] %s7622_s6 }
   0x8   :  { %7658 = sst [smem:[#allocation25_spill]] %s7627_s11 }
   0x9   :  { %7659 = sst [smem:[#allocation26_spill]] %s7628_s12 }
   0xa   :  { %7660 = sst [smem:[#allocation27_spill]] %s7629_s13 }
   0xb   :  { %7661 = sst [smem:[#allocation28_spill]] %s7630_s14 }
   0xc   :  { %7662 = sst [smem:[#allocation29_spill]] %s7631_s15 }
   0xd   :  { %7663 = sst [smem:[#allocation30_spill]] %s7632_s16 }
   0xe   :  { %23 = vsyncpa [#allocation4], 0 }
   0xf   :  { %25 = vsyncpa [#allocation4 + $0x1], 0  ;;  %s6209_s24 = smov 0   ;;  %s6211_s25 = smov 0  }
  0x10   :  { %s6213_s26 = smov 0   ;;  %s6215_s27 = smov 0  }
  0x11   :  { %s6217_s28 = smov 0   ;;  %s6219_s29 = smov 0  }
  0x12   :  { %s6221_s0 = smov 0   ;;  %s6223_s30 = smov 0  }
  0x13 LB: > { %7664 = sst [smem:[#allocation6_spill]] %s6079_s24  ;;  %s5402_s18 = sadd.s32 4294967295, %s6107_s30   ;;  %s6107_s30 = sphi %s6223_s30, %s31_s30   ;;  %s6103_s0 = sphi %s6221_s0, %s7706_s0   ;;  %s6099_s29 = sphi %s6219_s29, %s7705_s29   ;;  %s6095_s28 = sphi %s6217_s28, %s7704_s28   ;;  %s6091_s27 = sphi %s6215_s27, %s7703_s27   ;;  %s6087_s26 = sphi %s6213_s26, %s7702_s26   ;;  %s6083_s25 = sphi %s6211_s25, %s7701_s25   ;;  %s6079_s24 = sphi %s6209_s24, %s7700_s24  }
  0x14   : > { %7665 = sst [smem:[#allocation7_spill]] %s6083_s25  ;;  %s5403_s19 = sadd.s32 4294967294, %s6107_s30  }
  0x15   : > { %7666 = sst [smem:[#allocation8_spill]] %s6087_s26  ;;  %s40_s1 = sadd.s32 1, %s6099_s29 }
  0x16   : > { %7667 = sst [smem:[#allocation9_spill]] %s6095_s28  ;;  %p41_p0 = scmp.ge.s32.totalorder %s40_s1, 2 }
  0x17   : > { %7668 = sst [smem:[#allocation10_spill]] %s6099_s29  ;;  %s43_s20 = sadd.s32 1, %s6103_s0 }
  0x18   : > { %7669 = sst [smem:[#allocation11_spill]] %s6103_s0  ;;  %p441_p1 = scmp.ne.s32.totalorder %s6087_s26, %s6083_s25 }
  0x19   : > { %7670 = sst [smem:[#allocation12_spill]] %s6107_s30  ;;  %p442_p2 = scmp.eq.s32.totalorder %s5402_s18, 3 }
  0x1a   : > { %s7708_s1 = smov (%p41_p0, %s40_s1), 0  ;;  %s7710_s20 = smov (!%p41_p0, %s43_s20), %s6103_s0 }
  0x1b   : > { %7671 = sst [smem:[#allocation13_spill]] %s7708_s1  ;;  %p6258_p3 = por %p442_p2, %p441_p1 }
  0x1c   : > { %p447_p4 = scmp.ne.s32.totalorder %s6083_s25, %s6079_s24  ;;  %p45_p5 = scmp.ge.s32.totalorder %s7710_s20, 2 }
  0x1d   : > { %s7672_s21 = scalar_select %p6258_p3, 1, 0 }
  0x1e   : > { %p448_p6 = scmp.eq.s32.totalorder %s5403_s19, 3  ;;  %p5406_p7 = scmp.ge.s32.totalorder %s6107_s30, 1 }
  0x1f   : > { %7673 = sst [smem:[#allocation14_spill]] %s7672_s21  ;;  %p579_p8 = scmp.lt.s32.totalorder %s6107_s30, 5 }
  0x20   : > { %s7712_s20 = smov (%p45_p5, %s7710_s20), 0  ;;  %p6268_p9 = por %p448_p6, %p447_p4 }
  0x21   : > { %7674 = sst [smem:[#allocation15_spill]] %s7712_s20  ;;  %p580_p10 = pnand %p5406_p7, %p579_p8 }
  0x22   : > { %s7675_s22 = scalar_select %p6268_p9, 1, 0 }
  0x23   : > { %s428_s23 = ssub.s32 %s6103_s0, %s7712_s20  ;;  %s431_s18 = sadd.s32 1, %s6087_s26 }
  0x24   : > { %7676 = sst [smem:[#allocation16_spill]] %s7675_s22  ;;  %p429_p11 = scmp.eq.s32.totalorder %s428_s23, 0 }
  0x25   : > { %583 = sbr.rel (%p580_p10) target bundleno = 3582 (0xdfe), region = 84  ;;  %s7643_s19 = sand.u32 (!%p580_p10), 1, %s6083_s25  }
  0x26   : > { %s6276_s1 = scalar_select %p429_p11, %s6087_s26, %s431_s18  }
  0x27   : > { %p670_p12 = scmp.lt.s32.totalorder (!%p580_p10), %s6095_s28, 1  ;;  %s6282_s29 = sshll.u32 (!%p580_p10), %s7643_s19, 1 }
  0x28   : > { %7677 = sst [smem:[#allocation17_spill]] %s6276_s1  ;;  %p674_p13 = scmp.lt.s32.totalorder (!%p580_p10), %s6091_s27, 1 }
  0x29   : > { %s7678_s1 = sld [smem:[#allocation18_spill]] (!%p580_p10)  ;;  %s7679_s3 = sld [smem:[#allocation21_spill]] (!%p580_p10) }
  0x2a   : > { %s7680_s4 = sld [smem:[#allocation22_spill]] (!%p580_p10)  ;;  %s7681_s5 = sld [smem:[#allocation23_spill]] (!%p580_p10) }
  0x2b   : > { %s7682_s6 = sld [smem:[#allocation24_spill]] (!%p580_p10)  ;;  %p5422_p0 = scmp.ne.s32.totalorder (!%p580_p10), %s6091_s27, 0 }
  0x2c   : > { %s671_s22 = scalar_select %p670_p12, %s6095_s28, 1 }
  0x2d   : > { %s6287_s24 = scalar_select %p674_p13, %s6091_s27, 1 }
  0x2e   : > { %s5408_s23 = sshll.u32 %s671_s22, 3  ;;  %s5762_s18 = sshll.u32 %s671_s22, 7  ;;  %vm720_vm0 = vcmask (!%p5422_p0), 521216  }
  0x2f   : > { %s673_s26 = scalar_lea.vmem %s7678_s1, %s5408_s23  ;;  %s5409_s30 = sshll.u32 %s6287_s24, 2 }
  0x30   : > { %s6296_s21 = scalar_lea.vmem %s7679_s3, %s5409_s30  ;;  %s5758_s25 = sshll.u32 %s6287_s24, 6  ;;  %v719_v0 = vld [vmem:[%s673_s26] sm:$0x3f] (!%p5422_p0) }
  0x31   : > { %s6302_s15 = scalar_lea.vmem %s7680_s4, %s5758_s25  ;;  %s5412_s11 = sshll.u32 %s6287_s24, 1  ;;  %721 = vst.msk [vmem:[#allocation2] sm:$0x3f] (!%p5422_p0), %vm720_vm0, %v719_v0 }
  0x32   : > { %s6308_s22 = scalar_lea.vmem %s7681_s5, %s5412_s11  ;;  %s5759_s0 = sshll.u32 %s6287_s24, 5 }
  0x33   : > { %s6314_s23 = scalar_lea.vmem %s7682_s6, %s5759_s0  ;;  %s6319_s19 = scalar_lea.vmem %s7623_s7, %s5759_s0 }
  0x34   : > { %s699_s3 = scalar_lea.vmem %s7624_s8, %s6287_s24  ;;  %s6328_s12 = scalar_lea.vmem %s7625_s9, %s5758_s25 }
  0x35   : > { %s6333_s1 = scalar_lea.vmem %s7626_s10, %s5412_s11  ;;  %s6338_s16 = scalar_lea.vmem %s7633_s17, %s5762_s18 }
  0x36   : > { %s662_s0 = scalar_lea.vmem [#allocation3], %s6282_s29  ;;  %718 = sbr.rel (%p5422_p0) target bundleno = 61 (0x3d), region = 88 }
  0x3d PF: > { %v6342_v1 = vld [vmem:[#allocation2] sm:$0x3f]  ;;  %vm725_vm1 = vcmask 521216   ;;  %v5970_v10 = vld [vmem:[%s6302_s15 + $0x14] ss:$8 sps:$4 sm:$0xff]   ;;  %v6109_v12 = vmov 0   ;;  %v740_v19 = vlaneseq }
  0x3e   : > { %v726_v2 = vsel %vm725_vm1, %v6342_v1, 0.0  ;;  %v5967_v8 = vld [vmem:[%s6302_s15 + $0x4] ss:$8 sps:$4 sm:$0xff]   ;;  %v5969_v9 = vld [vmem:[%s6302_s15] ss:$8 sps:$4 sm:$0xff]   ;;  %847 = vmatprep.mubr.bf16.mxu0 %v6109_v12  ;;  %vm811_vm2 = vcmask 523264  }
  0x3f   : > { %727 = vadd.xlane.f32.xlu0 %v726_v2  ;;  %815 = vmatprep.subr.bf16.mxu0 %v5967_v8  ;;  %v5972_v11 = vld [vmem:[%s6302_s15 + $0x10] ss:$8 sps:$4 sm:$0xff]   ;;  %v5973_v13 = vld [vmem:[%s6302_s15 + $0x24] ss:$8 sps:$4 sm:$0xff]   ;;  %v5975_v14 = vld [vmem:[%s6302_s15 + $0x20] ss:$8 sps:$4 sm:$0xff]  }
  0x40   : > { %816 = vmatpush1.bf16.msra.mxu0 %v5969_v9  ;;  %v5976_v15 = vld [vmem:[%s6302_s15 + $0x34] ss:$8 sps:$4 sm:$0xff]   ;;  %v5978_v16 = vld [vmem:[%s6302_s15 + $0x30] ss:$8 sps:$4 sm:$0xff]   ;;  %v6356_v21 = vshrl.u32 %v740_v19, 7  ;;  %v6110_v33 = vmov 0.0  }
  0x41   : > { %817 = vmatprep.subr.bf16.mxu0 %v5970_v10  ;;  %v6362_v23 = vld [vmem:[%s6296_s21] sm:$0xf]  ;;  %5804 = vmatprep.subr.bf16.mxu1 %v6110_v33  ;;  %vm6111_vm3 = vmmov 0   ;;  %s6112_s2 = smov 96   ;;  %s6113_s4 = smov 64   ;;  %vm871_vm4 = vcmask 261120  }
  0x42   : > { %v6359_v22 = vsub.s32 0, %v6356_v21  ;;  %v6365_v24 = vsub.s32 1, %v6356_v21  ;;  %v759_v32 = vld [vmem:[%s6308_s22] sm:$0x3]  ;;  %5806 = vmatprep.mubr.msk.bf16.mxu1 %vm6111_vm3, %v6110_v33  ;;  %vm1002_vm5 = vcmask 1042432   ;;  %s7683_s11 = sld [smem:[#allocation19_spill]] }
  0x43   : > { %vm973_vm7 = vcmask 46080   ;;  %vm998_vm8 = vcmask 48128   ;;  %p5456_p1 = scmp.eq.s32.totalorder %s6091_s27, 1 }
  0x44   : > { %818 = vmatpush1.bf16.msra.mxu0 %v5972_v11  ;;  %v743_v25 = vrot.slane %v6362_v23, %v6359_v22  ;;  %v748_v28 = vrot.slane %v6362_v23, %v6365_v24  ;;  %v764_v34 = vrot.slane %v759_v32, %v6359_v22  ;;  %v768_v42 = vrot.slane %v759_v32, %v6365_v24 }
  0x45   : > { %819 = vmatprep.subr.bf16.mxu0 %v5973_v13 }
  0x48   : > { %820 = vmatpush1.bf16.msra.mxu0 %v5975_v14  ;;  %v967_v51 = vld [vmem:[%s7683_s11] sm:$0x3f] }
  0x49   : > { %821 = vmatprep.subr.bf16.mxu0 %v5976_v15  ;;  %vm968_vm6 = vcmp.gt.f32.partialorder %v967_v51, 0.5  ;;  %v5979_v14 = vld [vmem:[%s6314_s23] sm:$0xff]  }
  0x4c   : > { %822 = vmatpush1.bf16.msra.mxu0 %v5978_v16  ;;  %v5980_v16 = vld [vmem:[%s6314_s23 + $0x8] sm:$0xff]  }
  0x4d   : > { %5798 = vmatprep.subr.bf16.mxu0 %v6110_v33 }
  0xcc   : > { %v728_v3 = vpop.xlane.xlu0 %727 }
  0xcd   : > { %v730_v4 = vmul.f32 0.015625, %v728_v3 }
  0xcf   : > { %v731_v5 = vsub.f32 %v6342_v1, %v730_v4 }
  0xd1   : > { %v732_v6 = vmul.f32 %v731_v5, %v731_v5 }
  0xd3   : > { %v733_v7 = vsel %vm725_vm1, %v732_v6, 0.0 }
  0xd4   : > { %734 = vadd.xlane.f32.xlu0 %v733_v7 }
 0x161   : > { %v735_v17 = vpop.xlane.xlu0 %734 }
 0x162   : > { %v736_v18 = vmul.f32 0.015625, %v735_v17 }
 0x164   : > { %v737_v20 = vadd.f32 1e-05, %v736_v18 }
 0x166   : > { %5995 = vrsqrt.f32 %v737_v20 }
 0x170   : > { %v5996_v26 = vpop.eup %5995 }
 0x171   : > { %v739_v27 = vmul.f32 %v5996_v26, %v731_v5 }
 0x173   : > { %v744_v29 = vmul.f32 %v743_v25, %v739_v27  ;;  %v5981_v27 = vld [vmem:[%s6314_s23 + $0x10] sm:$0xff]  }
 0x175   : > { %v749_v30 = vadd.f32 %v748_v28, %v744_v29  ;;  %v5982_v29 = vld [vmem:[%s6314_s23 + $0x18] sm:$0xff]  }
 0x177   : > { %v750_v31 = vpack.c.bf16 %v749_v30, %v749_v30 }
 0x179   : > { %5431 = vmatmul.mubr.msk.bf16.vlgmr.msra.gmra.mrb[0].mxu0 %vm811_vm2, %v750_v31 }
 0x17a   : > { %5800 = vmatprep.mubr.msk.bf16.mxu0 %vm6111_vm3, %v6110_v33 }
 0x24c   : > { %v849_v35 = vpop.f32.mrb[0].mxu0 }
 0x24d   : > { %v850_v36 = vadd.f32 %v849_v35, %v764_v34  ;;  %v851_v37 = vpop.f32.mrb[1].mxu0 }
 0x24e   : > { %v853_v38 = vpop.f32.mrb[2].mxu0  ;;  %v852_v45 = vadd.f32 %v851_v37, %v768_v42 }
 0x24f   : > { %v854_v39 = vpop.f32.mrb[3].mxu0  ;;  %857 = vrot.lane.b32.xlu1 %v850_v36, %s6112_s2  ;;  %v860_v40 = vpack.c.bf16 %v850_v36, %v850_v36 }
 0x250   : > { %v866_v47 = vpack.c.bf16 %v852_v45, %v852_v45 }
 0x252   : > { %v1004_v48 = vsel %vm1002_vm5, %v866_v47, 0 }
 0x253   : > { %869 = vrot.lane.b32.xlu1 %v860_v40, %s6113_s4 }
 0x2c1   : > { %v858_v41 = vpop.permute.xlu1 %857 }
 0x2c2   : > { %v861_v43 = vpack.c.bf16 %v858_v41, %v858_v41 }
 0x2c4   : > { %919 = vrot.lane.b32.xlu0 %v861_v43, %s6113_s4 }
 0x2c5   : > { %v870_v44 = vpop.permute.xlu1 %869 }
 0x2c6   : > { %v876_v46 = vsel %vm871_vm4, %v870_v44, 0 }
 0x2c7   : > { %5799 = vmatpush3.bf16.xpose.msra.mxu0 %v876_v46 }
 0x2c8   : > { %5810 = vmatprep.subr.bf16.mxu0 %v6110_v33 }
 0x2ce   : > { %5801 = vmatmul.mubr.msk.bf16.vlgmr.msra.gmra.mrb[4].mxu0 %vm871_vm4, %v860_v40 }
 0x2cf   : > { %5811 = vmatpush3.bf16.msra.mxu0 %v1004_v48  ;;  %5812 = vmatprep.mubr.msk.bf16.mxu0 %vm6111_vm3, %v6110_v33 }
 0x2d0   : > { %5822 = vmatprep.subr.bf16.mxu0 %v6110_v33 }
 0x336   : > { %v920_v49 = vpop.permute.xlu0 %919 }
 0x337   : > { %v925_v50 = vsel %vm871_vm4, %v920_v49, 0 }
 0x338   : > { %5805 = vmatpush3.bf16.xpose.msra.mxu1 %v925_v50 }
 0x339   : > { %5816 = vmatprep.subr.bf16.mxu1 %v6110_v33 }
 0x33f   : > { %5807 = vmatmul.mubr.msk.bf16.vlgmr.msra.gmra.mrb[0].mxu1 %vm871_vm4, %v861_v43 }
 0x340   : > { %5818 = vmatprep.mubr.msk.bf16.mxu1 %vm6111_vm3, %v6110_v33 }
 0x3a1   : > { %v912_v52 = vpop.f32.mrb[4].mxu0 }
 0x3a2   : > { %v971_v53 = vsel %vm968_vm6, %v912_v52, -100000.0  ;;  %v5802_v54 = vpop.f32.mrb[5].mxu0 }
 0x3a3   : > { %v915_v55 = vpop.f32.mrb[6].mxu0  ;;  %v974_v56 = vsel %vm973_vm7, %v971_v53, -inf }
 0x3a4   : > { %975 = vmax.xlane.f32.xlu1 %v974_v56  ;;  %v5803_v57 = vpop.f32.mrb[7].mxu0 }
 0x412   : > { %v961_v58 = vpop.f32.mrb[0].mxu1 }
 0x413   : > { %v972_v59 = vsel %vm968_vm6, %v961_v58, -100000.0  ;;  %v5808_v60 = vpop.f32.mrb[1].mxu1 }
 0x414   : > { %v964_v61 = vpop.f32.mrb[2].mxu1  ;;  %v977_v62 = vsel %vm973_vm7, %v972_v59, -inf }
 0x415   : > { %978 = vmax.xlane.f32.xlu0 %v977_v62  ;;  %v5809_v63 = vpop.f32.mrb[3].mxu1  ;;  %v5983_v62 = vld [vmem:[%s6319_s19] sm:$0xff]  }
 0x416   : > { %v5985_v63 = vld [vmem:[%s6319_s19 + $0x10] sm:$0xff]  }
 0x431   : > { %v976_v0 = vpop.xlane.xlu1 %975 }
 0x432   : > { %v980_v2 = vsub.f32 %v971_v53, %v976_v0  ;;  %v5986_v0 = vld [vmem:[%s6319_s19 + $0x18] sm:$0xff]  }
 0x434   : > { %v982_v3 = vmul.f32 1.442695, %v980_v2  ;;  %v5987_v2 = vld [vmem:[%s6328_s12] sm:$0xff]  }
 0x436   : > { %5997 = vpow2.f32 %v982_v3  ;;  %v5988_v3 = vld [vmem:[%s6328_s12 + $0x8] sm:$0xff]  }
 0x440   : > { %v5998_v4 = vpop.eup %5997 }
 0x441   : > { %v986_v5 = vsel %vm973_vm7, %v5998_v4, 0.0 }
 0x442   : > { %987 = vadd.xlane.f32.xlu1 %v986_v5  ;;  %v5990_v5 = vld [vmem:[%s6328_s12 + $0x18] sm:$0xff]  }
 0x4a2   : > { %v979_v6 = vpop.xlane.xlu0 %978 }
 0x4a3   : > { %v981_v7 = vsub.f32 %v972_v59, %v979_v6  ;;  %v5991_v6 = vld [vmem:[%s6328_s12 + $0x20] sm:$0xff]  }
 0x4a5   : > { %v984_v8 = vmul.f32 1.442695, %v981_v7  ;;  %v5992_v7 = vld [vmem:[%s6328_s12 + $0x28] sm:$0xff]  }
 0x4a7   : > { %5999 = vpow2.f32 %v984_v8 }
 0x4b1   : > { %v6000_v9 = vpop.eup %5999 }
 0x4b2   : > { %v989_v10 = vsel %vm973_vm7, %v6000_v9, 0.0 }
 0x4b3   : > { %990 = vadd.xlane.f32.xlu1 %v989_v10 }
 0x4c4   : > { %863 = vrot.lane.b32.xlu1 %v852_v45, %s6112_s2  ;;  %v6425_v45 = vld [vmem:[%s6333_s1] sm:$0x3] }
 0x4c5   : > { %v1219_v52 = vrot.slane %v6425_v45, %v6359_v22 }
 0x4cf   : > { %v988_v11 = vpop.xlane.xlu1 %987 }
 0x4d0   : > { %6001 = vrcp.f32 %v988_v11  ;;  %v6458_v11 = vsub.s32 2, %v6356_v21 }
 0x4da   : > { %v6002_v12 = vpop.eup %6001 }
 0x4db   : > { %v994_v13 = vmul.f32 %v6002_v12, %v5998_v4  ;;  %v5989_v4 = vld [vmem:[%s6328_s12 + $0x10] sm:$0xff]   ;;  %v6461_v12 = vsub.s32 3, %v6356_v21 }
 0x4dd   : > { %v996_v15 = vpack.c.bf16 %v994_v13, %v994_v13  ;;  %v1237_v13 = vrot.slane %v6362_v23, %v6458_v11 }
 0x4df   : > { %5813 = vmatmul.mubr.msk.bf16.vlgmr.msra.gmra.mrb[8].mxu0 %vm998_vm8, %v996_v15 }
 0x4e0   : > { %5823 = vmatpush3.bf16.msra.mxu0 %v5979_v14  ;;  %5826 = vmatprep.mubr.msk.bf16.mxu0 %vm6111_vm3, %v6110_v33 }
 0x4e1   : > { %5824 = vmatprep.subr.bf16.mxu0 %v6110_v33 }
 0x4e4   : > { %5825 = vmatpush3.bf16.msra.mxu0 %v5980_v16  ;;  %v1242_v16 = vrot.slane %v6362_v23, %v6461_v12 }
 0x4e5   : > { %5838 = vmatprep.subr.bf16.mxu0 %v6110_v33 }
 0x540   : > { %v991_v17 = vpop.xlane.xlu1 %990 }
 0x541   : > { %6003 = vrcp.f32 %v991_v17 }
 0x544   : > { %v864_v18 = vpop.permute.xlu1 %863 }
 0x545   : > { %v867_v19 = vpack.c.bf16 %v864_v18, %v864_v18 }
 0x547   : > { %v1050_v20 = vsel %vm1002_vm5, %v867_v19, 0 }
 0x548   : > { %5817 = vmatpush3.bf16.msra.mxu1 %v1050_v20  ;;  %v5993_v20 = vld [vmem:[%s6328_s12 + $0x30] sm:$0xff]  }
 0x549   : > { %5830 = vmatprep.subr.bf16.mxu1 %v6110_v33 }
 0x54b   : > { %v6004_v25 = vpop.eup %6003 }
 0x54c   : > { %v995_v26 = vmul.f32 %v6004_v25, %v6000_v9  ;;  %v5994_v25 = vld [vmem:[%s6328_s12 + $0x38] sm:$0xff]  }
 0x54e   : > { %v997_v28 = vpack.c.bf16 %v995_v26, %v995_v26  ;;  %v5442_v26 = vld [vmem:[%s699_s3] ss:$0 sm:$0xff] }
 0x550   : > { %5819 = vmatmul.mubr.msk.bf16.vlgmr.msra.gmra.mrb[4].mxu1 %vm998_vm8, %v997_v28 }
 0x551   : > { %5831 = vmatpush3.bf16.msra.mxu1 %v5981_v27  ;;  %5834 = vmatprep.mubr.msk.bf16.mxu1 %vm6111_vm3, %v6110_v33 }
 0x552   : > { %5832 = vmatprep.subr.bf16.mxu1 %v6110_v33 }
 0x555   : > { %5833 = vmatpush3.bf16.msra.mxu1 %v5982_v29 }
 0x556   : > { %5850 = vmatprep.subr.bf16.mxu1 %v6110_v33 }
 0x5b2   : > { %v1040_v30 = vpop.f32.mrb[8].mxu0 }
 0x5b3   : > { %v1092_v31 = vpack.c.bf16 %v1040_v30, %v1040_v30  ;;  %v5814_v32 = vpop.f32.mrb[9].mxu0 }
 0x5b4   : > { %v1043_v34 = vpop.f32.mrb[10].mxu0 }
 0x5b5   : > { %v5815_v35 = vpop.f32.mrb[11].mxu0  ;;  %5827 = vmatmul.mubr.msk.bf16.vlgmr.msra.gmra.mrb[12].mxu0 %vm871_vm4, %v1092_v31  ;;  %v1437_v34 = vrot.slane %v6425_v45, %v6365_v24 }
 0x5b6   : > { %5846 = vmatprep.mubr.msk.bf16.mxu0 %vm6111_vm3, %v6110_v33  ;;  %5839 = vmatpush3.bf16.msra.mxu0 %v5983_v62 }
 0x5b7   : > { %5840 = vmatprep.subr.bf16.mxu0 %v6110_v33 }
 0x623   : > { %v1086_v36 = vpop.f32.mrb[4].mxu1 }
 0x624   : > { %v1093_v37 = vpack.c.bf16 %v1086_v36, %v1086_v36  ;;  %v5820_v38 = vpop.f32.mrb[5].mxu1 }
 0x625   : > { %v1089_v39 = vpop.f32.mrb[6].mxu1 }
 0x626   : > { %v5821_v40 = vpop.f32.mrb[7].mxu1  ;;  %5835 = vmatmul.mubr.msk.bf16.vlgmr.msra.gmra.mrb[8].mxu1 %vm871_vm4, %v1093_v37 }
 0x627   : > { %5866 = vmatprep.mubr.msk.bf16.mxu1 %vm6111_vm3, %v6110_v33  ;;  %5851 = vmatpush3.bf16.msra.mxu1 %v5987_v2 }
 0x628   : > { %5852 = vmatprep.subr.bf16.mxu1 %v6110_v33 }
 0x62b   : > { %5853 = vmatpush3.bf16.msra.mxu1 %v5988_v3 }
 0x62c   : > { %5854 = vmatprep.subr.bf16.mxu1 %v6110_v33 }
 0x62f   : > { %5855 = vmatpush3.bf16.msra.mxu1 %v5989_v4 }
 0x630   : > { %5856 = vmatprep.subr.bf16.mxu1 %v6110_v33 }
 0x633   : > { %5857 = vmatpush3.bf16.msra.mxu1 %v5990_v5 }
 0x634   : > { %5858 = vmatprep.subr.bf16.mxu1 %v6110_v33 }
 0x637   : > { %5859 = vmatpush3.bf16.msra.mxu1 %v5991_v6 }
 0x638   : > { %5860 = vmatprep.subr.bf16.mxu1 %v6110_v33 }
 0x63b   : > { %5861 = vmatpush3.bf16.msra.mxu1 %v5992_v7 }
 0x63c   : > { %5862 = vmatprep.subr.bf16.mxu1 %v6110_v33 }
 0x63f   : > { %5863 = vmatpush3.bf16.msra.mxu1 %v5993_v20 }
 0x640   : > { %5864 = vmatprep.subr.bf16.mxu1 %v6110_v33 }
 0x643   : > { %5865 = vmatpush3.bf16.msra.mxu1 %v5994_v25 }
 0x688   : > { %v1151_v41 = vpop.f32.mrb[12].mxu0 }
 0x689   : > { %v5828_v42 = vpop.f32.mrb[13].mxu0  ;;  %v1212_v47 = vsel %vm725_vm1, %v1151_v41, 0.0 }
 0x68a   : > { %v1154_v43 = vpop.f32.mrb[14].mxu0 }
 0x68b   : > { %v5829_v44 = vpop.f32.mrb[15].mxu0 }
 0x6f9   : > { %v1206_v46 = vpop.f32.mrb[8].mxu1 }
 0x6fa   : > { %v1213_v48 = vsel %vm725_vm1, %v1206_v46, 0.0  ;;  %v5836_v49 = vpop.f32.mrb[9].mxu1 }
 0x6fb   : > { %v1214_v50 = vadd.f32 %v1213_v48, %v1212_v47  ;;  %v1209_v51 = vpop.f32.mrb[10].mxu1 }
 0x6fc   : > { %v5837_v53 = vpop.f32.mrb[11].mxu1 }
 0x6fd   : > { %v1215_v54 = vadd.f32 %v1214_v50, %v6342_v1  ;;  %v5984_v1 = vld [vmem:[%s6319_s19 + $0x8] sm:$0xff]  }
 0x6fe   : > { %5841 = vmatpush3.bf16.msra.mxu0 %v5984_v1 }
 0x6ff   : > { %v6432_v55 = vadd.f32 %v1219_v52, %v1215_v54  ;;  %5842 = vmatprep.subr.bf16.mxu0 %v6110_v33 }
 0x701   : > { %v1221_v56 = vsel %vm725_vm1, %v6432_v55, 0.0 }
 0x702   : > { %1222 = vadd.xlane.f32.xlu0 %v1221_v56  ;;  %5843 = vmatpush3.bf16.msra.mxu0 %v5985_v63 }
 0x703   : > { %5844 = vmatprep.subr.bf16.mxu0 %v6110_v33 }
 0x706   : > { %5845 = vmatpush3.bf16.msra.mxu0 %v5986_v0 }
 0x78f   : > { %v1223_v57 = vpop.xlane.xlu0 %1222 }
 0x790   : > { %v1224_v58 = vmul.f32 0.015625, %v1223_v57 }
 0x792   : > { %v1225_v59 = vsub.f32 %v6432_v55, %v1224_v58 }
 0x794   : > { %v1226_v60 = vmul.f32 %v1225_v59, %v1225_v59 }
 0x796   : > { %v1227_v61 = vsel %vm725_vm1, %v1226_v60, 0.0 }
 0x797   : > { %1228 = vadd.xlane.f32.xlu0 %v1227_v61 }
 0x824   : > { %v1229_v8 = vpop.xlane.xlu0 %1228 }
 0x825   : > { %v1230_v9 = vmul.f32 0.015625, %v1229_v8 }
 0x827   : > { %v1231_v10 = vadd.f32 1e-05, %v1230_v9 }
 0x829   : > { %6005 = vrsqrt.f32 %v1231_v10 }
 0x833   : > { %v6006_v14 = vpop.eup %6005 }
 0x834   : > { %v1233_v15 = vmul.f32 %v6006_v14, %v1225_v59 }
 0x836   : > { %v1238_v17 = vmul.f32 %v1237_v13, %v1233_v15 }
 0x838   : > { %v1243_v18 = vadd.f32 %v1242_v16, %v1238_v17 }
 0x83a   : > { %v1244_v19 = vpack.c.bf16 %v1243_v18, %v1243_v18 }
 0x83c   : > { %5847 = vmatmul.mubr.msk.bf16.vlgmr.msra.gmra.mrb[16].mxu0 %vm811_vm2, %v1244_v19 }
 0x90f   : > { %v1321_v27 = vpop.f32.mrb[16].mxu0 }
 0x910   : > { %v1322_v28 = vadd.f32 %v5442_v26, %v1321_v27  ;;  %v5848_v29 = vpop.f32.mrb[17].mxu0 }
 0x911   : > { %v1324_v23 = vpop.f32.mrb[18].mxu0 }
 0x912   : > { %v1327_v30 = vmax.f32 %v1322_v28, 0.0  ;;  %v5849_v31 = vpop.f32.mrb[19].mxu0 }
 0x914   : > { %v1328_v32 = vpack.c.bf16 %v1327_v30, %v1327_v30 }
 0x916   : > { %5867 = vmatmul.mubr.bf16.vlgmr.msra.gmra.mrb[12].mxu1 %v1328_v32 }
 0x9e6   : > { %1442 = sbr.rel (%p5456_p1) target bundleno = 2543 (0x9ef), region = 92 }
 0x9e9   : > { %v1427_v35 = vpop.f32.mrb[12].mxu1 }
 0x9ea   : > { %v1433_v33 = vadd.f32 %v1427_v35, %v6432_v55  ;;  %v5868_v36 = vpop.f32.mrb[13].mxu1 }
 0x9eb   : > { %v1430_v37 = vpop.f32.mrb[14].mxu1 }
 0x9ec   : > { %v1438_v38 = vadd.f32 %v1437_v34, %v1433_v33  ;;  %v5869_v39 = vpop.f32.mrb[15].mxu1 }
 0x9ee   : > { %1443 = vst.msk [vmem:[#allocation2] sm:$0x3f] %vm725_vm1, %v1438_v38 }
 0x9ef PF: > { %p5457_p2 = scmp.ne.s32.totalorder %s6091_s27, 1 }
 0x9f0   : > { %vm1452_vm9 = vcmask (!%p5457_p2), 1045504   ;;  %s7684_s26 = sld [smem:[#allocation20_spill]] (!%p5457_p2)  ;;  %v6114_v41 = vmov (!%p5457_p2), 0.0   ;;  %vm6115_vm10 = vmmov (!%p5457_p2), 0   ;;  %vm1527_vm11 = vcmask (!%p5457_p2), 519168   ;;  %s7685_s18 = sld [smem:[#allocation26_spill]] (!%p5457_p2) }
 0x9f1   : > { %1447 = sbr.rel (%p5457_p2) target bundleno = 3556 (0xde4), region = 96  ;;  %5870 = vmatprep.subr.mxu0 (!%p5457_p2), %v6114_v41  ;;  %5872 = vmatprep.mubr.msk.f32.mxu0 (!%p5457_p2), %vm6115_vm10, %v6114_v41  ;;  %s7686_s30 = sld [smem:[#allocation28_spill]] (!%p5457_p2)  ;;  %v6116_v16 = vmov (!%p5457_p2), 0  }
 0x9f2   : > { %5871 = vmatpush3.msk.msra.mxu0 (!%p5457_p2), %vm1452_vm9, %v1438_v38  ;;  %5875 = vmatprep.subr.bf16.mxu1 (!%p5457_p2), %v6114_v41  ;;  %s7688_s6 = sld [smem:[#allocation25_spill]] (!%p5457_p2)  ;;  %s7689_s27 = sld [smem:[#allocation29_spill]] (!%p5457_p2) }
 0x9f3   : > { %5883 = vmatprep.mubr.msk.bf16.mxu1 (!%p5457_p2), %vm6115_vm10, %v6114_v41  ;;  %s7691_s14 = sld [smem:[#allocation27_spill]] (!%p5457_p2) }
 0x9f6   : > { %v1448_v40 = vld [vmem:[%s7684_s26] sm:$0xf] (!%p5457_p2)  ;;  %v6008_v57 = vld [vmem:[%s7685_s18 + $0x8] sm:$0xff] (!%p5457_p2)   ;;  %v6009_v2 = vld [vmem:[%s7685_s18 + $0x10] sm:$0xff] (!%p5457_p2)  }
 0x9f7   : > { %5873 = vmatmul.mubr.msk.f32.vlgmr.msra.gmra.mrb[0].mxu0 (!%p5457_p2), %vm998_vm8, %v1448_v40  ;;  %v6007_v50 = vld [vmem:[%s7685_s18] sm:$0xff] (!%p5457_p2)   ;;  %s7687_s19 = smov (!%p5457_p2), %s7686_s30  ;;  %v6010_v7 = vld [vmem:[%s7685_s18 + $0x18] sm:$0xff] (!%p5457_p2)  }
 0x9f8   : > { %v1635_v51 = vld [vmem:[%s7686_s30] sm:$0xff]  ;;  %5876 = vmatpush3.bf16.msra.mxu1 %v6007_v50  ;;  %v1636_v62 = vld [vmem:[%s7687_s19 + $0x8] sm:$0xff]  ;;  %v1637_v10 = vld [vmem:[%s7687_s19 + $0x10] sm:$0xff]  ;;  %3544 = vmatprep.mubr.bf16.mxu0 %v6116_v16  ;;  %s7690_s21 = smov %s7689_s27 }
 0x9f9   : > { %v1667_v52 = vld [vmem:[%s7687_s19 + $0x100] sm:$0xff]  ;;  %5877 = vmatprep.subr.bf16.mxu1 %v6114_v41  ;;  %v1668_v1 = vld [vmem:[%s7687_s19 + $0x108] sm:$0xff]  ;;  %v1669_v13 = vld [vmem:[%s7687_s19 + $0x110] sm:$0xff] }
 0x9fa   : > { %v5466_v53 = vcombine.low %v1635_v51, %v1667_v52  ;;  %v5467_v54 = vcombine.high %v1635_v51, %v1667_v52  ;;  %v1699_v55 = vld [vmem:[%s7687_s19 + $0x200] sm:$0xff]  ;;  %v5468_v0 = vcombine.low %v1636_v62, %v1668_v1  ;;  %v5469_v8 = vcombine.high %v1636_v62, %v1668_v1  ;;  %v1700_v23 = vld [vmem:[%s7687_s19 + $0x208] sm:$0xff]  ;;  %v1701_v32 = vld [vmem:[%s7687_s19 + $0x210] sm:$0xff] }
 0x9fb   : > { %v1731_v56 = vld [vmem:[%s7687_s19 + $0x300] sm:$0xff]  ;;  %v5471_v14 = vcombine.high %v1637_v10, %v1669_v13  ;;  %v5470_v15 = vcombine.low %v1637_v10, %v1669_v13  ;;  %v1732_v30 = vld [vmem:[%s7687_s19 + $0x308] sm:$0xff]  ;;  %v1733_v34 = vld [vmem:[%s7687_s19 + $0x310] sm:$0xff] }
 0x9fc   : > { %v5531_v58 = vcombine.high %v1699_v55, %v1731_v56  ;;  %v1763_v59 = vld [vmem:[%s7687_s19 + $0x400] sm:$0xff]  ;;  %3512 = vmatprep.subr.bf16.mxu0 %v5467_v54  ;;  %v5530_v61 = vcombine.low %v1699_v55, %v1731_v56  ;;  %5878 = vmatpush3.bf16.msra.mxu1 %v6008_v57  ;;  %v5533_v33 = vcombine.high %v1700_v23, %v1732_v30  ;;  %v1764_v36 = vld [vmem:[%s7687_s19 + $0x408] sm:$0xff]  ;;  %v1861_v50 = vld [vmem:[%s7687_s19 + $0x710] sm:$0xff] }
 0x9fd   : > { %v1795_v60 = vld [vmem:[%s7687_s19 + $0x500] sm:$0xff]  ;;  %3513 = vmatpush1.bf16.msra.mxu0 %v5466_v53  ;;  %5879 = vmatprep.subr.bf16.mxu1 %v6114_v41  ;;  %v1796_v37 = vld [vmem:[%s7687_s19 + $0x508] sm:$0xff]  ;;  %v5535_v39 = vcombine.high %v1701_v32, %v1733_v34  ;;  %v5532_v40 = vcombine.low %v1700_v23, %v1732_v30  ;;  %v1638_v53 = vld [vmem:[%s7687_s19 + $0x18] sm:$0xff] }
 0x9fe   : > { %3514 = vmatprep.subr.bf16.mxu0 %v5531_v58  ;;  %v5595_v63 = vcombine.high %v1763_v59, %v1795_v60  ;;  %v1827_v3 = vld [vmem:[%s7687_s19 + $0x600] sm:$0xff]  ;;  %v5594_v5 = vcombine.low %v1763_v59, %v1795_v60  ;;  %v1670_v54 = vld [vmem:[%s7687_s19 + $0x118] sm:$0xff] }
 0x9ff   : > { %v1859_v4 = vld [vmem:[%s7687_s19 + $0x700] sm:$0xff]  ;;  %v5473_v59 = vcombine.high %v1638_v53, %v1670_v54  ;;  %v1734_v62 = vld [vmem:[%s7687_s19 + $0x318] sm:$0xff] }
 0xa00   : > { %v5659_v6 = vcombine.high %v1827_v3, %v1859_v4  ;;  %5880 = vmatpush3.bf16.msra.mxu1 %v6009_v2  ;;  %v5658_v9 = vcombine.low %v1827_v3, %v1859_v4  ;;  %v1526_v20 = vld [vmem:[%s7688_s6] sm:$0x3] }
 0xa01   : > { %3515 = vmatpush1.bf16.msra.mxu0 %v5530_v61  ;;  %5881 = vmatprep.subr.bf16.mxu1 %v6114_v41  ;;  %v1544_v25 = vrot.slane %v1526_v20, %v6359_v22  ;;  %v1549_v28 = vrot.slane %v1526_v20, %v6365_v24  ;;  %v1765_v41 = vld [vmem:[%s7687_s19 + $0x410] sm:$0xff]  ;;  %v1639_v57 = vld [vmem:[%s7687_s19 + $0x20] sm:$0xff]  ;;  %v1702_v61 = vld [vmem:[%s7687_s19 + $0x218] sm:$0xff] }
 0xa02   : > { %3516 = vmatprep.subr.bf16.mxu0 %v5595_v63  ;;  %v1671_v58 = vld [vmem:[%s7687_s19 + $0x120] sm:$0xff]  ;;  %v5472_v63 = vcombine.low %v1638_v53, %v1670_v54  ;;  %v5537_v3 = vcombine.high %v1702_v61, %v1734_v62  ;;  %v1864_v53 = vld [vmem:[%s7687_s19 + $0x728] sm:$0xff] }
 0xa03   : > { %v5475_v1 = vcombine.high %v1639_v57, %v1671_v58  ;;  %v1735_v2 = vld [vmem:[%s7687_s19 + $0x320] sm:$0xff]  ;;  %v5474_v4 = vcombine.low %v1639_v57, %v1671_v58  ;;  %v1865_v57 = vld [vmem:[%s7687_s19 + $0x730] sm:$0xff] }
 0xa04   : > { %5882 = vmatpush3.bf16.msra.mxu1 %v6010_v7  ;;  %v1799_v10 = vld [vmem:[%s7687_s19 + $0x520] sm:$0xff] }
 0xa05   : > { %3517 = vmatpush1.bf16.msra.mxu0 %v5594_v5  ;;  %3553 = vmatprep.subr.bf16.mxu1 %v5469_v8  ;;  %v1766_v5 = vld [vmem:[%s7687_s19 + $0x418] sm:$0xff]  ;;  %v5536_v8 = vcombine.low %v1702_v61, %v1734_v62  ;;  %v1831_v20 = vld [vmem:[%s7687_s19 + $0x620] sm:$0xff] }
 0xa06   : > { %3518 = vmatprep.subr.bf16.mxu0 %v5659_v6  ;;  %v1798_v6 = vld [vmem:[%s7687_s19 + $0x518] sm:$0xff] }
 0xa07   : > { %v5601_v13 = vcombine.high %v1766_v5, %v1798_v6  ;;  %v1674_v61 = vld [vmem:[%s7687_s19 + $0x138] sm:$0xff] }
 0xa09   : > { %3519 = vmatpush1.bf16.msra.mxu0 %v5658_v9  ;;  %v1767_v9 = vld [vmem:[%s7687_s19 + $0x420] sm:$0xff] }
 0xa0a   : > { %3594 = vmatprep.subr.bf16.mxu0 %v5471_v14 }
 0xaca   : > { %v1522_v42 = vpop.f32.mrb[0].mxu0 }
 0xacb   : > { %v5874_v43 = vpop.f32.mrb[1].mxu0  ;;  %v1528_v44 = vsel %vm1527_vm11, %v1522_v42, 0.0 }
 0xacc   : > { %1529 = vadd.xlane.f32.xlu0 %v1528_v44  ;;  %v5597_v43 = vcombine.high %v1764_v36, %v1796_v37  ;;  %v5534_v44 = vcombine.low %v1701_v32, %v1733_v34  ;;  %v1673_v32 = vld [vmem:[%s7687_s19 + $0x130] sm:$0xff] }
 0xb59   : > { %v1530_v45 = vpop.xlane.xlu0 %1529 }
 0xb5a   : > { %v1531_v46 = vmul.f32 0.015625, %v1530_v45  ;;  %v1828_v45 = vld [vmem:[%s7687_s19 + $0x608] sm:$0xff] }
 0xb5c   : > { %v1532_v47 = vsub.f32 %v1522_v42, %v1531_v46  ;;  %v1797_v42 = vld [vmem:[%s7687_s19 + $0x510] sm:$0xff]  ;;  %v1860_v46 = vld [vmem:[%s7687_s19 + $0x708] sm:$0xff] }
 0xb5d   : > { %v5661_v51 = vcombine.high %v1828_v45, %v1860_v46  ;;  %v5598_v52 = vcombine.low %v1765_v41, %v1797_v42  ;;  %v5660_v56 = vcombine.low %v1828_v45, %v1860_v46  ;;  %v1800_v45 = vld [vmem:[%s7687_s19 + $0x528] sm:$0xff] }
 0xb5e   : > { %v1533_v48 = vmul.f32 %v1532_v47, %v1532_v47 }
 0xb60   : > { %v1534_v49 = vsel %vm1527_vm11, %v1533_v48, 0.0  ;;  %v5596_v48 = vcombine.low %v1764_v36, %v1796_v37  ;;  %v1736_v36 = vld [vmem:[%s7687_s19 + $0x328] sm:$0xff] }
 0xb61   : > { %1535 = vadd.xlane.f32.xlu0 %v1534_v49  ;;  %v1829_v49 = vld [vmem:[%s7687_s19 + $0x610] sm:$0xff] }
 0xb62   : > { %v5663_v55 = vcombine.high %v1829_v49, %v1861_v50  ;;  %v5662_v60 = vcombine.low %v1829_v49, %v1861_v50  ;;  %v1801_v49 = vld [vmem:[%s7687_s19 + $0x530] sm:$0xff] }
 0xbee   : > { %v1536_v17 = vpop.xlane.xlu0 %1535 }
 0xbef   : > { %v1537_v18 = vmul.f32 0.015625, %v1536_v17  ;;  %v1862_v17 = vld [vmem:[%s7687_s19 + $0x718] sm:$0xff] }
 0xbf1   : > { %v1538_v19 = vadd.f32 1e-05, %v1537_v18  ;;  %v5603_v18 = vcombine.high %v1767_v9, %v1799_v10 }
 0xbf3   : > { %6011 = vrsqrt.f32 %v1538_v19  ;;  %v5600_v19 = vcombine.low %v1766_v5, %v1798_v6  ;;  %v1738_v5 = vld [vmem:[%s7687_s19 + $0x338] sm:$0xff] }
 0xbfd   : > { %v6012_v26 = vpop.eup %6011 }
 0xbfe   : > { %v1540_v27 = vmul.f32 %v6012_v26, %v1532_v47  ;;  %v5599_v47 = vcombine.high %v1765_v41, %v1797_v42  ;;  %v1737_v41 = vld [vmem:[%s7687_s19 + $0x330] sm:$0xff] }
 0xc00   : > { %v1545_v29 = vmul.f32 %v1544_v25, %v1540_v27  ;;  %v1863_v25 = vld [vmem:[%s7687_s19 + $0x720] sm:$0xff]  ;;  %v5602_v27 = vcombine.low %v1767_v9, %v1799_v10 }
 0xc01   : > { %v5667_v23 = vcombine.high %v1831_v20, %v1863_v25  ;;  %v1739_v9 = vld [vmem:[%s7687_s19 + $0x340] sm:$0xff] }
 0xc02   : > { %v1550_v31 = vadd.f32 %v1549_v28, %v1545_v29  ;;  %v1640_v28 = vld [vmem:[%s7687_s19 + $0x28] sm:$0xff] }
 0xc03   : > { %v1672_v29 = vld [vmem:[%s7687_s19 + $0x128] sm:$0xff] }
 0xc04   : > { %v1551_v35 = vpack.c.bf16 %v1550_v31, %v1550_v31  ;;  %v1641_v31 = vld [vmem:[%s7687_s19 + $0x30] sm:$0xff]  ;;  %v5477_v34 = vcombine.high %v1640_v28, %v1672_v29 }
 0xc05   : > { %v5479_v37 = vcombine.high %v1641_v31, %v1673_v32 }
 0xc06   : > { %5884 = vmatmul.mubr.msk.bf16.vlgmr.msra.gmra.mrb[0].mxu1 %vm811_vm2, %v1551_v35  ;;  %v6559_v38 = vrot.slane %v1551_v35, 1  ;;  %v5666_v35 = vcombine.low %v1831_v20, %v1863_v25  ;;  %v1803_v20 = vld [vmem:[%s7687_s19 + $0x540] sm:$0xff] }
 0xc07   : > { %3554 = vmatpush1.bf16.msra.mxu1 %v5468_v0  ;;  %3585 = vmatprep.mubr.bf16.mxu1 %v6116_v16  ;;  %v1703_v0 = vld [vmem:[%s7687_s19 + $0x220] sm:$0xff] }
 0xc08   : > { %5722 = vmatmul.mubr.msk.bf16.vlgmr.msra.gmra.mrb[4].mxu0 %vm811_vm2, %v6559_v38  ;;  %3555 = vmatprep.subr.bf16.mxu1 %v5533_v33  ;;  %v5539_v7 = vcombine.high %v1703_v0, %v1735_v2  ;;  %v5538_v14 = vcombine.low %v1703_v0, %v1735_v2  ;;  %v1704_v33 = vld [vmem:[%s7687_s19 + $0x228] sm:$0xff]  ;;  %v1675_v0 = vld [vmem:[%s7687_s19 + $0x140] sm:$0xff] }
 0xc09   : > { %3595 = vmatpush1.bf16.msra.mxu0 %v5470_v15  ;;  %3626 = vmatprep.mubr.bf16.mxu0 %v6116_v16  ;;  %v1830_v15 = vld [vmem:[%s7687_s19 + $0x618] sm:$0xff]  ;;  %v5541_v42 = vcombine.high %v1704_v33, %v1736_v36 }
 0xc0a   : > { %3596 = vmatprep.subr.bf16.mxu0 %v5535_v39  ;;  %v5665_v26 = vcombine.high %v1830_v15, %v1862_v17  ;;  %v5664_v30 = vcombine.low %v1830_v15, %v1862_v17  ;;  %v5476_v39 = vcombine.low %v1640_v28, %v1672_v29  ;;  %v1802_v15 = vld [vmem:[%s7687_s19 + $0x538] sm:$0xff] }
 0xc0b   : > { %3556 = vmatpush1.bf16.msra.mxu1 %v5532_v40  ;;  %v1705_v40 = vld [vmem:[%s7687_s19 + $0x230] sm:$0xff]  ;;  %v1866_v28 = vld [vmem:[%s7687_s19 + $0x738] sm:$0xff] }
 0xc0c   : > { %3557 = vmatprep.subr.bf16.mxu1 %v5597_v43  ;;  %v5478_v43 = vcombine.low %v1641_v31, %v1673_v32  ;;  %v5543_v46 = vcombine.high %v1705_v40, %v1737_v41  ;;  %v1867_v31 = vld [vmem:[%s7687_s19 + $0x740] sm:$0xff] }
 0xc0d   : > { %3597 = vmatpush1.bf16.msra.mxu0 %v5534_v44  ;;  %v1768_v44 = vld [vmem:[%s7687_s19 + $0x428] sm:$0xff] }
 0xc0e   : > { %3598 = vmatprep.subr.bf16.mxu0 %v5599_v47  ;;  %v5540_v47 = vcombine.low %v1704_v33, %v1736_v36  ;;  %v5605_v50 = vcombine.high %v1768_v44, %v1800_v45  ;;  %v1676_v33 = vld [vmem:[%s7687_s19 + $0x148] sm:$0xff] }
 0xc0f   : > { %3558 = vmatpush1.bf16.msra.mxu1 %v5596_v48  ;;  %v1769_v48 = vld [vmem:[%s7687_s19 + $0x430] sm:$0xff] }
 0xc10   : > { %3559 = vmatprep.subr.bf16.mxu1 %v5661_v51  ;;  %v5542_v51 = vcombine.low %v1705_v40, %v1737_v41  ;;  %v5607_v54 = vcombine.high %v1769_v48, %v1801_v49  ;;  %v1677_v40 = vld [vmem:[%s7687_s19 + $0x150] sm:$0xff] }
 0xc11   : > { %3599 = vmatpush1.bf16.msra.mxu0 %v5598_v52  ;;  %v1832_v52 = vld [vmem:[%s7687_s19 + $0x628] sm:$0xff] }
 0xc12   : > { %3600 = vmatprep.subr.bf16.mxu0 %v5663_v55  ;;  %v5604_v55 = vcombine.low %v1768_v44, %v1800_v45  ;;  %v5669_v58 = vcombine.high %v1832_v52, %v1864_v53  ;;  %v1740_v44 = vld [vmem:[%s7687_s19 + $0x348] sm:$0xff] }
 0xc13   : > { %3560 = vmatpush1.bf16.msra.mxu1 %v5660_v56  ;;  %v1833_v56 = vld [vmem:[%s7687_s19 + $0x630] sm:$0xff] }
 0xc14   : > { %3635 = vmatprep.subr.bf16.mxu1 %v5473_v59  ;;  %v5606_v59 = vcombine.low %v1769_v48, %v1801_v49  ;;  %v5671_v62 = vcombine.high %v1833_v56, %v1865_v57  ;;  %v1741_v48 = vld [vmem:[%s7687_s19 + $0x350] sm:$0xff] }
 0xc15   : > { %3601 = vmatpush1.bf16.msra.mxu0 %v5662_v60  ;;  %v1642_v60 = vld [vmem:[%s7687_s19 + $0x38] sm:$0xff] }
 0xc16   : > { %5723 = vmatmul.mubr.msk.bf16.vlgmr.msra.gmra.mrb[4].mxu1 %vm811_vm2, %v6559_v38  ;;  %3676 = vmatprep.subr.bf16.mxu0 %v5475_v1  ;;  %v5668_v1 = vcombine.low %v1832_v52, %v1864_v53  ;;  %v5481_v2 = vcombine.high %v1642_v60, %v1674_v61  ;;  %v1804_v52 = vld [vmem:[%s7687_s19 + $0x548] sm:$0xff] }
 0xc17   : > { %3636 = vmatpush1.bf16.msra.mxu1 %v5472_v63  ;;  %3667 = vmatprep.mubr.bf16.mxu1 %v6116_v16  ;;  %v1643_v63 = vld [vmem:[%s7687_s19 + $0x40] sm:$0xff] }
 0xc18   : > { %5724 = vmatmul.mubr.msk.bf16.vlgmr.msra.gmra.mrb[8].mxu0 %vm811_vm2, %v6559_v38  ;;  %3637 = vmatprep.subr.bf16.mxu1 %v5537_v3  ;;  %v5670_v3 = vcombine.low %v1833_v56, %v1865_v57  ;;  %v5483_v6 = vcombine.high %v1643_v63, %v1675_v0  ;;  %v1805_v56 = vld [vmem:[%s7687_s19 + $0x550] sm:$0xff] }
 0xc19   : > { %3677 = vmatpush1.bf16.msra.mxu0 %v5474_v4  ;;  %3708 = vmatprep.mubr.bf16.mxu0 %v6116_v16  ;;  %v1706_v4 = vld [vmem:[%s7687_s19 + $0x238] sm:$0xff] }
 0xc1a   : > { %3678 = vmatprep.subr.bf16.mxu0 %v5539_v7  ;;  %v5480_v7 = vcombine.low %v1642_v60, %v1674_v61  ;;  %v5545_v10 = vcombine.high %v1706_v4, %v1738_v5  ;;  %v1868_v60 = vld [vmem:[%s7687_s19 + $0x748] sm:$0xff] }
 0xc1b   : > { %3638 = vmatpush1.bf16.msra.mxu1 %v5536_v8  ;;  %v1707_v8 = vld [vmem:[%s7687_s19 + $0x240] sm:$0xff] }
 0xc1c   : > { %3639 = vmatprep.subr.bf16.mxu1 %v5601_v13  ;;  %v5482_v13 = vcombine.low %v1643_v63, %v1675_v0  ;;  %v5547_v17 = vcombine.high %v1707_v8, %v1739_v9  ;;  %v1869_v63 = vld [vmem:[%s7687_s19 + $0x750] sm:$0xff] }
 0xc1d   : > { %3679 = vmatpush1.bf16.msra.mxu0 %v5538_v14  ;;  %v1770_v14 = vld [vmem:[%s7687_s19 + $0x438] sm:$0xff] }
 0xc1e   : > { %3680 = vmatprep.subr.bf16.mxu0 %v5603_v18  ;;  %v5544_v18 = vcombine.low %v1706_v4, %v1738_v5  ;;  %v5609_v25 = vcombine.high %v1770_v14, %v1802_v15  ;;  %v1678_v4 = vld [vmem:[%s7687_s19 + $0x158] sm:$0xff] }
 0xc1f   : > { %3640 = vmatpush1.bf16.msra.mxu1 %v5600_v19  ;;  %v1771_v19 = vld [vmem:[%s7687_s19 + $0x440] sm:$0xff] }
 0xc20   : > { %3641 = vmatprep.subr.bf16.mxu1 %v5665_v26  ;;  %v5546_v26 = vcombine.low %v1707_v8, %v1739_v9  ;;  %v5611_v29 = vcombine.high %v1771_v19, %v1803_v20  ;;  %v1679_v8 = vld [vmem:[%s7687_s19 + $0x160] sm:$0xff] }
 0xc21   : > { %3681 = vmatpush1.bf16.msra.mxu0 %v5602_v27  ;;  %v1834_v27 = vld [vmem:[%s7687_s19 + $0x638] sm:$0xff] }
 0xc22   : > { %3682 = vmatprep.subr.bf16.mxu0 %v5667_v23  ;;  %v5608_v23 = vcombine.low %v1770_v14, %v1802_v15  ;;  %v5673_v32 = vcombine.high %v1834_v27, %v1866_v28  ;;  %v1742_v14 = vld [vmem:[%s7687_s19 + $0x358] sm:$0xff] }
 0xc23   : > { %3642 = vmatpush1.bf16.msra.mxu1 %v5664_v30  ;;  %v1835_v30 = vld [vmem:[%s7687_s19 + $0x640] sm:$0xff] }
 0xc24   : > { %3717 = vmatprep.subr.bf16.mxu1 %v5477_v34  ;;  %v5610_v34 = vcombine.low %v1771_v19, %v1803_v20  ;;  %v5675_v36 = vcombine.high %v1835_v30, %v1867_v31  ;;  %v1743_v19 = vld [vmem:[%s7687_s19 + $0x360] sm:$0xff] }
 0xc25   : > { %3683 = vmatpush1.bf16.msra.mxu0 %v5666_v35  ;;  %v1644_v35 = vld [vmem:[%s7687_s19 + $0x48] sm:$0xff] }
 0xc26   : > { %5725 = vmatmul.mubr.msk.bf16.vlgmr.msra.gmra.mrb[8].mxu1 %vm811_vm2, %v6559_v38  ;;  %3758 = vmatprep.subr.bf16.mxu0 %v5479_v37  ;;  %v5672_v37 = vcombine.low %v1834_v27, %v1866_v28  ;;  %v5485_v41 = vcombine.high %v1644_v35, %v1676_v33  ;;  %v1806_v27 = vld [vmem:[%s7687_s19 + $0x558] sm:$0xff] }
 0xc27   : > { %3718 = vmatpush1.bf16.msra.mxu1 %v5476_v39  ;;  %3749 = vmatprep.mubr.bf16.mxu1 %v6116_v16  ;;  %v1645_v39 = vld [vmem:[%s7687_s19 + $0x50] sm:$0xff] }
 0xc28   : > { %5726 = vmatmul.mubr.msk.bf16.vlgmr.msra.gmra.mrb[12].mxu0 %vm811_vm2, %v6559_v38  ;;  %3719 = vmatprep.subr.bf16.mxu1 %v5541_v42  ;;  %v5674_v42 = vcombine.low %v1835_v30, %v1867_v31  ;;  %v5487_v45 = vcombine.high %v1645_v39, %v1677_v40  ;;  %v1807_v30 = vld [vmem:[%s7687_s19 + $0x560] sm:$0xff] }
 0xc29   : > { %3759 = vmatpush1.bf16.msra.mxu0 %v5478_v43  ;;  %3790 = vmatprep.mubr.bf16.mxu0 %v6116_v16  ;;  %v1708_v43 = vld [vmem:[%s7687_s19 + $0x248] sm:$0xff] }
 0xc2a   : > { %3760 = vmatprep.subr.bf16.mxu0 %v5543_v46  ;;  %v5484_v46 = vcombine.low %v1644_v35, %v1676_v33  ;;  %v5549_v49 = vcombine.high %v1708_v43, %v1740_v44  ;;  %v1870_v35 = vld [vmem:[%s7687_s19 + $0x758] sm:$0xff] }
 0xc2b   : > { %3720 = vmatpush1.bf16.msra.mxu1 %v5540_v47  ;;  %v1709_v47 = vld [vmem:[%s7687_s19 + $0x250] sm:$0xff] }
 0xc2c   : > { %3721 = vmatprep.subr.bf16.mxu1 %v5605_v50  ;;  %v5486_v50 = vcombine.low %v1645_v39, %v1677_v40  ;;  %v5551_v53 = vcombine.high %v1709_v47, %v1741_v48  ;;  %v1871_v39 = vld [vmem:[%s7687_s19 + $0x760] sm:$0xff] }
 0xc2d   : > { %3761 = vmatpush1.bf16.msra.mxu0 %v5542_v51  ;;  %v1772_v51 = vld [vmem:[%s7687_s19 + $0x448] sm:$0xff] }
 0xc2e   : > { %3762 = vmatprep.subr.bf16.mxu0 %v5607_v54  ;;  %v5548_v54 = vcombine.low %v1708_v43, %v1740_v44  ;;  %v5613_v57 = vcombine.high %v1772_v51, %v1804_v52  ;;  %v1680_v43 = vld [vmem:[%s7687_s19 + $0x168] sm:$0xff] }
 0xc2f   : > { %3722 = vmatpush1.bf16.msra.mxu1 %v5604_v55  ;;  %v1773_v55 = vld [vmem:[%s7687_s19 + $0x450] sm:$0xff] }
 0xc30   : > { %3723 = vmatprep.subr.bf16.mxu1 %v5669_v58  ;;  %v5550_v58 = vcombine.low %v1709_v47, %v1741_v48  ;;  %v5615_v61 = vcombine.high %v1773_v55, %v1805_v56  ;;  %v1681_v47 = vld [vmem:[%s7687_s19 + $0x170] sm:$0xff] }
 0xc31   : > { %3763 = vmatpush1.bf16.msra.mxu0 %v5606_v59  ;;  %v1836_v59 = vld [vmem:[%s7687_s19 + $0x648] sm:$0xff] }
 0xc32   : > { %3764 = vmatprep.subr.bf16.mxu0 %v5671_v62  ;;  %v5612_v62 = vcombine.low %v1772_v51, %v1804_v52  ;;  %v5677_v0 = vcombine.high %v1836_v59, %v1868_v60  ;;  %v1744_v51 = vld [vmem:[%s7687_s19 + $0x368] sm:$0xff] }
 0xc33   : > { %3724 = vmatpush1.bf16.msra.mxu1 %v5668_v1  ;;  %v1837_v1 = vld [vmem:[%s7687_s19 + $0x650] sm:$0xff] }
 0xc34   : > { %3799 = vmatprep.subr.bf16.mxu1 %v5481_v2  ;;  %v5614_v2 = vcombine.low %v1773_v55, %v1805_v56  ;;  %v5679_v5 = vcombine.high %v1837_v1, %v1869_v63  ;;  %v1745_v55 = vld [vmem:[%s7687_s19 + $0x370] sm:$0xff] }
 0xc35   : > { %3765 = vmatpush1.bf16.msra.mxu0 %v5670_v3  ;;  %v1646_v3 = vld [vmem:[%s7687_s19 + $0x58] sm:$0xff] }
 0xc36   : > { %5727 = vmatmul.mubr.msk.bf16.vlgmr.msra.gmra.mrb[12].mxu1 %vm811_vm2, %v6559_v38  ;;  %3840 = vmatprep.subr.bf16.mxu0 %v5483_v6  ;;  %v5676_v6 = vcombine.low %v1836_v59, %v1868_v60  ;;  %v5489_v9 = vcombine.high %v1646_v3, %v1678_v4  ;;  %v1808_v59 = vld [vmem:[%s7687_s19 + $0x568] sm:$0xff] }
 0xc37   : > { %3800 = vmatpush1.bf16.msra.mxu1 %v5480_v7  ;;  %3831 = vmatprep.mubr.bf16.mxu1 %v6116_v16  ;;  %v1647_v7 = vld [vmem:[%s7687_s19 + $0x60] sm:$0xff] }
 0xc38   : > { %5728 = vmatmul.mubr.msk.bf16.vlgmr.msra.gmra.mrb[16].mxu0 %vm811_vm2, %v6559_v38  ;;  %3801 = vmatprep.subr.bf16.mxu1 %v5545_v10  ;;  %v5678_v10 = vcombine.low %v1837_v1, %v1869_v63  ;;  %v5491_v15 = vcombine.high %v1647_v7, %v1679_v8  ;;  %v1809_v1 = vld [vmem:[%s7687_s19 + $0x570] sm:$0xff] }
 0xc39   : > { %3841 = vmatpush1.bf16.msra.mxu0 %v5482_v13  ;;  %3872 = vmatprep.mubr.bf16.mxu0 %v6116_v16  ;;  %v1710_v13 = vld [vmem:[%s7687_s19 + $0x258] sm:$0xff] }
 0xc3a   : > { %3842 = vmatprep.subr.bf16.mxu0 %v5547_v17  ;;  %v5488_v17 = vcombine.low %v1646_v3, %v1678_v4  ;;  %v5553_v20 = vcombine.high %v1710_v13, %v1742_v14  ;;  %v1872_v3 = vld [vmem:[%s7687_s19 + $0x768] sm:$0xff] }
 0xc3b   : > { %3802 = vmatpush1.bf16.msra.mxu1 %v5544_v18  ;;  %v1711_v18 = vld [vmem:[%s7687_s19 + $0x260] sm:$0xff] }
 0xc3c   : > { %3803 = vmatprep.subr.bf16.mxu1 %v5609_v25  ;;  %v5490_v25 = vcombine.low %v1647_v7, %v1679_v8  ;;  %v5555_v28 = vcombine.high %v1711_v18, %v1743_v19  ;;  %v1873_v7 = vld [vmem:[%s7687_s19 + $0x770] sm:$0xff] }
 0xc3d   : > { %3843 = vmatpush1.bf16.msra.mxu0 %v5546_v26  ;;  %v1774_v26 = vld [vmem:[%s7687_s19 + $0x458] sm:$0xff] }
 0xc3e   : > { %3844 = vmatprep.subr.bf16.mxu0 %v5611_v29  ;;  %v5552_v29 = vcombine.low %v1710_v13, %v1742_v14  ;;  %v5617_v31 = vcombine.high %v1774_v26, %v1806_v27  ;;  %v1682_v13 = vld [vmem:[%s7687_s19 + $0x178] sm:$0xff] }
 0xc3f   : > { %3804 = vmatpush1.bf16.msra.mxu1 %v5608_v23  ;;  %v1775_v23 = vld [vmem:[%s7687_s19 + $0x460] sm:$0xff] }
 0xc40   : > { %3805 = vmatprep.subr.bf16.mxu1 %v5673_v32  ;;  %v5554_v32 = vcombine.low %v1711_v18, %v1743_v19  ;;  %v5619_v33 = vcombine.high %v1775_v23, %v1807_v30  ;;  %v1683_v18 = vld [vmem:[%s7687_s19 + $0x180] sm:$0xff] }
 0xc41   : > { %3845 = vmatpush1.bf16.msra.mxu0 %v5610_v34  ;;  %v1838_v34 = vld [vmem:[%s7687_s19 + $0x658] sm:$0xff] }
 0xc42   : > { %3846 = vmatprep.subr.bf16.mxu0 %v5675_v36  ;;  %v5616_v36 = vcombine.low %v1774_v26, %v1806_v27  ;;  %v5681_v40 = vcombine.high %v1838_v34, %v1870_v35  ;;  %v1746_v26 = vld [vmem:[%s7687_s19 + $0x378] sm:$0xff] }
 0xc43   : > { %3806 = vmatpush1.bf16.msra.mxu1 %v5672_v37  ;;  %v1839_v37 = vld [vmem:[%s7687_s19 + $0x660] sm:$0xff] }
 0xc44   : > { %3881 = vmatprep.subr.bf16.mxu1 %v5485_v41  ;;  %v5618_v41 = vcombine.low %v1775_v23, %v1807_v30  ;;  %v5683_v44 = vcombine.high %v1839_v37, %v1871_v39  ;;  %v1747_v23 = vld [vmem:[%s7687_s19 + $0x380] sm:$0xff] }
 0xc45   : > { %3847 = vmatpush1.bf16.msra.mxu0 %v5674_v42  ;;  %v1648_v42 = vld [vmem:[%s7687_s19 + $0x68] sm:$0xff] }
 0xc46   : > { %5729 = vmatmul.mubr.msk.bf16.vlgmr.msra.gmra.mrb[16].mxu1 %vm811_vm2, %v6559_v38  ;;  %3922 = vmatprep.subr.bf16.mxu0 %v5487_v45  ;;  %v5680_v45 = vcombine.low %v1838_v34, %v1870_v35  ;;  %v5493_v48 = vcombine.high %v1648_v42, %v1680_v43  ;;  %v1810_v34 = vld [vmem:[%s7687_s19 + $0x578] sm:$0xff] }
 0xc47   : > { %3882 = vmatpush1.bf16.msra.mxu1 %v5484_v46  ;;  %3913 = vmatprep.mubr.bf16.mxu1 %v6116_v16  ;;  %v1649_v46 = vld [vmem:[%s7687_s19 + $0x70] sm:$0xff] }
 0xc48   : > { %5730 = vmatmul.mubr.msk.bf16.vlgmr.msra.gmra.mrb[20].mxu0 %vm811_vm2, %v6559_v38  ;;  %3883 = vmatprep.subr.bf16.mxu1 %v5549_v49  ;;  %v5682_v49 = vcombine.low %v1839_v37, %v1871_v39  ;;  %v5495_v52 = vcombine.high %v1649_v46, %v1681_v47  ;;  %v1811_v37 = vld [vmem:[%s7687_s19 + $0x580] sm:$0xff] }
 0xc49   : > { %3923 = vmatpush1.bf16.msra.mxu0 %v5486_v50  ;;  %3954 = vmatprep.mubr.bf16.mxu0 %v6116_v16  ;;  %v1712_v50 = vld [vmem:[%s7687_s19 + $0x268] sm:$0xff] }
 0xc4a   : > { %3924 = vmatprep.subr.bf16.mxu0 %v5551_v53  ;;  %v5492_v53 = vcombine.low %v1648_v42, %v1680_v43  ;;  %v5557_v56 = vcombine.high %v1712_v50, %v1744_v51  ;;  %v1874_v42 = vld [vmem:[%s7687_s19 + $0x778] sm:$0xff] }
 0xc4b   : > { %3884 = vmatpush1.bf16.msra.mxu1 %v5548_v54  ;;  %v1713_v54 = vld [vmem:[%s7687_s19 + $0x270] sm:$0xff] }
 0xc4c   : > { %3885 = vmatprep.subr.bf16.mxu1 %v5613_v57  ;;  %v5494_v57 = vcombine.low %v1649_v46, %v1681_v47  ;;  %v5559_v60 = vcombine.high %v1713_v54, %v1745_v55  ;;  %v1875_v46 = vld [vmem:[%s7687_s19 + $0x780] sm:$0xff] }
 0xc4d   : > { %3925 = vmatpush1.bf16.msra.mxu0 %v5550_v58  ;;  %v1776_v58 = vld [vmem:[%s7687_s19 + $0x468] sm:$0xff] }
 0xc4e   : > { %3926 = vmatprep.subr.bf16.mxu0 %v5615_v61  ;;  %v5556_v61 = vcombine.low %v1712_v50, %v1744_v51  ;;  %v5621_v63 = vcombine.high %v1776_v58, %v1808_v59  ;;  %v1684_v50 = vld [vmem:[%s7687_s19 + $0x188] sm:$0xff] }
 0xc4f   : > { %3886 = vmatpush1.bf16.msra.mxu1 %v5612_v62  ;;  %v1777_v62 = vld [vmem:[%s7687_s19 + $0x470] sm:$0xff] }
 0xc50   : > { %3887 = vmatprep.subr.bf16.mxu1 %v5677_v0  ;;  %v5558_v0 = vcombine.low %v1713_v54, %v1745_v55  ;;  %v5623_v4 = vcombine.high %v1777_v62, %v1809_v1  ;;  %v1685_v54 = vld [vmem:[%s7687_s19 + $0x190] sm:$0xff] }
 0xc51   : > { %3927 = vmatpush1.bf16.msra.mxu0 %v5614_v2  ;;  %v1840_v2 = vld [vmem:[%s7687_s19 + $0x668] sm:$0xff] }
 0xc52   : > { %3928 = vmatprep.subr.bf16.mxu0 %v5679_v5  ;;  %v5620_v5 = vcombine.low %v1776_v58, %v1808_v59  ;;  %v5685_v8 = vcombine.high %v1840_v2, %v1872_v3  ;;  %v1748_v58 = vld [vmem:[%s7687_s19 + $0x388] sm:$0xff] }
 0xc53   : > { %3888 = vmatpush1.bf16.msra.mxu1 %v5676_v6  ;;  %v1841_v6 = vld [vmem:[%s7687_s19 + $0x670] sm:$0xff] }
 0xc54   : > { %3963 = vmatprep.subr.bf16.mxu1 %v5489_v9  ;;  %v5622_v9 = vcombine.low %v1777_v62, %v1809_v1  ;;  %v5687_v14 = vcombine.high %v1841_v6, %v1873_v7  ;;  %v1749_v62 = vld [vmem:[%s7687_s19 + $0x390] sm:$0xff] }
 0xc55   : > { %3929 = vmatpush1.bf16.msra.mxu0 %v5678_v10  ;;  %v1650_v10 = vld [vmem:[%s7687_s19 + $0x78] sm:$0xff] }
 0xc56   : > { %5731 = vmatmul.mubr.msk.bf16.vlgmr.msra.gmra.mrb[20].mxu1 %vm811_vm2, %v6559_v38  ;;  %4004 = vmatprep.subr.bf16.mxu0 %v5491_v15  ;;  %v5684_v15 = vcombine.low %v1840_v2, %v1872_v3  ;;  %v5497_v19 = vcombine.high %v1650_v10, %v1682_v13  ;;  %v1812_v2 = vld [vmem:[%s7687_s19 + $0x588] sm:$0xff] }
 0xc57   : > { %3964 = vmatpush1.bf16.msra.mxu1 %v5488_v17  ;;  %3995 = vmatprep.mubr.bf16.mxu1 %v6116_v16  ;;  %v1651_v17 = vld [vmem:[%s7687_s19 + $0x80] sm:$0xff] }
 0xc58   : > { %5732 = vmatmul.mubr.msk.bf16.vlgmr.msra.gmra.mrb[24].mxu0 %vm811_vm2, %v6559_v38  ;;  %3965 = vmatprep.subr.bf16.mxu1 %v5553_v20  ;;  %v5686_v20 = vcombine.low %v1841_v6, %v1873_v7  ;;  %v5499_v27 = vcombine.high %v1651_v17, %v1683_v18  ;;  %v1813_v6 = vld [vmem:[%s7687_s19 + $0x590] sm:$0xff] }
 0xc59   : > { %4005 = vmatpush1.bf16.msra.mxu0 %v5490_v25  ;;  %4036 = vmatprep.mubr.bf16.mxu0 %v6116_v16  ;;  %v1714_v25 = vld [vmem:[%s7687_s19 + $0x278] sm:$0xff] }
 0xc5a   : > { %4006 = vmatprep.subr.bf16.mxu0 %v5555_v28  ;;  %v5496_v28 = vcombine.low %v1650_v10, %v1682_v13  ;;  %v5561_v30 = vcombine.high %v1714_v25, %v1746_v26  ;;  %v1876_v10 = vld [vmem:[%s7687_s19 + $0x788] sm:$0xff] }
 0xc5b   : > { %3966 = vmatpush1.bf16.msra.mxu1 %v5552_v29  ;;  %v1715_v29 = vld [vmem:[%s7687_s19 + $0x280] sm:$0xff] }
 0xc5c   : > { %3967 = vmatprep.subr.bf16.mxu1 %v5617_v31  ;;  %v5498_v31 = vcombine.low %v1651_v17, %v1683_v18  ;;  %v5563_v35 = vcombine.high %v1715_v29, %v1747_v23  ;;  %v1877_v17 = vld [vmem:[%s7687_s19 + $0x790] sm:$0xff] }
 0xc5d   : > { %4007 = vmatpush1.bf16.msra.mxu0 %v5554_v32  ;;  %v1778_v32 = vld [vmem:[%s7687_s19 + $0x478] sm:$0xff] }
 0xc5e   : > { %4008 = vmatprep.subr.bf16.mxu0 %v5619_v33  ;;  %v5560_v33 = vcombine.low %v1714_v25, %v1746_v26  ;;  %v5625_v39 = vcombine.high %v1778_v32, %v1810_v34  ;;  %v1686_v25 = vld [vmem:[%s7687_s19 + $0x198] sm:$0xff] }
 0xc5f   : > { %3968 = vmatpush1.bf16.msra.mxu1 %v5616_v36  ;;  %v1779_v36 = vld [vmem:[%s7687_s19 + $0x480] sm:$0xff] }
 0xc60   : > { %3969 = vmatprep.subr.bf16.mxu1 %v5681_v40  ;;  %v5562_v40 = vcombine.low %v1715_v29, %v1747_v23  ;;  %v5627_v43 = vcombine.high %v1779_v36, %v1811_v37  ;;  %v1687_v29 = vld [vmem:[%s7687_s19 + $0x1a0] sm:$0xff] }
 0xc61   : > { %4009 = vmatpush1.bf16.msra.mxu0 %v5618_v41  ;;  %v1842_v41 = vld [vmem:[%s7687_s19 + $0x678] sm:$0xff] }
 0xc62   : > { %4010 = vmatprep.subr.bf16.mxu0 %v5683_v44  ;;  %v5624_v44 = vcombine.low %v1778_v32, %v1810_v34  ;;  %v5689_v47 = vcombine.high %v1842_v41, %v1874_v42  ;;  %v1750_v32 = vld [vmem:[%s7687_s19 + $0x398] sm:$0xff] }
 0xc63   : > { %3970 = vmatpush1.bf16.msra.mxu1 %v5680_v45  ;;  %v1843_v45 = vld [vmem:[%s7687_s19 + $0x680] sm:$0xff] }
 0xc64   : > { %4045 = vmatprep.subr.bf16.mxu1 %v5493_v48  ;;  %v5626_v48 = vcombine.low %v1779_v36, %v1811_v37  ;;  %v5691_v51 = vcombine.high %v1843_v45, %v1875_v46  ;;  %v1751_v36 = vld [vmem:[%s7687_s19 + $0x3a0] sm:$0xff] }
 0xc65   : > { %4011 = vmatpush1.bf16.msra.mxu0 %v5682_v49  ;;  %v1652_v49 = vld [vmem:[%s7687_s19 + $0x88] sm:$0xff] }
 0xc66   : > { %5733 = vmatmul.mubr.msk.bf16.vlgmr.msra.gmra.mrb[24].mxu1 %vm811_vm2, %v6559_v38  ;;  %4086 = vmatprep.subr.bf16.mxu0 %v5495_v52  ;;  %v5688_v52 = vcombine.low %v1842_v41, %v1874_v42  ;;  %v5501_v55 = vcombine.high %v1652_v49, %v1684_v50  ;;  %v1814_v41 = vld [vmem:[%s7687_s19 + $0x598] sm:$0xff] }
 0xc67   : > { %4046 = vmatpush1.bf16.msra.mxu1 %v5492_v53  ;;  %4077 = vmatprep.mubr.bf16.mxu1 %v6116_v16  ;;  %v1653_v53 = vld [vmem:[%s7687_s19 + $0x90] sm:$0xff] }
 0xc68   : > { %5734 = vmatmul.mubr.msk.bf16.vlgmr.msra.gmra.mrb[28].mxu0 %vm811_vm2, %v6559_v38  ;;  %4047 = vmatprep.subr.bf16.mxu1 %v5557_v56  ;;  %v5690_v56 = vcombine.low %v1843_v45, %v1875_v46  ;;  %v5503_v59 = vcombine.high %v1653_v53, %v1685_v54  ;;  %v1815_v45 = vld [vmem:[%s7687_s19 + $0x5a0] sm:$0xff] }
 0xc69   : > { %4087 = vmatpush1.bf16.msra.mxu0 %v5494_v57  ;;  %4118 = vmatprep.mubr.bf16.mxu0 %v6116_v16  ;;  %v1716_v57 = vld [vmem:[%s7687_s19 + $0x288] sm:$0xff] }
 0xc6a   : > { %4088 = vmatprep.subr.bf16.mxu0 %v5559_v60  ;;  %v5500_v60 = vcombine.low %v1652_v49, %v1684_v50  ;;  %v5565_v1 = vcombine.high %v1716_v57, %v1748_v58  ;;  %v1878_v49 = vld [vmem:[%s7687_s19 + $0x798] sm:$0xff] }
 0xc6b   : > { %4048 = vmatpush1.bf16.msra.mxu1 %v5556_v61  ;;  %v1717_v61 = vld [vmem:[%s7687_s19 + $0x290] sm:$0xff] }
 0xc6c   : > { %4049 = vmatprep.subr.bf16.mxu1 %v5621_v63  ;;  %v5502_v63 = vcombine.low %v1653_v53, %v1685_v54  ;;  %v5567_v3 = vcombine.high %v1717_v61, %v1749_v62  ;;  %v1879_v53 = vld [vmem:[%s7687_s19 + $0x7a0] sm:$0xff] }
 0xc6d   : > { %4089 = vmatpush1.bf16.msra.mxu0 %v5558_v0  ;;  %v1780_v0 = vld [vmem:[%s7687_s19 + $0x488] sm:$0xff] }
 0xc6e   : > { %4090 = vmatprep.subr.bf16.mxu0 %v5623_v4  ;;  %v5564_v4 = vcombine.low %v1716_v57, %v1748_v58  ;;  %v5629_v7 = vcombine.high %v1780_v0, %v1812_v2  ;;  %v1688_v57 = vld [vmem:[%s7687_s19 + $0x1a8] sm:$0xff] }
 0xc6f   : > { %4050 = vmatpush1.bf16.msra.mxu1 %v5620_v5  ;;  %v1781_v5 = vld [vmem:[%s7687_s19 + $0x490] sm:$0xff] }
 0xc70   : > { %4051 = vmatprep.subr.bf16.mxu1 %v5685_v8  ;;  %v5566_v8 = vcombine.low %v1717_v61, %v1749_v62  ;;  %v5631_v13 = vcombine.high %v1781_v5, %v1813_v6  ;;  %v1689_v61 = vld [vmem:[%s7687_s19 + $0x1b0] sm:$0xff] }
 0xc71   : > { %4091 = vmatpush1.bf16.msra.mxu0 %v5622_v9  ;;  %v1844_v9 = vld [vmem:[%s7687_s19 + $0x688] sm:$0xff] }
 0xc72   : > { %4092 = vmatprep.subr.bf16.mxu0 %v5687_v14  ;;  %v5628_v14 = vcombine.low %v1780_v0, %v1812_v2  ;;  %v5693_v18 = vcombine.high %v1844_v9, %v1876_v10  ;;  %v1752_v0 = vld [vmem:[%s7687_s19 + $0x3a8] sm:$0xff] }
 0xc73   : > { %4052 = vmatpush1.bf16.msra.mxu1 %v5684_v15  ;;  %v1845_v15 = vld [vmem:[%s7687_s19 + $0x690] sm:$0xff] }
 0xc74   : > { %4127 = vmatprep.subr.bf16.mxu1 %v5497_v19  ;;  %v5630_v19 = vcombine.low %v1781_v5, %v1813_v6  ;;  %v5695_v26 = vcombine.high %v1845_v15, %v1877_v17  ;;  %v1753_v5 = vld [vmem:[%s7687_s19 + $0x3b0] sm:$0xff] }
 0xc75   : > { %4093 = vmatpush1.bf16.msra.mxu0 %v5686_v20  ;;  %v1654_v20 = vld [vmem:[%s7687_s19 + $0x98] sm:$0xff] }
 0xc76   : > { %5735 = vmatmul.mubr.msk.bf16.vlgmr.msra.gmra.mrb[28].mxu1 %vm811_vm2, %v6559_v38  ;;  %4168 = vmatprep.subr.bf16.mxu0 %v5499_v27  ;;  %v5692_v27 = vcombine.low %v1844_v9, %v1876_v10  ;;  %v5505_v23 = vcombine.high %v1654_v20, %v1686_v25  ;;  %v1816_v9 = vld [vmem:[%s7687_s19 + $0x5a8] sm:$0xff] }
 0xc77   : > { %4128 = vmatpush1.bf16.msra.mxu1 %v5496_v28  ;;  %4159 = vmatprep.mubr.bf16.mxu1 %v6116_v16  ;;  %v1655_v28 = vld [vmem:[%s7687_s19 + $0xa0] sm:$0xff] }
 0xc78   : > { %5736 = vmatmul.mubr.msk.bf16.vlgmr.msra.gmra.mrb[32].mxu0 %vm811_vm2, %v6559_v38  ;;  %4129 = vmatprep.subr.bf16.mxu1 %v5561_v30  ;;  %v5694_v30 = vcombine.low %v1845_v15, %v1877_v17  ;;  %v5507_v34 = vcombine.high %v1655_v28, %v1687_v29  ;;  %v1817_v15 = vld [vmem:[%s7687_s19 + $0x5b0] sm:$0xff] }
 0xc79   : > { %4169 = vmatpush1.bf16.msra.mxu0 %v5498_v31  ;;  %4200 = vmatprep.mubr.bf16.mxu0 %v6116_v16  ;;  %v1718_v31 = vld [vmem:[%s7687_s19 + $0x298] sm:$0xff] }
 0xc7a   : > { %4170 = vmatprep.subr.bf16.mxu0 %v5563_v35  ;;  %v5504_v35 = vcombine.low %v1654_v20, %v1686_v25  ;;  %v5569_v37 = vcombine.high %v1718_v31, %v1750_v32  ;;  %v1880_v20 = vld [vmem:[%s7687_s19 + $0x7a8] sm:$0xff] }
 0xc7b   : > { %4130 = vmatpush1.bf16.msra.mxu1 %v5560_v33  ;;  %v1719_v33 = vld [vmem:[%s7687_s19 + $0x2a0] sm:$0xff] }
 0xc7c   : > { %4131 = vmatprep.subr.bf16.mxu1 %v5625_v39  ;;  %v5506_v39 = vcombine.low %v1655_v28, %v1687_v29  ;;  %v5571_v42 = vcombine.high %v1719_v33, %v1751_v36  ;;  %v1881_v28 = vld [vmem:[%s7687_s19 + $0x7b0] sm:$0xff] }
 0xc7d   : > { %4171 = vmatpush1.bf16.msra.mxu0 %v5562_v40  ;;  %v1782_v40 = vld [vmem:[%s7687_s19 + $0x498] sm:$0xff] }
 0xc7e   : > { %4172 = vmatprep.subr.bf16.mxu0 %v5627_v43  ;;  %v5568_v43 = vcombine.low %v1718_v31, %v1750_v32  ;;  %v5633_v46 = vcombine.high %v1782_v40, %v1814_v41  ;;  %v1690_v31 = vld [vmem:[%s7687_s19 + $0x1b8] sm:$0xff] }
 0xc7f   : > { %4132 = vmatpush1.bf16.msra.mxu1 %v5624_v44  ;;  %v1783_v44 = vld [vmem:[%s7687_s19 + $0x4a0] sm:$0xff] }
 0xc80   : > { %4133 = vmatprep.subr.bf16.mxu1 %v5689_v47  ;;  %v5570_v47 = vcombine.low %v1719_v33, %v1751_v36  ;;  %v5635_v50 = vcombine.high %v1783_v44, %v1815_v45  ;;  %v1691_v33 = vld [vmem:[%s7687_s19 + $0x1c0] sm:$0xff] }
 0xc81   : > { %4173 = vmatpush1.bf16.msra.mxu0 %v5626_v48  ;;  %v1846_v48 = vld [vmem:[%s7687_s19 + $0x698] sm:$0xff] }
 0xc82   : > { %4174 = vmatprep.subr.bf16.mxu0 %v5691_v51  ;;  %v5632_v51 = vcombine.low %v1782_v40, %v1814_v41  ;;  %v5697_v54 = vcombine.high %v1846_v48, %v1878_v49  ;;  %v1754_v40 = vld [vmem:[%s7687_s19 + $0x3b8] sm:$0xff] }
 0xc83   : > { %4134 = vmatpush1.bf16.msra.mxu1 %v5688_v52  ;;  %v1847_v52 = vld [vmem:[%s7687_s19 + $0x6a0] sm:$0xff] }
 0xc84   : > { %4209 = vmatprep.subr.bf16.mxu1 %v5501_v55  ;;  %v5634_v55 = vcombine.low %v1783_v44, %v1815_v45  ;;  %v5699_v58 = vcombine.high %v1847_v52, %v1879_v53  ;;  %v1755_v44 = vld [vmem:[%s7687_s19 + $0x3c0] sm:$0xff] }
 0xc85   : > { %4175 = vmatpush1.bf16.msra.mxu0 %v5690_v56  ;;  %v1656_v56 = vld [vmem:[%s7687_s19 + $0xa8] sm:$0xff] }
 0xc86   : > { %5737 = vmatmul.mubr.msk.bf16.vlgmr.msra.gmra.mrb[32].mxu1 %vm811_vm2, %v6559_v38  ;;  %4250 = vmatprep.subr.bf16.mxu0 %v5503_v59  ;;  %v5696_v59 = vcombine.low %v1846_v48, %v1878_v49  ;;  %v5509_v62 = vcombine.high %v1656_v56, %v1688_v57  ;;  %v1818_v48 = vld [vmem:[%s7687_s19 + $0x5b8] sm:$0xff] }
 0xc87   : > { %4210 = vmatpush1.bf16.msra.mxu1 %v5500_v60  ;;  %4241 = vmatprep.mubr.bf16.mxu1 %v6116_v16  ;;  %v1657_v60 = vld [vmem:[%s7687_s19 + $0xb0] sm:$0xff] }
 0xc88   : > { %5738 = vmatmul.mubr.msk.bf16.vlgmr.msra.gmra.mrb[36].mxu0 %vm811_vm2, %v6559_v38  ;;  %4211 = vmatprep.subr.bf16.mxu1 %v5565_v1  ;;  %v5698_v1 = vcombine.low %v1847_v52, %v1879_v53  ;;  %v5511_v2 = vcombine.high %v1657_v60, %v1689_v61  ;;  %v1819_v52 = vld [vmem:[%s7687_s19 + $0x5c0] sm:$0xff] }
 0xc89   : > { %4251 = vmatpush1.bf16.msra.mxu0 %v5502_v63  ;;  %4282 = vmatprep.mubr.bf16.mxu0 %v6116_v16  ;;  %v1720_v63 = vld [vmem:[%s7687_s19 + $0x2a8] sm:$0xff] }
 0xc8a   : > { %4252 = vmatprep.subr.bf16.mxu0 %v5567_v3  ;;  %v5508_v3 = vcombine.low %v1656_v56, %v1688_v57  ;;  %v5573_v6 = vcombine.high %v1720_v63, %v1752_v0  ;;  %v1882_v56 = vld [vmem:[%s7687_s19 + $0x7b8] sm:$0xff] }
 0xc8b   : > { %4212 = vmatpush1.bf16.msra.mxu1 %v5564_v4  ;;  %v1721_v4 = vld [vmem:[%s7687_s19 + $0x2b0] sm:$0xff] }
 0xc8c   : > { %4213 = vmatprep.subr.bf16.mxu1 %v5629_v7  ;;  %v5510_v7 = vcombine.low %v1657_v60, %v1689_v61  ;;  %v5575_v10 = vcombine.high %v1721_v4, %v1753_v5  ;;  %v1883_v60 = vld [vmem:[%s7687_s19 + $0x7c0] sm:$0xff] }
 0xc8d   : > { %4253 = vmatpush1.bf16.msra.mxu0 %v5566_v8  ;;  %v1784_v8 = vld [vmem:[%s7687_s19 + $0x4a8] sm:$0xff] }
 0xc8e   : > { %4254 = vmatprep.subr.bf16.mxu0 %v5631_v13  ;;  %v5572_v13 = vcombine.low %v1720_v63, %v1752_v0  ;;  %v5637_v17 = vcombine.high %v1784_v8, %v1816_v9  ;;  %v1692_v63 = vld [vmem:[%s7687_s19 + $0x1c8] sm:$0xff] }
 0xc8f   : > { %4214 = vmatpush1.bf16.msra.mxu1 %v5628_v14  ;;  %v1785_v14 = vld [vmem:[%s7687_s19 + $0x4b0] sm:$0xff] }
 0xc90   : > { %4215 = vmatprep.subr.bf16.mxu1 %v5693_v18  ;;  %v5574_v18 = vcombine.low %v1721_v4, %v1753_v5  ;;  %v5639_v25 = vcombine.high %v1785_v14, %v1817_v15  ;;  %v1693_v4 = vld [vmem:[%s7687_s19 + $0x1d0] sm:$0xff] }
 0xc91   : > { %4255 = vmatpush1.bf16.msra.mxu0 %v5630_v19  ;;  %v1848_v19 = vld [vmem:[%s7687_s19 + $0x6a8] sm:$0xff] }
 0xc92   : > { %4256 = vmatprep.subr.bf16.mxu0 %v5695_v26  ;;  %v5636_v26 = vcombine.low %v1784_v8, %v1816_v9  ;;  %v5701_v29 = vcombine.high %v1848_v19, %v1880_v20  ;;  %v1756_v8 = vld [vmem:[%s7687_s19 + $0x3c8] sm:$0xff] }
 0xc93   : > { %4216 = vmatpush1.bf16.msra.mxu1 %v5692_v27  ;;  %v1849_v27 = vld [vmem:[%s7687_s19 + $0x6b0] sm:$0xff] }
 0xc94   : > { %4291 = vmatprep.subr.bf16.mxu1 %v5505_v23  ;;  %v5638_v23 = vcombine.low %v1785_v14, %v1817_v15  ;;  %v5703_v32 = vcombine.high %v1849_v27, %v1881_v28  ;;  %v1757_v14 = vld [vmem:[%s7687_s19 + $0x3d0] sm:$0xff] }
 0xc95   : > { %4257 = vmatpush1.bf16.msra.mxu0 %v5694_v30  ;;  %v1658_v30 = vld [vmem:[%s7687_s19 + $0xb8] sm:$0xff] }
 0xc96   : > { %5739 = vmatmul.mubr.msk.bf16.vlgmr.msra.gmra.mrb[36].mxu1 %vm811_vm2, %v6559_v38  ;;  %4332 = vmatprep.subr.bf16.mxu0 %v5507_v34  ;;  %v5700_v34 = vcombine.low %v1848_v19, %v1880_v20  ;;  %v5513_v36 = vcombine.high %v1658_v30, %v1690_v31  ;;  %v1820_v19 = vld [vmem:[%s7687_s19 + $0x5c8] sm:$0xff] }
 0xc97   : > { %4292 = vmatpush1.bf16.msra.mxu1 %v5504_v35  ;;  %4323 = vmatprep.mubr.bf16.mxu1 %v6116_v16  ;;  %v1659_v35 = vld [vmem:[%s7687_s19 + $0xc0] sm:$0xff] }
 0xc98   : > { %5740 = vmatmul.mubr.msk.bf16.vlgmr.msra.gmra.mrb[40].mxu0 %vm811_vm2, %v6559_v38  ;;  %4293 = vmatprep.subr.bf16.mxu1 %v5569_v37  ;;  %v5702_v37 = vcombine.low %v1849_v27, %v1881_v28  ;;  %v5515_v41 = vcombine.high %v1659_v35, %v1691_v33  ;;  %v1821_v27 = vld [vmem:[%s7687_s19 + $0x5d0] sm:$0xff] }
 0xc99   : > { %4333 = vmatpush1.bf16.msra.mxu0 %v5506_v39  ;;  %4364 = vmatprep.mubr.bf16.mxu0 %v6116_v16  ;;  %v1722_v39 = vld [vmem:[%s7687_s19 + $0x2b8] sm:$0xff] }
 0xc9a   : > { %4334 = vmatprep.subr.bf16.mxu0 %v5571_v42  ;;  %v5512_v42 = vcombine.low %v1658_v30, %v1690_v31  ;;  %v5577_v45 = vcombine.high %v1722_v39, %v1754_v40  ;;  %v1884_v30 = vld [vmem:[%s7687_s19 + $0x7c8] sm:$0xff] }
 0xc9b   : > { %4294 = vmatpush1.bf16.msra.mxu1 %v5568_v43  ;;  %v1723_v43 = vld [vmem:[%s7687_s19 + $0x2c0] sm:$0xff] }
 0xc9c   : > { %4295 = vmatprep.subr.bf16.mxu1 %v5633_v46  ;;  %v5514_v46 = vcombine.low %v1659_v35, %v1691_v33  ;;  %v5579_v49 = vcombine.high %v1723_v43, %v1755_v44  ;;  %v1885_v35 = vld [vmem:[%s7687_s19 + $0x7d0] sm:$0xff] }
 0xc9d   : > { %4335 = vmatpush1.bf16.msra.mxu0 %v5570_v47  ;;  %v1786_v47 = vld [vmem:[%s7687_s19 + $0x4b8] sm:$0xff] }
 0xc9e   : > { %4336 = vmatprep.subr.bf16.mxu0 %v5635_v50  ;;  %v5576_v50 = vcombine.low %v1722_v39, %v1754_v40  ;;  %v5641_v53 = vcombine.high %v1786_v47, %v1818_v48  ;;  %v1694_v39 = vld [vmem:[%s7687_s19 + $0x1d8] sm:$0xff] }
 0xc9f   : > { %4296 = vmatpush1.bf16.msra.mxu1 %v5632_v51  ;;  %v1787_v51 = vld [vmem:[%s7687_s19 + $0x4c0] sm:$0xff] }
 0xca0   : > { %4297 = vmatprep.subr.bf16.mxu1 %v5697_v54  ;;  %v5578_v54 = vcombine.low %v1723_v43, %v1755_v44  ;;  %v5643_v57 = vcombine.high %v1787_v51, %v1819_v52  ;;  %v1695_v43 = vld [vmem:[%s7687_s19 + $0x1e0] sm:$0xff] }
 0xca1   : > { %4337 = vmatpush1.bf16.msra.mxu0 %v5634_v55  ;;  %v1850_v55 = vld [vmem:[%s7687_s19 + $0x6b8] sm:$0xff] }
 0xca2   : > { %4338 = vmatprep.subr.bf16.mxu0 %v5699_v58  ;;  %v5640_v58 = vcombine.low %v1786_v47, %v1818_v48  ;;  %v5705_v61 = vcombine.high %v1850_v55, %v1882_v56  ;;  %v1758_v47 = vld [vmem:[%s7687_s19 + $0x3d8] sm:$0xff] }
 0xca3   : > { %4298 = vmatpush1.bf16.msra.mxu1 %v5696_v59  ;;  %v1851_v59 = vld [vmem:[%s7687_s19 + $0x6c0] sm:$0xff] }
 0xca4   : > { %4373 = vmatprep.subr.bf16.mxu1 %v5509_v62  ;;  %v5642_v62 = vcombine.low %v1787_v51, %v1819_v52  ;;  %v5707_v0 = vcombine.high %v1851_v59, %v1883_v60  ;;  %v1759_v51 = vld [vmem:[%s7687_s19 + $0x3e0] sm:$0xff] }
 0xca5   : > { %4339 = vmatpush1.bf16.msra.mxu0 %v5698_v1  ;;  %v1660_v1 = vld [vmem:[%s7687_s19 + $0xc8] sm:$0xff] }
 0xca6   : > { %5741 = vmatmul.mubr.msk.bf16.vlgmr.msra.gmra.mrb[40].mxu1 %vm811_vm2, %v6559_v38  ;;  %4414 = vmatprep.subr.bf16.mxu0 %v5511_v2  ;;  %v5704_v2 = vcombine.low %v1850_v55, %v1882_v56  ;;  %v5517_v5 = vcombine.high %v1660_v1, %v1692_v63  ;;  %v1790_v55 = vld [vmem:[%s7687_s19 + $0x4d8] sm:$0xff] }
 0xca7   : > { %4374 = vmatpush1.bf16.msra.mxu1 %v5508_v3  ;;  %4405 = vmatprep.mubr.bf16.mxu1 %v6116_v16  ;;  %v1661_v3 = vld [vmem:[%s7687_s19 + $0xd0] sm:$0xff]  ;;  %v1822_v56 = vld [vmem:[%s7687_s19 + $0x5d8] sm:$0xff] }
 0xca8   : > { %5742 = vmatmul.mubr.msk.bf16.vlgmr.msra.gmra.mrb[44].mxu0 %vm811_vm2, %v6559_v38  ;;  %4375 = vmatprep.subr.bf16.mxu1 %v5573_v6  ;;  %v5706_v6 = vcombine.low %v1851_v59, %v1883_v60  ;;  %v5519_v9 = vcombine.high %v1661_v3, %v1693_v4  ;;  %v1791_v60 = vld [vmem:[%s7687_s19 + $0x4e0] sm:$0xff] }
 0xca9   : > { %4415 = vmatpush1.bf16.msra.mxu0 %v5510_v7  ;;  %4446 = vmatprep.mubr.bf16.mxu0 %v6116_v16  ;;  %v1724_v7 = vld [vmem:[%s7687_s19 + $0x2c8] sm:$0xff] }
 0xcaa   : > { %4416 = vmatprep.subr.bf16.mxu0 %v5575_v10  ;;  %v5516_v10 = vcombine.low %v1660_v1, %v1692_v63  ;;  %v5581_v15 = vcombine.high %v1724_v7, %v1756_v8  ;;  %v5649_v1 = vcombine.high %v1790_v55, %v1822_v56 }
 0xcab   : > { %4376 = vmatpush1.bf16.msra.mxu1 %v5572_v13  ;;  %v1725_v13 = vld [vmem:[%s7687_s19 + $0x2d0] sm:$0xff] }
 0xcac   : > { %4377 = vmatprep.subr.bf16.mxu1 %v5637_v17  ;;  %v5518_v17 = vcombine.low %v1661_v3, %v1693_v4  ;;  %v5583_v20 = vcombine.high %v1725_v13, %v1757_v14  ;;  %v1854_v3 = vld [vmem:[%s7687_s19 + $0x6d8] sm:$0xff] }
 0xcad   : > { %4417 = vmatpush1.bf16.msra.mxu0 %v5574_v18  ;;  %v1788_v18 = vld [vmem:[%s7687_s19 + $0x4c8] sm:$0xff]  ;;  %v1886_v4 = vld [vmem:[%s7687_s19 + $0x7d8] sm:$0xff] }
 0xcae   : > { %4418 = vmatprep.subr.bf16.mxu0 %v5639_v25  ;;  %v5580_v25 = vcombine.low %v1724_v7, %v1756_v8  ;;  %v5645_v28 = vcombine.high %v1788_v18, %v1820_v19 }
 0xcaf   : > { %4378 = vmatpush1.bf16.msra.mxu1 %v5636_v26  ;;  %v1789_v26 = vld [vmem:[%s7687_s19 + $0x4d0] sm:$0xff] }
 0xcb0   : > { %4379 = vmatprep.subr.bf16.mxu1 %v5701_v29  ;;  %v5582_v29 = vcombine.low %v1725_v13, %v1757_v14  ;;  %v5647_v31 = vcombine.high %v1789_v26, %v1821_v27  ;;  %v1855_v13 = vld [vmem:[%s7687_s19 + $0x6e0] sm:$0xff] }
 0xcb1   : > { %4419 = vmatpush1.bf16.msra.mxu0 %v5638_v23  ;;  %v1852_v23 = vld [vmem:[%s7687_s19 + $0x6c8] sm:$0xff]  ;;  %v1887_v14 = vld [vmem:[%s7687_s19 + $0x7e0] sm:$0xff] }
 0xcb2   : > { %4420 = vmatprep.subr.bf16.mxu0 %v5703_v32  ;;  %v5644_v32 = vcombine.low %v1788_v18, %v1820_v19  ;;  %v5709_v33 = vcombine.high %v1852_v23, %v1884_v30  ;;  %v5713_v19 = vcombine.high %v1854_v3, %v1886_v4 }
 0xcb3   : > { %4380 = vmatpush1.bf16.msra.mxu1 %v5700_v34  ;;  %v1853_v34 = vld [vmem:[%s7687_s19 + $0x6d0] sm:$0xff] }
 0xcb4   : > { %4455 = vmatprep.subr.bf16.mxu1 %v5513_v36  ;;  %v5646_v36 = vcombine.low %v1789_v26, %v1821_v27  ;;  %v5711_v40 = vcombine.high %v1853_v34, %v1885_v35  ;;  %v1664_v27 = vld [vmem:[%s7687_s19 + $0xe8] sm:$0xff] }
 0xcb5   : > { %4421 = vmatpush1.bf16.msra.mxu0 %v5702_v37  ;;  %v1662_v37 = vld [vmem:[%s7687_s19 + $0xd8] sm:$0xff] }
 0xcb6   : > { %5743 = vmatmul.mubr.msk.bf16.vlgmr.msra.gmra.mrb[44].mxu1 %vm811_vm2, %v6559_v38  ;;  %4496 = vmatprep.subr.bf16.mxu0 %v5515_v41  ;;  %v5708_v41 = vcombine.low %v1852_v23, %v1884_v30  ;;  %v5521_v44 = vcombine.high %v1662_v37, %v1694_v39  ;;  %v5715_v23 = vcombine.high %v1855_v13, %v1887_v14 }
 0xcb7   : > { %4456 = vmatpush1.bf16.msra.mxu1 %v5512_v42  ;;  %4487 = vmatprep.mubr.bf16.mxu1 %v6116_v16  ;;  %v1663_v42 = vld [vmem:[%s7687_s19 + $0xe0] sm:$0xff] }
 0xcb8   : > { %5744 = vmatmul.mubr.msk.bf16.vlgmr.msra.gmra.mrb[48].mxu0 %vm811_vm2, %v6559_v38  ;;  %4457 = vmatprep.subr.bf16.mxu1 %v5577_v45  ;;  %v5710_v45 = vcombine.low %v1853_v34, %v1885_v35  ;;  %v5523_v48 = vcombine.high %v1663_v42, %v1695_v43  ;;  %v1697_v34 = vld [vmem:[%s7687_s19 + $0x1f0] sm:$0xff] }
 0xcb9   : > { %4497 = vmatpush1.bf16.msra.mxu0 %v5514_v46  ;;  %4528 = vmatprep.mubr.bf16.mxu0 %v6116_v16  ;;  %v1726_v46 = vld [vmem:[%s7687_s19 + $0x2d8] sm:$0xff] }
 0xcba   : > { %4498 = vmatprep.subr.bf16.mxu0 %v5579_v49  ;;  %v5520_v49 = vcombine.low %v1662_v37, %v1694_v39  ;;  %v5585_v52 = vcombine.high %v1726_v46, %v1758_v47  ;;  %v5584_v59 = vcombine.low %v1726_v46, %v1758_v47  ;;  %v1760_v37 = vld [vmem:[%s7687_s19 + $0x3e8] sm:$0xff]  ;;  %v7330_v46 = vsub.s32 4, %v6356_v21 }
 0xcbb   : > { %4458 = vmatpush1.bf16.msra.mxu1 %v5576_v50  ;;  %v1727_v50 = vld [vmem:[%s7687_s19 + $0x2e0] sm:$0xff] }
 0xcbc   : > { %4459 = vmatprep.subr.bf16.mxu1 %v5641_v53  ;;  %v5522_v53 = vcombine.low %v1663_v42, %v1695_v43  ;;  %v1729_v43 = vld [vmem:[%s7687_s19 + $0x2f0] sm:$0xff] }
 0xcbd   : > { %4499 = vmatpush1.bf16.msra.mxu0 %v5578_v54  ;;  %v7258_v54 = vld [vmem:[%s7689_s27] sm:$0xff] }
 0xcbe   : > { %4500 = vmatprep.subr.bf16.mxu0 %v5643_v57  ;;  %v5587_v57 = vcombine.high %v1727_v50, %v1759_v51 }
 0xcbf   : > { %4460 = vmatpush1.bf16.msra.mxu1 %v5640_v58  ;;  %v5460_v58 = vld [vmem:[%s7691_s14] ss:$0 sm:$0xff] }
 0xcc0   : > { %4461 = vmatprep.subr.bf16.mxu1 %v5705_v61  ;;  %v1823_v61 = vld [vmem:[%s7687_s19 + $0x5e0] sm:$0xff] }
 0xcc1   : > { %4501 = vmatpush1.bf16.msra.mxu0 %v5642_v62  ;;  %v1910_v62 = vrot.slane %v7258_v54, %v6359_v22  ;;  %v5651_v7 = vcombine.high %v1791_v60, %v1823_v61  ;;  %v5650_v26 = vcombine.low %v1791_v60, %v1823_v61 }
 0xcc2   : > { %4502 = vmatprep.subr.bf16.mxu0 %v5707_v0  ;;  %v5586_v0 = vcombine.low %v1727_v50, %v1759_v51  ;;  %v1824_v50 = vld [vmem:[%s7687_s19 + $0x5e8] sm:$0xff]  ;;  %v1918_v51 = vrot.slane %v7258_v54, %v6458_v11 }
 0xcc3   : > { %4462 = vmatpush1.bf16.msra.mxu1 %v5704_v2  ;;  %v1914_v2 = vrot.slane %v7258_v54, %v6365_v24 }
 0xcc4   : > { %4537 = vmatprep.subr.bf16.mxu1 %v5517_v5 }
 0xcc5   : > { %4503 = vmatpush1.bf16.msra.mxu0 %v5706_v6 }
 0xcc6   : > { %5745 = vmatmul.mubr.msk.bf16.vlgmr.msra.gmra.mrb[48].mxu1 %vm811_vm2, %v6559_v38  ;;  %4578 = vmatprep.subr.bf16.mxu0 %v5519_v9 }
 0xcc7   : > { %4538 = vmatpush1.bf16.msra.mxu1 %v5516_v10  ;;  %4569 = vmatprep.mubr.bf16.mxu1 %v6116_v16  ;;  %v5648_v10 = vcombine.low %v1790_v55, %v1822_v56  ;;  %v1922_v55 = vrot.slane %v7258_v54, %v6461_v12 }
 0xcc8   : > { %5746 = vmatmul.mubr.msk.bf16.vlgmr.msra.gmra.mrb[52].mxu0 %vm811_vm2, %v6559_v38  ;;  %4539 = vmatprep.subr.bf16.mxu1 %v5581_v15 }
 0xcc9   : > { %4579 = vmatpush1.bf16.msra.mxu0 %v5518_v17  ;;  %4610 = vmatprep.mubr.bf16.mxu0 %v6116_v16 }
 0xcca   : > { %4580 = vmatprep.subr.bf16.mxu0 %v5583_v20 }
 0xccb   : > { %4540 = vmatpush1.bf16.msra.mxu1 %v5580_v25 }
 0xccc   : > { %4541 = vmatprep.subr.bf16.mxu1 %v5645_v28  ;;  %v1696_v28 = vld [vmem:[%s7687_s19 + $0x1e8] sm:$0xff] }
 0xccd   : > { %4581 = vmatpush1.bf16.msra.mxu0 %v5582_v29  ;;  %v5525_v35 = vcombine.high %v1664_v27, %v1696_v28  ;;  %v5524_v42 = vcombine.low %v1664_v27, %v1696_v28 }
 0xcce   : > { %4582 = vmatprep.subr.bf16.mxu0 %v5647_v31  ;;  %v5712_v31 = vcombine.low %v1854_v3, %v1886_v4 }
 0xccf   : > { %4542 = vmatpush1.bf16.msra.mxu1 %v5644_v32  ;;  %v1665_v32 = vld [vmem:[%s7687_s19 + $0xf0] sm:$0xff] }
 0xcd0   : > { %4543 = vmatprep.subr.bf16.mxu1 %v5709_v33  ;;  %v5714_v33 = vcombine.low %v1855_v13, %v1887_v14  ;;  %v5527_v39 = vcombine.high %v1665_v32, %v1697_v34  ;;  %v5526_v47 = vcombine.low %v1665_v32, %v1697_v34  ;;  %v1889_v13 = vld [vmem:[%s7687_s19 + $0x7f0] sm:$0xff] }
 0xcd1   : > { %4583 = vmatpush1.bf16.msra.mxu0 %v5646_v36  ;;  %v1728_v36 = vld [vmem:[%s7687_s19 + $0x2e8] sm:$0xff] }
 0xcd2   : > { %4584 = vmatprep.subr.bf16.mxu0 %v5711_v40  ;;  %v6117_v40 = vmov 1983009808   ;;  %v5588_v56 = vcombine.low %v1728_v36, %v1760_v37 }
 0xcd3   : > { %4544 = vmatpush1.bf16.msra.mxu1 %v5708_v41  ;;  %v4891_v41 = vunpack.c.l.s4 %v6117_v40 }
 0xcd4   : > { %4619 = vmatprep.subr.bf16.mxu1 %v5521_v44  ;;  %v1761_v44 = vld [vmem:[%s7687_s19 + $0x3f0] sm:$0xff] }
 0xcd5   : > { %4585 = vmatpush1.bf16.msra.mxu0 %v5710_v45  ;;  %v5589_v45 = vcombine.high %v1728_v36, %v1760_v37 }
 0xcd6   : > { %5747 = vmatmul.mubr.msk.bf16.vlgmr.msra.gmra.mrb[52].mxu1 %vm811_vm2, %v6559_v38  ;;  %4660 = vmatprep.subr.bf16.mxu0 %v5523_v48  ;;  %v7333_v48 = vsub.s32 5, %v6356_v21 }
 0xcd7   : > { %4620 = vmatpush1.bf16.msra.mxu1 %v5520_v49  ;;  %4651 = vmatprep.mubr.bf16.mxu1 %v6116_v16  ;;  %v1792_v49 = vld [vmem:[%s7687_s19 + $0x4e8] sm:$0xff] }
 0xcd8   : > { %5748 = vmatmul.mubr.msk.bf16.vlgmr.msra.gmra.mrb[56].mxu0 %vm811_vm2, %v6559_v38  ;;  %4621 = vmatprep.subr.bf16.mxu1 %v5585_v52  ;;  %v5591_v52 = vcombine.high %v1729_v43, %v1761_v44  ;;  %v5653_v60 = vcombine.high %v1792_v49, %v1824_v50 }
 0xcd9   : > { %4661 = vmatpush1.bf16.msra.mxu0 %v5522_v53  ;;  %v1628_v63 = vpop.f32.mrb[0].mxu1  ;;  %4692 = vmatprep.mubr.bf16.mxu0 %v6116_v16  ;;  %v4892_v53 = vunpack.c.0.s8 %v4891_v41  ;;  %v1730_v41 = vld [vmem:[%s7687_s19 + $0x2f8] sm:$0xff] }
 0xcda   : > { %v1629_v5 = vadd.f32 %v5460_v58, %v1628_v63  ;;  %v5885_v6 = vpop.f32.mrb[1].mxu1  ;;  %4662 = vmatprep.subr.bf16.mxu0 %v5587_v57  ;;  %v1793_v57 = vld [vmem:[%s7687_s19 + $0x4f0] sm:$0xff]  ;;  %v1856_v63 = vld [vmem:[%s7687_s19 + $0x6e8] sm:$0xff] }
 0xcdb   : > { %4622 = vmatpush1.bf16.msra.mxu1 %v5584_v59  ;;  %v1631_v8 = vpop.f32.mrb[2].mxu1  ;;  %v3546_v9 = vpop.f32.mrb[4].mxu0  ;;  %v1825_v58 = vld [vmem:[%s7687_s19 + $0x5f0] sm:$0xff]  ;;  %v1926_v59 = vrot.slane %v7258_v54, %v7330_v46 }
 0xcdc   : > { %1634 = vst [vmem:[%s662_s0] sm:$0x3] %v1629_v5  ;;  %v7299_v15 = vadd.f32 %v3546_v9, %v1910_v62  ;;  %v5886_v17 = vpop.f32.mrb[3].mxu1  ;;  %v3548_v18 = vpop.f32.mrb[5].mxu0  ;;  %4623 = vmatprep.subr.bf16.mxu1 %v5649_v1  ;;  %v1930_v62 = vrot.slane %v7258_v54, %v7333_v48  ;;  %v5590_v1 = vcombine.low %v1729_v43, %v1761_v44  ;;  %v7409_v44 = vld [vmem:[%s7690_s21 + $0x8] sm:$0xff] }
 0xcdd   : > { %v7301_v20 = vadd.f32 %v3548_v18, %v1914_v2  ;;  %4663 = vmatpush1.bf16.msra.mxu0 %v5586_v0  ;;  %v3550_v25 = vpop.f32.mrb[6].mxu0  ;;  %v1888_v0 = vld [vmem:[%s7687_s19 + $0x7e8] sm:$0xff]  ;;  %v5655_v4 = vcombine.high %v1793_v57, %v1825_v58  ;;  %v7368_v5 = vsub.s32 %v4892_v53, %v6356_v21  ;;  %v5652_v9 = vcombine.low %v1792_v49, %v1824_v50 }
 0xcde   : > { %v3551_v29 = vpop.f32.mrb[7].mxu0  ;;  %4664 = vmatprep.subr.bf16.mxu0 %v5651_v7  ;;  %v5654_v28 = vcombine.low %v1793_v57, %v1825_v58  ;;  %v5716_v36 = vcombine.low %v1856_v63, %v1888_v0 }
 0xcdf   : > { %v4888_v30 = vcombine.low %v7299_v15, %v7301_v20  ;;  %4624 = vmatpush1.bf16.msra.mxu1 %v5648_v10  ;;  %v1857_v10 = vld [vmem:[%s7687_s19 + $0x6f0] sm:$0xff]  ;;  %v1666_v29 = vld [vmem:[%s7687_s19 + $0xf8] sm:$0xff]  ;;  %v7400_v20 = vsub.s32 6, %v6356_v21 }
 0xce0   : > { %4625 = vmatprep.subr.bf16.mxu1 %v5713_v19  ;;  %v5717_v19 = vcombine.high %v1856_v63, %v1888_v0  ;;  %v5719_v32 = vcombine.high %v1857_v10, %v1889_v13  ;;  %v5718_v40 = vcombine.low %v1857_v10, %v1889_v13  ;;  %v1762_v15 = vld [vmem:[%s7687_s19 + $0x3f8] sm:$0xff] }
 0xce1   : > { %4665 = vmatpush1.bf16.msra.mxu0 %v5650_v26  ;;  %v4896_v34 = vrot.slane %v4888_v30, %v7368_v5  ;;  %v5593_v43 = vcombine.high %v1730_v41, %v1762_v15  ;;  %v5592_v50 = vcombine.low %v1730_v41, %v1762_v15  ;;  %v1893_v15 = vld [vmem:[%s7690_s21 + $0x10] sm:$0xff] }
 0xce2   : > { %4666 = vmatprep.subr.bf16.mxu0 %v5715_v23  ;;  %v1698_v23 = vld [vmem:[%s7687_s19 + $0x1f8] sm:$0xff] }
 0xce3   : > { %4626 = vmatpush1.bf16.msra.mxu1 %v5712_v31  ;;  %v5529_v37 = vcombine.high %v1666_v29, %v1698_v23  ;;  %v5528_v30 = vcombine.low %v1666_v29, %v1698_v23 }
 0xce4   : > { %4701 = vmatprep.subr.bf16.mxu1 %v5525_v35 }
 0xce5   : > { %4667 = vmatpush1.bf16.msra.mxu0 %v5714_v33 }
 0xce6   : > { %5749 = vmatmul.mubr.msk.bf16.vlgmr.msra.gmra.mrb[56].mxu1 %vm811_vm2, %v6559_v38  ;;  %4742 = vmatprep.subr.bf16.mxu0 %v5527_v39 }
 0xce7   : > { %4702 = vmatpush1.bf16.msra.mxu1 %v5524_v42  ;;  %4733 = vmatprep.mubr.bf16.mxu1 %v6116_v16  ;;  %v7404_v42 = vsub.s32 7, %v6356_v21  ;;  %v1934_v21 = vrot.slane %v7258_v54, %v7400_v20 }
 0xce8   : > { %5750 = vmatmul.mubr.msk.bf16.vlgmr.msra.gmra.mrb[60].mxu0 %vm811_vm2, %v6559_v38  ;;  %4703 = vmatprep.subr.bf16.mxu1 %v5589_v45  ;;  %v1794_v45 = vld [vmem:[%s7687_s19 + $0x4f8] sm:$0xff] }
 0xce9   : > { %v3587_v61 = vpop.f32.mrb[4].mxu1  ;;  %4743 = vmatpush1.bf16.msra.mxu0 %v5526_v47  ;;  %4774 = vmatprep.mubr.bf16.mxu0 %v6116_v16  ;;  %v1826_v47 = vld [vmem:[%s7687_s19 + $0x5f8] sm:$0xff]  ;;  %v1938_v49 = vrot.slane %v7258_v54, %v7404_v42 }
 0xcea   : > { %v3588_v2 = vadd.f32 %v3587_v61, %v1918_v51  ;;  %v3589_v3 = vpop.f32.mrb[5].mxu1  ;;  %4744 = vmatprep.subr.bf16.mxu0 %v5591_v52  ;;  %v1942_v51 = vrot.slane %v7409_v44, %v6359_v22  ;;  %v5657_v52 = vcombine.high %v1794_v45, %v1826_v47  ;;  %v5656_v61 = vcombine.low %v1794_v45, %v1826_v47 }
 0xceb   : > { %v3590_v6 = vadd.f32 %v3589_v3, %v1922_v55  ;;  %v3591_v7 = vpop.f32.mrb[6].mxu1  ;;  %v3628_v8 = vpop.f32.mrb[8].mxu0  ;;  %4704 = vmatpush1.bf16.msra.mxu1 %v5588_v56  ;;  %v1946_v55 = vrot.slane %v7409_v44, %v6365_v24  ;;  %v1858_v56 = vld [vmem:[%s7687_s19 + $0x6f8] sm:$0xff]  ;;  %v1974_v45 = vrot.slane %v1893_v15, %v6359_v22 }
 0xcec   : > { %v7376_v14 = vadd.f32 %v3628_v8, %v1926_v59  ;;  %v3592_v17 = vpop.f32.mrb[7].mxu1  ;;  %v3630_v18 = vpop.f32.mrb[9].mxu0  ;;  %4705 = vmatprep.subr.bf16.mxu1 %v5653_v60 }
 0xced   : > { %v4889_v25 = vcombine.low %v3588_v2, %v3590_v6  ;;  %v7378_v26 = vadd.f32 %v3630_v18, %v1930_v62  ;;  %v3632_v27 = vpop.f32.mrb[10].mxu0  ;;  %4745 = vmatpush1.bf16.msra.mxu0 %v5590_v1  ;;  %v1954_v17 = vrot.slane %v7409_v44, %v6461_v12  ;;  %v1958_v18 = vrot.slane %v7409_v44, %v7330_v46 }
 0xcee   : > { %v3633_v31 = vpop.f32.mrb[11].mxu0  ;;  %4746 = vmatprep.subr.bf16.mxu0 %v5655_v4 }
 0xcef   : > { %v4903_v35 = vrot.slane %v4889_v25, %v7368_v5  ;;  %v4905_v33 = vcombine.low %v7376_v14, %v7378_v26  ;;  %4706 = vmatpush1.bf16.msra.mxu1 %v5652_v9  ;;  %v1950_v14 = vrot.slane %v7409_v44, %v6458_v11  ;;  %v1962_v25 = vrot.slane %v7409_v44, %v7333_v48 }
 0xcf0   : > { %4707 = vmatprep.subr.bf16.mxu1 %v5717_v19 }
 0xcf1   : > { %v4904_v39 = vcombine.low %v4896_v34, %v4903_v35  ;;  %4747 = vmatpush1.bf16.msra.mxu0 %v5654_v28  ;;  %v4913_v7 = vrot.slane %v4905_v33, %v7368_v5 }
 0xcf2   : > { %4748 = vmatprep.subr.bf16.mxu0 %v5719_v32 }
 0xcf3   : > { %5176 = vst [vmem:[%s6338_s16] sm:$0xff] %v4904_v39  ;;  %4708 = vmatpush1.bf16.msra.mxu1 %v5716_v36 }
 0xcf4   : > { %4783 = vmatprep.subr.bf16.mxu1 %v5529_v37 }
 0xcf5   : > { %4749 = vmatpush1.bf16.msra.mxu0 %v5718_v40 }
 0xcf6   : > { %5751 = vmatmul.mubr.msk.bf16.vlgmr.msra.gmra.mrb[60].mxu1 %vm811_vm2, %v6559_v38 }
 0xcf7   : > { %4784 = vmatpush1.bf16.msra.mxu1 %v5528_v30  ;;  %4815 = vmatprep.mubr.bf16.mxu1 %v6116_v16  ;;  %v1890_v16 = vld [vmem:[%s7687_s19 + $0x7f8] sm:$0xff]  ;;  %v1966_v30 = vrot.slane %v7409_v44, %v7400_v20 }
 0xcf8   : > { %5752 = vmatmul.mubr.msk.bf16.vlgmr.msra.gmra.mrb[64].mxu0 %vm811_vm2, %v6559_v38  ;;  %4785 = vmatprep.subr.bf16.mxu1 %v5593_v43  ;;  %v5721_v0 = vcombine.high %v1858_v56, %v1890_v16  ;;  %v5720_v10 = vcombine.low %v1858_v56, %v1890_v16  ;;  %v1970_v43 = vrot.slane %v7409_v44, %v7404_v42 }
 0xcf9   : > { %v3669_v53 = vpop.f32.mrb[8].mxu1 }
 0xcfa   : > { %v3670_v54 = vadd.f32 %v3669_v53, %v1934_v21  ;;  %v3671_v57 = vpop.f32.mrb[9].mxu1  ;;  %v1978_v21 = vrot.slane %v1893_v15, %v6365_v24 }
 0xcfb   : > { %v3672_v58 = vadd.f32 %v3671_v57, %v1938_v49  ;;  %v3673_v59 = vpop.f32.mrb[10].mxu1  ;;  %v3710_v60 = vpop.f32.mrb[12].mxu0  ;;  %4786 = vmatpush1.bf16.msra.mxu1 %v5592_v50 }
 0xcfc   : > { %v3711_v62 = vadd.f32 %v3710_v60, %v1942_v51  ;;  %v3674_v1 = vpop.f32.mrb[11].mxu1  ;;  %v3712_v63 = vpop.f32.mrb[13].mxu0  ;;  %4787 = vmatprep.subr.bf16.mxu1 %v5657_v52 }
 0xcfd   : > { %v4906_v2 = vcombine.low %v3670_v54, %v3672_v58  ;;  %v3713_v3 = vadd.f32 %v3712_v63, %v1946_v55  ;;  %v3714_v4 = vpop.f32.mrb[14].mxu0  ;;  %v1982_v1 = vrot.slane %v1893_v15, %v6458_v11  ;;  %v1986_v63 = vrot.slane %v1893_v15, %v6461_v12 }
 0xcfe   : > { %v3715_v6 = vpop.f32.mrb[15].mxu0 }
 0xcff   : > { %v4920_v8 = vrot.slane %v4906_v2, %v7368_v5  ;;  %v4922_v9 = vcombine.low %v3711_v62, %v3713_v3  ;;  %4788 = vmatpush1.bf16.msra.mxu1 %v5656_v61  ;;  %v1994_v3 = vrot.slane %v1893_v15, %v7333_v48 }
 0xd00   : > { %4789 = vmatprep.subr.bf16.mxu1 %v5721_v0  ;;  %v1990_v0 = vrot.slane %v1893_v15, %v7330_v46 }
 0xd01   : > { %v4921_v13 = vcombine.low %v4913_v7, %v4920_v8  ;;  %v4930_v37 = vrot.slane %v4922_v9, %v7368_v5 }
 0xd03   : > { %5177 = vst [vmem:[%s6338_s16 + $0x8] sm:$0xff] %v4921_v13  ;;  %4790 = vmatpush1.bf16.msra.mxu1 %v5720_v10 }
 0xd06   : > { %5753 = vmatmul.mubr.msk.bf16.vlgmr.msra.gmra.mrb[64].mxu1 %vm811_vm2, %v6559_v38 }
 0xd09   : > { %v3751_v19 = vpop.f32.mrb[12].mxu1 }
 0xd0a   : > { %v3752_v26 = vadd.f32 %v3751_v19, %v1950_v14  ;;  %v3753_v27 = vpop.f32.mrb[13].mxu1 }
 0xd0b   : > { %v3754_v28 = vadd.f32 %v3753_v27, %v1954_v17  ;;  %v3755_v29 = vpop.f32.mrb[14].mxu1  ;;  %v3792_v23 = vpop.f32.mrb[16].mxu0 }
 0xd0c   : > { %v3793_v38 = vadd.f32 %v3792_v23, %v1958_v18  ;;  %v3756_v31 = vpop.f32.mrb[15].mxu1  ;;  %v3794_v32 = vpop.f32.mrb[17].mxu0  ;;  %v1894_v23 = vld [vmem:[%s7690_s21 + $0x18] sm:$0xff] }
 0xd0d   : > { %v4923_v34 = vcombine.low %v3752_v26, %v3754_v28  ;;  %v3795_v35 = vadd.f32 %v3794_v32, %v1962_v25  ;;  %v3796_v33 = vpop.f32.mrb[18].mxu0  ;;  %v2002_v31 = vrot.slane %v1893_v15, %v7404_v42  ;;  %v2006_v32 = vrot.slane %v1894_v23, %v6359_v22 }
 0xd0e   : > { %v3797_v36 = vpop.f32.mrb[19].mxu0 }
 0xd0f   : > { %v4937_v39 = vrot.slane %v4923_v34, %v7368_v5  ;;  %v4939_v40 = vcombine.low %v3793_v38, %v3795_v35  ;;  %v1998_v38 = vrot.slane %v1893_v15, %v7400_v20  ;;  %v2010_v35 = vrot.slane %v1894_v23, %v6365_v24 }
 0xd11   : > { %v4938_v41 = vcombine.low %v4930_v37, %v4937_v39  ;;  %v4947_v44 = vrot.slane %v4939_v40, %v7368_v5 }
 0xd13   : > { %5178 = vst [vmem:[%s6338_s16 + $0x10] sm:$0xff] %v4938_v41 }
 0xd19   : > { %v3833_v47 = vpop.f32.mrb[16].mxu1 }
 0xd1a   : > { %v3834_v49 = vadd.f32 %v3833_v47, %v1966_v30  ;;  %v3835_v50 = vpop.f32.mrb[17].mxu1 }
 0xd1b   : > { %v3836_v51 = vadd.f32 %v3835_v50, %v1970_v43  ;;  %v3837_v52 = vpop.f32.mrb[18].mxu1  ;;  %v3874_v53 = vpop.f32.mrb[20].mxu0 }
 0xd1c   : > { %v3875_v55 = vadd.f32 %v3874_v53, %v1974_v45  ;;  %v3838_v56 = vpop.f32.mrb[19].mxu1  ;;  %v3876_v16 = vpop.f32.mrb[21].mxu0  ;;  %v2014_v53 = vrot.slane %v1894_v23, %v6458_v11 }
 0xd1d   : > { %v4940_v54 = vcombine.low %v3834_v49, %v3836_v51  ;;  %v3877_v57 = vadd.f32 %v3876_v16, %v1978_v21  ;;  %v3878_v58 = vpop.f32.mrb[22].mxu0  ;;  %v2022_v56 = vrot.slane %v1894_v23, %v7330_v46 }
 0xd1e   : > { %v3879_v59 = vpop.f32.mrb[23].mxu0 }
 0xd1f   : > { %v4954_v60 = vrot.slane %v4940_v54, %v7368_v5  ;;  %v4956_v61 = vcombine.low %v3875_v55, %v3877_v57  ;;  %v2018_v55 = vrot.slane %v1894_v23, %v6461_v12  ;;  %v2026_v54 = vrot.slane %v1894_v23, %v7333_v48 }
 0xd21   : > { %v4955_v62 = vcombine.low %v4947_v44, %v4954_v60  ;;  %v4964_v26 = vrot.slane %v4956_v61, %v7368_v5 }
 0xd23   : > { %5179 = vst [vmem:[%s6338_s16 + $0x18] sm:$0xff] %v4955_v62 }
 0xd29   : > { %v3915_v2 = vpop.f32.mrb[20].mxu1 }
 0xd2a   : > { %v3916_v4 = vadd.f32 %v3915_v2, %v1982_v1  ;;  %v3917_v6 = vpop.f32.mrb[21].mxu1 }
 0xd2b   : > { %v3918_v7 = vadd.f32 %v3917_v6, %v1986_v63  ;;  %v3919_v8 = vpop.f32.mrb[22].mxu1  ;;  %v3956_v9 = vpop.f32.mrb[24].mxu0 }
 0xd2c   : > { %v3957_v10 = vadd.f32 %v3956_v9, %v1990_v0  ;;  %v3920_v13 = vpop.f32.mrb[23].mxu1  ;;  %v3958_v14 = vpop.f32.mrb[25].mxu0  ;;  %v1895_v9 = vld [vmem:[%s7690_s21 + $0x20] sm:$0xff] }
 0xd2d   : > { %v4957_v17 = vcombine.low %v3916_v4, %v3918_v7  ;;  %v3959_v18 = vadd.f32 %v3958_v14, %v1994_v3  ;;  %v3960_v19 = vpop.f32.mrb[26].mxu0  ;;  %v2034_v13 = vrot.slane %v1894_v23, %v7404_v42  ;;  %v2038_v14 = vrot.slane %v1895_v9, %v6359_v22 }
 0xd2e   : > { %v3961_v25 = vpop.f32.mrb[27].mxu0 }
 0xd2f   : > { %v4971_v27 = vrot.slane %v4957_v17, %v7368_v5  ;;  %v4973_v28 = vcombine.low %v3957_v10, %v3959_v18  ;;  %v2030_v10 = vrot.slane %v1894_v23, %v7400_v20  ;;  %v2042_v18 = vrot.slane %v1895_v9, %v6365_v24 }
 0xd31   : > { %v4972_v29 = vcombine.low %v4964_v26, %v4971_v27  ;;  %v4981_v15 = vrot.slane %v4973_v28, %v7368_v5 }
 0xd33   : > { %5180 = vst [vmem:[%s6338_s16 + $0x20] sm:$0xff] %v4972_v29 }
 0xd39   : > { %v3997_v34 = vpop.f32.mrb[24].mxu1 }
 0xd3a   : > { %v3998_v33 = vadd.f32 %v3997_v34, %v1998_v38  ;;  %v3999_v36 = vpop.f32.mrb[25].mxu1 }
 0xd3b   : > { %v4000_v37 = vadd.f32 %v3999_v36, %v2002_v31  ;;  %v4001_v39 = vpop.f32.mrb[26].mxu1  ;;  %v4038_v40 = vpop.f32.mrb[28].mxu0 }
 0xd3c   : > { %v4039_v41 = vadd.f32 %v4038_v40, %v2006_v32  ;;  %v4002_v30 = vpop.f32.mrb[27].mxu1  ;;  %v4040_v43 = vpop.f32.mrb[29].mxu0  ;;  %v2046_v40 = vrot.slane %v1895_v9, %v6458_v11 }
 0xd3d   : > { %v4974_v45 = vcombine.low %v3998_v33, %v4000_v37  ;;  %v4041_v47 = vadd.f32 %v4040_v43, %v2010_v35  ;;  %v4042_v21 = vpop.f32.mrb[30].mxu0  ;;  %v2054_v30 = vrot.slane %v1895_v9, %v7330_v46 }
 0xd3e   : > { %v4043_v49 = vpop.f32.mrb[31].mxu0 }
 0xd3f   : > { %v4988_v50 = vrot.slane %v4974_v45, %v7368_v5  ;;  %v4990_v51 = vcombine.low %v4039_v41, %v4041_v47  ;;  %v2050_v41 = vrot.slane %v1895_v9, %v6461_v12  ;;  %v2058_v45 = vrot.slane %v1895_v9, %v7333_v48 }
 0xd41   : > { %v4989_v52 = vcombine.low %v4981_v15, %v4988_v50  ;;  %v4998_v4 = vrot.slane %v4990_v51, %v7368_v5 }
 0xd43   : > { %5181 = vst [vmem:[%s6338_s16 + $0x28] sm:$0xff] %v4989_v52 }
 0xd49   : > { %v4079_v16 = vpop.f32.mrb[28].mxu1 }
 0xd4a   : > { %v4080_v57 = vadd.f32 %v4079_v16, %v2014_v53  ;;  %v4081_v58 = vpop.f32.mrb[29].mxu1 }
 0xd4b   : > { %v4082_v59 = vadd.f32 %v4081_v58, %v2018_v55  ;;  %v4083_v44 = vpop.f32.mrb[30].mxu1  ;;  %v4120_v60 = vpop.f32.mrb[32].mxu0 }
 0xd4c   : > { %v4121_v61 = vadd.f32 %v4120_v60, %v2022_v56  ;;  %v4084_v62 = vpop.f32.mrb[31].mxu1  ;;  %v4122_v1 = vpop.f32.mrb[33].mxu0  ;;  %v1896_v60 = vld [vmem:[%s7690_s21 + $0x28] sm:$0xff] }
 0xd4d   : > { %v4991_v63 = vcombine.low %v4080_v57, %v4082_v59  ;;  %v4123_v0 = vadd.f32 %v4122_v1, %v2026_v54  ;;  %v4124_v2 = vpop.f32.mrb[34].mxu0  ;;  %v2066_v62 = vrot.slane %v1895_v9, %v7404_v42  ;;  %v2070_v1 = vrot.slane %v1896_v60, %v6359_v22 }
 0xd4e   : > { %v4125_v3 = vpop.f32.mrb[35].mxu0 }
 0xd4f   : > { %v5005_v6 = vrot.slane %v4991_v63, %v7368_v5  ;;  %v5007_v7 = vcombine.low %v4121_v61, %v4123_v0  ;;  %v2062_v61 = vrot.slane %v1895_v9, %v7400_v20  ;;  %v2074_v0 = vrot.slane %v1896_v60, %v6365_v24 }
 0xd51   : > { %v5006_v8 = vcombine.low %v4998_v4, %v5005_v6  ;;  %v5015_v23 = vrot.slane %v5007_v7, %v7368_v5 }
 0xd53   : > { %5182 = vst [vmem:[%s6338_s16 + $0x30] sm:$0xff] %v5006_v8 }
 0xd59   : > { %v4161_v17 = vpop.f32.mrb[32].mxu1 }
 0xd5a   : > { %v4162_v19 = vadd.f32 %v4161_v17, %v2030_v10  ;;  %v4163_v25 = vpop.f32.mrb[33].mxu1 }
 0xd5b   : > { %v4164_v26 = vadd.f32 %v4163_v25, %v2034_v13  ;;  %v4165_v27 = vpop.f32.mrb[34].mxu1  ;;  %v4202_v28 = vpop.f32.mrb[36].mxu0 }
 0xd5c   : > { %v4203_v29 = vadd.f32 %v4202_v28, %v2038_v14  ;;  %v4166_v38 = vpop.f32.mrb[35].mxu1  ;;  %v4204_v31 = vpop.f32.mrb[37].mxu0  ;;  %v2078_v28 = vrot.slane %v1896_v60, %v6458_v11 }
 0xd5d   : > { %v5008_v32 = vcombine.low %v4162_v19, %v4164_v26  ;;  %v4205_v34 = vadd.f32 %v4204_v31, %v2042_v18  ;;  %v4206_v35 = vpop.f32.mrb[38].mxu0  ;;  %v2086_v38 = vrot.slane %v1896_v60, %v7330_v46 }
 0xd5e   : > { %v4207_v33 = vpop.f32.mrb[39].mxu0 }
 0xd5f   : > { %v5022_v36 = vrot.slane %v5008_v32, %v7368_v5  ;;  %v5024_v37 = vcombine.low %v4203_v29, %v4205_v34  ;;  %v2082_v29 = vrot.slane %v1896_v60, %v6461_v12  ;;  %v2090_v32 = vrot.slane %v1896_v60, %v7333_v48 }
 0xd61   : > { %v5023_v39 = vcombine.low %v5015_v23, %v5022_v36  ;;  %v5032_v57 = vrot.slane %v5024_v37, %v7368_v5 }
 0xd63   : > { %5183 = vst [vmem:[%s6338_s16 + $0x38] sm:$0xff] %v5023_v39 }
 0xd69   : > { %v4243_v43 = vpop.f32.mrb[36].mxu1 }
 0xd6a   : > { %v4244_v47 = vadd.f32 %v4243_v43, %v2046_v40  ;;  %v4245_v21 = vpop.f32.mrb[37].mxu1 }
 0xd6b   : > { %v4246_v49 = vadd.f32 %v4245_v21, %v2050_v41  ;;  %v4247_v15 = vpop.f32.mrb[38].mxu1  ;;  %v4284_v50 = vpop.f32.mrb[40].mxu0 }
 0xd6c   : > { %v4285_v51 = vadd.f32 %v4284_v50, %v2054_v30  ;;  %v4248_v52 = vpop.f32.mrb[39].mxu1  ;;  %v4286_v53 = vpop.f32.mrb[41].mxu0  ;;  %v1897_v50 = vld [vmem:[%s7690_s21 + $0x30] sm:$0xff] }
 0xd6d   : > { %v5025_v55 = vcombine.low %v4244_v47, %v4246_v49  ;;  %v4287_v56 = vadd.f32 %v4286_v53, %v2058_v45  ;;  %v4288_v16 = vpop.f32.mrb[42].mxu0  ;;  %v2098_v52 = vrot.slane %v1896_v60, %v7404_v42  ;;  %v2102_v53 = vrot.slane %v1897_v50, %v6359_v22 }
 0xd6e   : > { %v4289_v54 = vpop.f32.mrb[43].mxu0 }
 0xd6f   : > { %v5039_v58 = vrot.slane %v5025_v55, %v7368_v5  ;;  %v5041_v59 = vcombine.low %v4285_v51, %v4287_v56  ;;  %v2094_v51 = vrot.slane %v1896_v60, %v7400_v20  ;;  %v2106_v56 = vrot.slane %v1897_v50, %v6365_v24 }
 0xd71   : > { %v5040_v44 = vcombine.low %v5032_v57, %v5039_v58  ;;  %v5049_v9 = vrot.slane %v5041_v59, %v7368_v5 }
 0xd73   : > { %5184 = vst [vmem:[%s6338_s16 + $0x40] sm:$0xff] %v5040_v44 }
 0xd79   : > { %v4325_v63 = vpop.f32.mrb[40].mxu1 }
 0xd7a   : > { %v4326_v2 = vadd.f32 %v4325_v63, %v2062_v61  ;;  %v4327_v3 = vpop.f32.mrb[41].mxu1 }
 0xd7b   : > { %v4328_v4 = vadd.f32 %v4327_v3, %v2066_v62  ;;  %v4329_v6 = vpop.f32.mrb[42].mxu1  ;;  %v4366_v7 = vpop.f32.mrb[44].mxu0 }
 0xd7c   : > { %v4367_v8 = vadd.f32 %v4366_v7, %v2070_v1  ;;  %v4330_v10 = vpop.f32.mrb[43].mxu1  ;;  %v4368_v13 = vpop.f32.mrb[45].mxu0  ;;  %v2110_v7 = vrot.slane %v1897_v50, %v6458_v11 }
 0xd7d   : > { %v5042_v14 = vcombine.low %v4326_v2, %v4328_v4  ;;  %v4369_v17 = vadd.f32 %v4368_v13, %v2074_v0  ;;  %v4370_v18 = vpop.f32.mrb[46].mxu0  ;;  %v2118_v10 = vrot.slane %v1897_v50, %v7330_v46 }
 0xd7e   : > { %v4371_v19 = vpop.f32.mrb[47].mxu0 }
 0xd7f   : > { %v5056_v25 = vrot.slane %v5042_v14, %v7368_v5  ;;  %v5058_v26 = vcombine.low %v4367_v8, %v4369_v17  ;;  %v2114_v8 = vrot.slane %v1897_v50, %v6461_v12  ;;  %v2122_v14 = vrot.slane %v1897_v50, %v7333_v48 }
 0xd81   : > { %v5057_v27 = vcombine.low %v5049_v9, %v5056_v25  ;;  %v5066_v47 = vrot.slane %v5058_v26, %v7368_v5 }
 0xd83   : > { %5185 = vst [vmem:[%s6338_s16 + $0x48] sm:$0xff] %v5057_v27 }
 0xd89   : > { %v4407_v31 = vpop.f32.mrb[44].mxu1 }
 0xd8a   : > { %v4408_v34 = vadd.f32 %v4407_v31, %v2078_v28  ;;  %v4409_v35 = vpop.f32.mrb[45].mxu1 }
 0xd8b   : > { %v4410_v33 = vadd.f32 %v4409_v35, %v2082_v29  ;;  %v4411_v23 = vpop.f32.mrb[46].mxu1  ;;  %v4448_v36 = vpop.f32.mrb[48].mxu0 }
 0xd8c   : > { %v4449_v37 = vadd.f32 %v4448_v36, %v2086_v38  ;;  %v4412_v39 = vpop.f32.mrb[47].mxu1  ;;  %v4450_v40 = vpop.f32.mrb[49].mxu0  ;;  %v1898_v36 = vld [vmem:[%s7690_s21 + $0x38] sm:$0xff] }
 0xd8d   : > { %v5059_v41 = vcombine.low %v4408_v34, %v4410_v33  ;;  %v4451_v30 = vadd.f32 %v4450_v40, %v2090_v32  ;;  %v4452_v43 = vpop.f32.mrb[50].mxu0  ;;  %v2130_v39 = vrot.slane %v1897_v50, %v7404_v42  ;;  %v2134_v40 = vrot.slane %v1898_v36, %v6359_v22 }
 0xd8e   : > { %v4453_v45 = vpop.f32.mrb[51].mxu0 }
 0xd8f   : > { %v5073_v21 = vrot.slane %v5059_v41, %v7368_v5  ;;  %v5075_v49 = vcombine.low %v4449_v37, %v4451_v30  ;;  %v2126_v37 = vrot.slane %v1897_v50, %v7400_v20  ;;  %v2138_v30 = vrot.slane %v1898_v36, %v6365_v24 }
 0xd90   : > { %v2142_v24 = vrot.slane %v1898_v36, %v6458_v11 }
 0xd91   : > { %v5074_v15 = vcombine.low %v5066_v47, %v5073_v21  ;;  %v5083_v60 = vrot.slane %v5075_v49, %v7368_v5 }
 0xd93   : > { %5186 = vst [vmem:[%s6338_s16 + $0x50] sm:$0xff] %v5074_v15 }
 0xd99   : > { %v4489_v55 = vpop.f32.mrb[48].mxu1 }
 0xd9a   : > { %v4490_v16 = vadd.f32 %v4489_v55, %v2094_v51  ;;  %v4491_v54 = vpop.f32.mrb[49].mxu1 }
 0xd9b   : > { %v4492_v57 = vadd.f32 %v4491_v54, %v2098_v52  ;;  %v4493_v58 = vpop.f32.mrb[50].mxu1  ;;  %v4530_v59 = vpop.f32.mrb[52].mxu0 }
 0xd9c   : > { %v4531_v44 = vadd.f32 %v4530_v59, %v2102_v53  ;;  %v4494_v61 = vpop.f32.mrb[51].mxu1  ;;  %v4532_v62 = vpop.f32.mrb[53].mxu0  ;;  %v2146_v58 = vrot.slane %v1898_v36, %v6461_v12  ;;  %v2150_v59 = vrot.slane %v1898_v36, %v7330_v46 }
 0xd9d   : > { %v5076_v1 = vcombine.low %v4490_v16, %v4492_v57  ;;  %v4533_v63 = vadd.f32 %v4532_v62, %v2106_v56  ;;  %v4534_v0 = vpop.f32.mrb[54].mxu0  ;;  %v2154_v61 = vrot.slane %v1898_v36, %v7333_v48 }
 0xd9e   : > { %v4535_v2 = vpop.f32.mrb[55].mxu0 }
 0xd9f   : > { %v5090_v3 = vrot.slane %v5076_v1, %v7368_v5  ;;  %v5092_v4 = vcombine.low %v4531_v44, %v4533_v63 }
 0xda1   : > { %v5091_v6 = vcombine.low %v5083_v60, %v5090_v3  ;;  %v5100_v34 = vrot.slane %v5092_v4, %v7368_v5 }
 0xda3   : > { %5187 = vst [vmem:[%s6338_s16 + $0x58] sm:$0xff] %v5091_v6 }
 0xda9   : > { %v4571_v13 = vpop.f32.mrb[52].mxu1 }
 0xdaa   : > { %v4572_v17 = vadd.f32 %v4571_v13, %v2110_v7  ;;  %v4573_v18 = vpop.f32.mrb[53].mxu1  ;;  %v2158_v13 = vrot.slane %v1898_v36, %v7400_v20 }
 0xdab   : > { %v4574_v19 = vadd.f32 %v4573_v18, %v2114_v8  ;;  %v4575_v9 = vpop.f32.mrb[54].mxu1  ;;  %v4612_v25 = vpop.f32.mrb[56].mxu0 }
 0xdac   : > { %v4613_v26 = vadd.f32 %v4612_v25, %v2118_v10  ;;  %v4576_v27 = vpop.f32.mrb[55].mxu1  ;;  %v4614_v28 = vpop.f32.mrb[57].mxu0 }
 0xdad   : > { %v5093_v29 = vcombine.low %v4572_v17, %v4574_v19  ;;  %v4615_v38 = vadd.f32 %v4614_v28, %v2122_v14  ;;  %v4616_v31 = vpop.f32.mrb[58].mxu0  ;;  %v2162_v14 = vrot.slane %v1898_v36, %v7404_v42 }
 0xdae   : > { %v4617_v32 = vpop.f32.mrb[59].mxu0 }
 0xdaf   : > { %v5107_v35 = vrot.slane %v5093_v29, %v7368_v5  ;;  %v5109_v33 = vcombine.low %v4613_v26, %v4615_v38 }
 0xdb1   : > { %v5108_v23 = vcombine.low %v5100_v34, %v5107_v35  ;;  %v5117_v50 = vrot.slane %v5109_v33, %v7368_v5 }
 0xdb3   : > { %5188 = vst [vmem:[%s6338_s16 + $0x60] sm:$0xff] %v5108_v23 }
 0xdb9   : > { %v4653_v41 = vpop.f32.mrb[56].mxu1 }
 0xdba   : > { %v4654_v43 = vadd.f32 %v4653_v41, %v2126_v37  ;;  %v4655_v45 = vpop.f32.mrb[57].mxu1 }
 0xdbb   : > { %v4656_v47 = vadd.f32 %v4655_v45, %v2130_v39  ;;  %v4657_v21 = vpop.f32.mrb[58].mxu1  ;;  %v4694_v49 = vpop.f32.mrb[60].mxu0 }
 0xdbc   : > { %v4695_v15 = vadd.f32 %v4694_v49, %v2134_v40  ;;  %v4658_v51 = vpop.f32.mrb[59].mxu1  ;;  %v4696_v52 = vpop.f32.mrb[61].mxu0 }
 0xdbd   : > { %v5110_v53 = vcombine.low %v4654_v43, %v4656_v47  ;;  %v4697_v55 = vadd.f32 %v4696_v52, %v2138_v30  ;;  %v4698_v56 = vpop.f32.mrb[62].mxu0 }
 0xdbe   : > { %v4699_v16 = vpop.f32.mrb[63].mxu0 }
 0xdbf   : > { %v5124_v22 = vrot.slane %v5110_v53, %v7368_v5  ;;  %v5126_v54 = vcombine.low %v4695_v15, %v4697_v55 }
 0xdc1   : > { %v5125_v57 = vcombine.low %v5117_v50, %v5124_v22  ;;  %v5134_v12 = vrot.slane %v5126_v54, %v7368_v5 }
 0xdc3   : > { %5189 = vst [vmem:[%s6338_s16 + $0x68] sm:$0xff] %v5125_v57 }
 0xdc9   : > { %v4735_v44 = vpop.f32.mrb[60].mxu1 }
 0xdca   : > { %v4736_v62 = vadd.f32 %v4735_v44, %v2142_v24  ;;  %v4737_v1 = vpop.f32.mrb[61].mxu1 }
 0xdcb   : > { %v4738_v63 = vadd.f32 %v4737_v1, %v2146_v58  ;;  %v4739_v0 = vpop.f32.mrb[62].mxu1  ;;  %v4776_v2 = vpop.f32.mrb[64].mxu0 }
 0xdcc   : > { %v4777_v60 = vadd.f32 %v4776_v2, %v2150_v59  ;;  %v4740_v3 = vpop.f32.mrb[63].mxu1  ;;  %v4778_v4 = vpop.f32.mrb[65].mxu0 }
 0xdcd   : > { %v5127_v6 = vcombine.low %v4736_v62, %v4738_v63  ;;  %v4779_v7 = vadd.f32 %v4778_v4, %v2154_v61  ;;  %v4780_v8 = vpop.f32.mrb[66].mxu0 }
 0xdce   : > { %v4781_v11 = vpop.f32.mrb[67].mxu0 }
 0xdcf   : > { %v5141_v46 = vrot.slane %v5127_v6, %v7368_v5  ;;  %v5143_v10 = vcombine.low %v4777_v60, %v4779_v7 }
 0xdd1   : > { %v5142_v48 = vcombine.low %v5134_v12, %v5141_v46  ;;  %v5151_v28 = vrot.slane %v5143_v10, %v7368_v5 }
 0xdd3   : > { %5190 = vst [vmem:[%s6338_s16 + $0x70] sm:$0xff] %v5142_v48 }
 0xdd9   : > { %v4817_v17 = vpop.f32.mrb[64].mxu1 }
 0xdda   : > { %v4818_v18 = vadd.f32 %v4817_v17, %v2158_v13  ;;  %v4819_v19 = vpop.f32.mrb[65].mxu1 }
 0xddb   : > { %v4820_v9 = vadd.f32 %v4819_v19, %v2162_v14  ;;  %v4821_v25 = vpop.f32.mrb[66].mxu1 }
 0xddc   : > { %v4822_v26 = vpop.f32.mrb[67].mxu1 }
 0xddd   : > { %v5144_v27 = vcombine.low %v4818_v18, %v4820_v9 }
 0xddf   : > { %v5158_v29 = vrot.slane %v5144_v27, %v7368_v5 }
 0xde1   : > { %v5159_v38 = vcombine.low %v5151_v28, %v5158_v29 }
 0xde3   : > { %5191 = vst [vmem:[%s6338_s16 + $0x78] sm:$0xff] %v5159_v38 }
 0xde4 PF: > { %s7692_s23 = sld [smem:[#allocation9_spill]]  ;;  %s7695_s1 = sld [smem:[#allocation30_spill]] }
 0xde5   : > { %s7693_s30 = sld [smem:[#allocation7_spill]]  ;;  %s5211_s2 = sshll.u32 %s662_s0, 4  ;;  %s5212_s2 = int_to_ptr.vmem [resolvable:$true] %s5211_s2 }
 0xde6   : > { %s6013_s6 = scalar_lea.vmem %s5212_s2, 32  ;;  %s6118_s16 = smov [#allocation3]  }
 0xde7   : > { %p6014_p4 = scmp.ne.s32.totalorder %s5212_s2, %s6013_s6  ;;  %s6017_s11 = sshll.u32 %s6118_s16, 4  ;;  %s6018_s11 = int_to_ptr.vmem [resolvable:$false] %s6017_s11 }
 0xde8   : > { %s6019_s15 = scalar_lea.vmem %s6018_s11, 64  ;;  %p6020_p7 = scmp.lt.s32.totalorder %s5212_s2, %s6018_s11 }
 0xde9   : > { %p6015_p5 = pnand %p6014_p4, %p6258_p3  ;;  %p6021_p8 = scmp.lt.s32.totalorder %s6019_s15, %s6013_s6 }
 0xdea   : > { %s5755_s28 = sshll.u32 %s7692_s23, 5 }
 0xdeb   : > { %s7565_s20 = scalar_lea.hbm %s7695_s1, %s5755_s28  ;;  %s7696_s4 = sand.u32 1, %s7693_s30  }
 0xdec   : > { %s5193_s5 = scalar_lea.sflag [#allocation4], %s7696_s4  ;;  %p6016_p6 = pneg %p6015_p5 }
 0xded   : > { %p6022_p10 = por %p6021_p8, %p6020_p7 }
 0xdef   : > { %p6023_p11 = pnand %p6022_p10, %p6016_p6 }
 0xdf1   : > { %6026 = shalt.err (!%p6023_p11)
}
 0xdf2   : > { %s6027_s29 = scalar_lea.hbm %s7565_s20, 32  ;;  %s6031_s3 = scalar_lea.hbm %s7695_s1, 64 }
 0xdf3   : > { %p6028_p12 = scmp.ne.s32.totalorder %s7565_s20, %s6027_s29  ;;  %p6032_p1 = scmp.lt.u32.totalorder %s7565_s20, %s7695_s1 }
 0xdf4   : > { %p6033_p2 = scmp.lt.u32.totalorder %s6031_s3, %s6027_s29  ;;  %p6035_p5 = scmp.lt.u32.totalorder %s6027_s29, %s7565_s20 }
 0xdf5   : > { %p6029_p13 = pnand %p6028_p12, %p6258_p3 }
 0xdf6   : > { %p6034_p4 = por %p6033_p2, %p6032_p1 }
 0xdf7   : > { %p6030_p0 = pneg %p6029_p13 }
 0xdf8   : > { %p6036_p6 = por %p6035_p5, %p6034_p4 }
 0xdfa   : > { %p6037_p7 = pnand %p6036_p6, %p6030_p0 }
 0xdfc   : > { %6040 = shalt.err (!%p6037_p7)
}
 0xdfd   : > { %5887 = dma.vmem_to_hbm [thread:$0]  (%p6258_p3), %s5212_s2, 32, %s7565_s20, %s5193_s5  }
 0xdfe PF: > { %s7697_s27 = sld [smem:[#allocation12_spill]]  ;;  %s7698_s22 = sld [smem:[#allocation6_spill]] }
 0xe04   : > { %p5893_p8 = scmp.ge.s32.totalorder %s7697_s27, 2  ;;  %s5226_s30 = sand.u32 1, %s7698_s22  }
 0xe05   : > { %s5227_s28 = scalar_lea.sflag [#allocation4], %s5226_s30 }
 0xe06   : > { %p5890_p10 = pnand %p5893_p8, %p6268_p9 }
 0xe08   : > { %6074 = dma.done.wait (!%p5890_p10), %s5227_s28, 32  }
 0xe09   : > { %6076 = vsyncadd (!%p5890_p10), %s5227_s28, 4294967264  ;;  %s31_s30 = sadd.s32 1, %s7697_s27   ;;  %s7700_s24 = sld [smem:[#allocation7_spill]] }
 0xe0a   : > { %p28_p11 = scmp.ge.s32.totalorder %s31_s30, 6   ;;  %s7701_s25 = sld [smem:[#allocation8_spill]] }
 0xe0b   : > { %s7702_s26 = sld [smem:[#allocation17_spill]]  ;;  %s7703_s27 = sld [smem:[#allocation10_spill]] }
 0xe0c   : > { %s7704_s28 = sld [smem:[#allocation11_spill]]  ;;  %s7705_s29 = sld [smem:[#allocation13_spill]] }
 0xe0d   : > { %s7706_s0 = sld [smem:[#allocation15_spill]]  ;;  %30 = sbr.rel (!%p28_p11) target bundleno = 19 (0x13), region = 167 }
 0xe14   :  { %5240 = vsyncpa [#allocation4], 1 }
 0xe15   :  { %5242 = vsyncpa [#allocation4 + $0x1], 1 }

</bundles_post_ra>
